<compile_context>
chip_gen: v7x
topology: tpu7x:2x2x1
jax: 0.10.0
libtpu: 0.0.40
codegen_flags: <defaults>
</compile_context>

<pallas_src>
import functools

import jax
import jax.numpy as jnp
from jax import lax
from jax.experimental import pallas as pl
from jax.experimental.pallas import tpu as pltpu

TAU = 2.0 / 3.0          # gumbel-softmax temperature (fixed in the PyTorch module)
GATE_HIDDEN = 16         # Gate fc1 width (fixed at 16 in the PyTorch module)
BN_EPS = 1e-5

# tap order k = (dh+1)*3 + (dw+1)  ==  kh*3 + kw of the 3x3 window
TAPS = tuple((dh, dw) for dh in (-1, 0, 1) for dw in (-1, 0, 1))


# --------------------------------------------------------------------------
# Fused kernel: gate -> conv1+BN+relu -> gate-mul -> conv2+BN -> +residual -> relu
# --------------------------------------------------------------------------
def _make_block_kernel(Nb, H, W, C):
    HW = H * W
    Mb = Nb * HW
    log2w = W.bit_length() - 1
    log2hw = HW.bit_length() - 1
    inv_hw = 1.0 / HW
    inv_tau = 1.0 / TAU

    def kernel(x_ref, w1_ref, s1_ref, sh1_ref, w2_ref, s2_ref, sh2_ref,
               fc1w_ref, g1s_ref, g1sh_ref, fc2w_ref, fc2b_ref, gum_ref,
               o_ref, col_ref):
        x = x_ref[...]                                                # (C, Mb) f32

        # ---- positional helpers, generated in-kernel (no HBM constants) ----
        lane = lax.broadcasted_iota(jnp.int32, (C, Mb), 1)
        w_pos = lane & (W - 1)                                        # column within image
        h_pos = (lane & (HW - 1)) >> log2w                            # row within image
        img = lane >> log2hw                                          # image index within block
        hm_lo, hm_hi = h_pos >= 1, h_pos <= H - 2                     # 3x3 tap validity (pad=1)
        wm_lo, wm_hi = w_pos >= 1, w_pos <= W - 2

        # ---- channel gate, per image in the block:
        #      avgpool -> fc1 -> BN1d -> relu -> fc2 -> pi=exp -> hard gumbel argmax ----
        ci = lax.broadcasted_iota(jnp.int32, (C, 1), 0).astype(jnp.float32)
        gate_full = None
        for n in range(Nb):                                           # Nb is tiny (<= batch)
            pooled = jnp.sum(x[:, n * HW:(n + 1) * HW], axis=1, keepdims=True) * inv_hw   # (C,1)
            h1 = jnp.dot(fc1w_ref[...], pooled, preferred_element_type=jnp.float32)       # (16,1)
            h1 = jnp.maximum(h1 * g1s_ref[...] + g1sh_ref[...], 0.0)  # BN1d (+fc1 bias folded) + relu
            logits = jnp.dot(fc2w_ref[...], h1,
                             preferred_element_type=jnp.float32) + fc2b_ref[...]          # (C,1)
            pi = jnp.exp(logits)                                      # module feeds exp(fc2) to gumbel_softmax
            g = (pi + gum_ref[:, n:n + 1]) * inv_tau                  # (C,1)
            gmax = jnp.max(g, axis=0, keepdims=True)
            first = jnp.min(jnp.where(g == gmax, ci, jnp.float32(C)), axis=0, keepdims=True)
            gate_n = (ci == first).astype(jnp.float32)                # hard one-hot column (C,1)
            contrib = (img == n).astype(jnp.float32) * gate_n         # broadcast over that image's lanes
            gate_full = contrib if gate_full is None else gate_full + contrib

        # ---- 3x3 conv: masked circular lane-rolls staged into a (9C, Mb) im2col
        #      scratch, then a single (C, 9C) @ (9C, Mb) MXU dot ----
        def stage_im2col(act):
            for k, (dh, dw) in enumerate(TAPS):
                off = dh * W + dw
                t = act if off == 0 else pltpu.roll(act, shift=(-off) % Mb, axis=1)
                m = None
                if dh == -1:
                    m = hm_lo
                elif dh == 1:
                    m = hm_hi
                if dw == -1:
                    m = wm_lo if m is None else m & wm_lo
                elif dw == 1:
                    m = wm_hi if m is None else m & wm_hi
                if m is not None:
                    t = jnp.where(m, t, 0.0)                          # zero wrapped / out-of-image lanes
                col_ref[k * C:(k + 1) * C, :] = t                     # sublane-aligned static store

        stage_im2col(x)
        y1 = jnp.dot(w1_ref[...], col_ref[...], preferred_element_type=jnp.float32)   # conv1
        y1 = jnp.maximum(y1 * s1_ref[...] + sh1_ref[...], 0.0) * gate_full            # BN1 + relu + gate

        stage_im2col(y1)
        y2 = jnp.dot(w2_ref[...], col_ref[...], preferred_element_type=jnp.float32)   # conv2
        o_ref[...] = jnp.maximum(y2 * s2_ref[...] + sh2_ref[...] + x, 0.0)            # BN2 + residual + relu

    return kernel


# --------------------------------------------------------------------------
# Host-side glue
# --------------------------------------------------------------------------
def _fold_bn(gamma, beta, mean, var, bias=None, eps=BN_EPS):
    """Fold eval-mode BatchNorm (+ optional preceding bias) into scale/shift columns."""
    scale = gamma / jnp.sqrt(var + eps)
    shift = beta - mean * scale
    if bias is not None:
        shift = shift + bias * scale
    return scale.reshape(-1, 1), shift.reshape(-1, 1)


def basic_block_forward(x_nchw, p, gumbel_noise, stride=1, batch_blocks=1):
    assert stride == 1, "identity shortcut requires stride == 1"
    N, C_in, H, W = x_nchw.shape
    C_out = p["conv1_w"].shape[0]
    assert C_in == C_out, "identity shortcut requires C_in == C_out"
    C = C_out
    HW = H * W
    assert (W & (W - 1)) == 0 and (HW & (HW - 1)) == 0, "W and H*W must be powers of two"
    assert HW % 128 == 0, "flat image must be lane-tile aligned"
    assert N % batch_blocks == 0
    Nb = N // batch_blocks
    Mb = Nb * HW
    M = N * HW

    # channel-major flat activations: (C, N*H*W), lane-dense spatial axis
    x_t = jnp.transpose(x_nchw, (1, 0, 2, 3)).reshape(C, M)

    # conv weights concatenated over the 9 taps: (C_out, 9*C_in), tap k = kh*3 + kw
    w1_cat = jnp.transpose(p["conv1_w"], (0, 2, 3, 1)).reshape(C, 9 * C)
    w2_cat = jnp.transpose(p["conv2_w"], (0, 2, 3, 1)).reshape(C, 9 * C)

    # eval-mode BatchNorms folded into per-channel scale/shift columns (conv/fc bias folded in)
    s1, sh1 = _fold_bn(p["bn1_g"], p["bn1_b"], p["bn1_m"], p["bn1_v"], p["conv1_b"])
    s2, sh2 = _fold_bn(p["bn2_g"], p["bn2_b"], p["bn2_m"], p["bn2_v"], p["conv2_b"])
    g1s, g1sh = _fold_bn(p["bn1d_g"], p["bn1d_b"], p["bn1d_m"], p["bn1d_v"], p["fc1_b"])
    fc2b = p["fc2_b"].reshape(-1, 1)

    # gumbel noise regrouped as (block, channel, image-within-block)
    gum = jnp.transpose(gumbel_noise.reshape(batch_blocks, Nb, C), (0, 2, 1))

    kernel = _make_block_kernel(Nb, H, W, C)

    def resident(a):                       # small weights: resident across all grid steps
        nd = a.ndim
        return pl.BlockSpec(a.shape, lambda i, _nd=nd: (0,) * _nd)

    small = (w1_cat, s1, sh1, w2_cat, s2, sh2, p["fc1_w"], g1s, g1sh, p["fc2_w"], fc2b)

    out_t = pl.pallas_call(
        kernel,
        out_shape=jax.ShapeDtypeStruct((C, M), jnp.float32),
        grid=(batch_blocks,),
        in_specs=[pl.BlockSpec((C, Mb), lambda i: (0, i))]
                 + [resident(a) for a in small]
                 + [pl.BlockSpec((None, C, Nb), lambda i: (i, 0, 0))],
        out_specs=pl.BlockSpec((C, Mb), lambda i: (0, i)),
        scratch_shapes=[pltpu.VMEM((9 * C, Mb), jnp.float32)],       # im2col staging
        compiler_params=pltpu.CompilerParams(
            dimension_semantics=("parallel",)),                      # batch blocks independent -> both v7x TCs
    )(x_t, *small, gum)

    return jnp.transpose(out_t.reshape(C, N, H, W), (1, 0, 2, 3))    # back to NCHW


# --------------------------------------------------------------------------
# Pure-JAX reference of the PyTorch forward (eval-mode BN, external gumbel noise)
# --------------------------------------------------------------------------
def basic_block_reference(x, p, gumbel_noise, eps=BN_EPS):
    hp = lax.Precision.HIGHEST

    def bn2d(y, g, b, m, v):
        return ((y - m[None, :, None, None]) / jnp.sqrt(v + eps)[None, :, None, None]
                * g[None, :, None, None] + b[None, :, None, None])

    # Gate
    pooled = jnp.mean(x, axis=(2, 3))                                          # (N, C)
    h = jnp.dot(pooled, p["fc1_w"].T, precision=hp) + p["fc1_b"]
    h = (h - p["bn1d_m"]) / jnp.sqrt(p["bn1d_v"] + eps) * p["bn1d_g"] + p["bn1d_b"]
    h = jnp.maximum(h, 0.0)
    pi = jnp.exp(jnp.dot(h, p["fc2_w"].T, precision=hp) + p["fc2_b"])
    g = (pi + gumbel_noise) / TAU
    gate = jax.nn.one_hot(jnp.argmax(g, axis=1), x.shape[1], dtype=x.dtype)    # (N, C) hard

    conv = functools.partial(lax.conv_general_dilated, window_strides=(1, 1), padding="SAME",
                             dimension_numbers=("NCHW", "OIHW", "NCHW"), precision=hp)

    y = conv(x, p["conv1_w"]) + p["conv1_b"][None, :, None, None]
    y = jnp.maximum(bn2d(y, p["bn1_g"], p["bn1_b"], p["bn1_m"], p["bn1_v"]), 0.0)
    y = y * gate[:, :, None, None]
    y = conv(y, p["conv2_w"]) + p["conv2_b"][None, :, None, None]
    y = bn2d(y, p["bn2_g"], p["bn2_b"], p["bn2_m"], p["bn2_v"]) + x
    return jnp.maximum(y, 0.0)


# --------------------------------------------------------------------------
# Deterministic parameter init + test run
# --------------------------------------------------------------------------
if __name__ == "__main__":
    key = jax.random.PRNGKey(0)
    ks = jax.random.split(key, 12)

    N, C, H, W = 4, 8, 16, 16        # NCHW, same layout as the PyTorch module

    x = jax.random.normal(ks[0], (N, C, H, W), jnp.float32)
    gumbel_noise = jax.random.gumbel(ks[1], (N, C), jnp.float32)

    params = {
        # conv weights in PyTorch layout (Cout, Cin, KH, KW)
        "conv1_w": 0.1 * jax.random.normal(ks[2], (C, C, 3, 3), jnp.float32),
        "conv1_b": 0.01 * jax.random.normal(ks[3], (C,), jnp.float32),
        "conv2_w": 0.1 * jax.random.normal(ks[4], (C, C, 3, 3), jnp.float32),
        "conv2_b": 0.01 * jax.random.normal(ks[5], (C,), jnp.float32),
        # Gate MLP, PyTorch Linear layout (out_features, in_features)
        "fc1_w": 0.2 * jax.random.normal(ks[6], (GATE_HIDDEN, C), jnp.float32),
        "fc1_b": 0.01 * jax.random.normal(ks[7], (GATE_HIDDEN,), jnp.float32),
        "fc2_w": 0.2 * jax.random.normal(ks[8], (C, GATE_HIDDEN), jnp.float32),
        "fc2_b": 0.01 * jax.random.normal(ks[9], (C,), jnp.float32),
        # BatchNorms (eval mode): gamma, beta, running_mean, running_var
        "bn1_g": jnp.ones((C,), jnp.float32),
        "bn1_b": jnp.zeros((C,), jnp.float32),
        "bn1_m": 0.05 * jax.random.normal(ks[10], (C,), jnp.float32),
        "bn1_v": jnp.ones((C,), jnp.float32) * 1.1,
        "bn2_g": jnp.ones((C,), jnp.float32),
        "bn2_b": jnp.zeros((C,), jnp.float32),
        "bn2_m": 0.05 * jax.random.normal(ks[11], (C,), jnp.float32),
        "bn2_v": jnp.ones((C,), jnp.float32) * 0.9,
        "bn1d_g": jnp.ones((GATE_HIDDEN,), jnp.float32),
        "bn1d_b": jnp.zeros((GATE_HIDDEN,), jnp.float32),
        "bn1d_m": jnp.zeros((GATE_HIDDEN,), jnp.float32),
        "bn1d_v": jnp.ones((GATE_HIDDEN,), jnp.float32),
    }

    ref = jax.block_until_ready(basic_block_reference(x, params, gumbel_noise))

    # batch_blocks=1: single-step (v5e/v6e).  batch_blocks=2: parallel grid over batch (v7x 2-TC).
    for bb in (1, 2):
        fwd = jax.jit(functools.partial(basic_block_forward, stride=1, batch_blocks=bb))
        out = jax.block_until_ready(fwd(x, params, gumbel_noise))
        assert out.shape == (N, C, H, W), out.shape
        assert bool(jnp.all(jnp.isfinite(out)))
        err = float(jnp.max(jnp.abs(out - ref)))
        assert err < 2e-3, f"batch_blocks={bb}: max abs error vs reference = {err}"

    print("KERNEL_OK")
</pallas_src>

<mosaic_0001>
module attributes {stable_mosaic.version = 11 : i64} {
  func.func @kernel(%arg0: i32, %arg1: memref<8x1024xf32, #tpu.memory_space<vmem>>, %arg2: memref<8x72xf32, #tpu.memory_space<vmem>>, %arg3: memref<8x1xf32, #tpu.memory_space<vmem>>, %arg4: memref<8x1xf32, #tpu.memory_space<vmem>>, %arg5: memref<8x72xf32, #tpu.memory_space<vmem>>, %arg6: memref<8x1xf32, #tpu.memory_space<vmem>>, %arg7: memref<8x1xf32, #tpu.memory_space<vmem>>, %arg8: memref<16x8xf32, #tpu.memory_space<vmem>>, %arg9: memref<16x1xf32, #tpu.memory_space<vmem>>, %arg10: memref<16x1xf32, #tpu.memory_space<vmem>>, %arg11: memref<8x16xf32, #tpu.memory_space<vmem>>, %arg12: memref<8x1xf32, #tpu.memory_space<vmem>>, %arg13: memref<1x8x4xf32, #tpu.memory_space<vmem>>, %arg14: memref<8x1024xf32, #tpu.memory_space<vmem>>, %arg15: memref<72x1024xf32, #tpu.memory_space<vmem>>) attributes {dimension_semantics = [#tpu.dimension_semantics<parallel>], iteration_bounds = array<i64: 1>, scalar_prefetch = 0 : i64, scratch_operands = 1 : i64, tpu.core_type = #tpu.core_type<tc>, window_params = [{transform_indices = @transform_0, window_bounds = array<i64: 8, 1024>}, {pipeline_mode = #tpu.pipeline_mode<synchronous>, transform_indices = @transform_1, window_bounds = array<i64: 8, 72>}, {pipeline_mode = #tpu.pipeline_mode<synchronous>, transform_indices = @transform_2, window_bounds = array<i64: 8, 1>}, {pipeline_mode = #tpu.pipeline_mode<synchronous>, transform_indices = @transform_3, window_bounds = array<i64: 8, 1>}, {pipeline_mode = #tpu.pipeline_mode<synchronous>, transform_indices = @transform_4, window_bounds = array<i64: 8, 72>}, {pipeline_mode = #tpu.pipeline_mode<synchronous>, transform_indices = @transform_5, window_bounds = array<i64: 8, 1>}, {pipeline_mode = #tpu.pipeline_mode<synchronous>, transform_indices = @transform_6, window_bounds = array<i64: 8, 1>}, {pipeline_mode = #tpu.pipeline_mode<synchronous>, transform_indices = @transform_7, window_bounds = array<i64: 16, 8>}, {pipeline_mode = #tpu.pipeline_mode<synchronous>, transform_indices = @transform_8, window_bounds = array<i64: 16, 1>}, {pipeline_mode = #tpu.pipeline_mode<synchronous>, transform_indices = @transform_9, window_bounds = array<i64: 16, 1>}, {pipeline_mode = #tpu.pipeline_mode<synchronous>, transform_indices = @transform_10, window_bounds = array<i64: 8, 16>}, {pipeline_mode = #tpu.pipeline_mode<synchronous>, transform_indices = @transform_11, window_bounds = array<i64: 8, 1>}, {transform_indices = @transform_12, window_bounds = array<i64: 1, 8, 4>}, {transform_indices = @transform_13, window_bounds = array<i64: 8, 1024>}]} {
    %c0 = arith.constant 0 : index
    %c0_0 = arith.constant 0 : index
    %0 = vector.load %arg1[%c0, %c0_0] : memref<8x1024xf32, #tpu.memory_space<vmem>>, vector<8x1024xf32>
    %1 = tpu.iota {dimensions = array<i32: 1>} : vector<8x1024xi32>
    %c15_i32 = arith.constant 15 : i32
    %2 = vector.broadcast %c15_i32 : i32 to vector<8x1024xi32>
    %3 = arith.andi %1, %2 : vector<8x1024xi32>
    %c255_i32 = arith.constant 255 : i32
    %4 = vector.broadcast %c255_i32 : i32 to vector<8x1024xi32>
    %5 = arith.andi %1, %4 : vector<8x1024xi32>
    %c4_i32 = arith.constant 4 : i32
    %6 = vector.broadcast %c4_i32 : i32 to vector<8x1024xi32>
    %7 = arith.shrsi %5, %6 : vector<8x1024xi32>
    %c8_i32 = arith.constant 8 : i32
    %8 = vector.broadcast %c8_i32 : i32 to vector<8x1024xi32>
    %9 = arith.shrsi %1, %8 : vector<8x1024xi32>
    %c1_i32 = arith.constant 1 : i32
    %10 = vector.broadcast %c1_i32 : i32 to vector<8x1024xi32>
    %11 = arith.cmpi sge, %7, %10 : vector<8x1024xi32>
    %c14_i32 = arith.constant 14 : i32
    %12 = vector.broadcast %c14_i32 : i32 to vector<8x1024xi32>
    %13 = arith.cmpi sle, %7, %12 : vector<8x1024xi32>
    %c1_i32_1 = arith.constant 1 : i32
    %14 = vector.broadcast %c1_i32_1 : i32 to vector<8x1024xi32>
    %15 = arith.cmpi sge, %3, %14 : vector<8x1024xi32>
    %c14_i32_2 = arith.constant 14 : i32
    %16 = vector.broadcast %c14_i32_2 : i32 to vector<8x1024xi32>
    %17 = arith.cmpi sle, %3, %16 : vector<8x1024xi32>
    %18 = tpu.iota {dimensions = array<i32: 0>} : vector<8x1xi32>
    %19 = arith.sitofp %18 : vector<8x1xi32> to vector<8x1xf32>
    %20 = vector.extract_strided_slice %0 {offsets = [0, 0], sizes = [8, 256], strides = [1, 1]} : vector<8x1024xf32> to vector<8x256xf32>
    %cst = arith.constant dense<0.000000e+00> : vector<8xf32>
    %21 = vector.multi_reduction <add>, %20, %cst [1] : vector<8x256xf32> to vector<8xf32>
    %22 = vector.shape_cast %21 : vector<8xf32> to vector<8x1xf32>
    %cst_3 = arith.constant 3.906250e-03 : f32
    %23 = vector.broadcast %cst_3 : f32 to vector<8x1xf32>
    %24 = arith.mulf %22, %23 : vector<8x1xf32>
    %c0_4 = arith.constant 0 : index
    %c0_5 = arith.constant 0 : index
    %25 = vector.load %arg8[%c0_4, %c0_5] : memref<16x8xf32, #tpu.memory_space<vmem>>, vector<16x8xf32>
    %cst_6 = arith.constant dense<0.000000e+00> : vector<16x1xf32>
    %26 = tpu.matmul %25, %24, %cst_6 {dimension_numbers = #tpu.dot_dimension_numbers<[1], [0], [0], [1], [0, 0, 1, 1], [], []>} : vector<16x8xf32>, vector<8x1xf32>, vector<16x1xf32> -> vector<16x1xf32>
    %c0_7 = arith.constant 0 : index
    %c0_8 = arith.constant 0 : index
    %27 = vector.load %arg9[%c0_7, %c0_8] : memref<16x1xf32, #tpu.memory_space<vmem>>, vector<16x1xf32>
    %28 = arith.mulf %26, %27 : vector<16x1xf32>
    %c0_9 = arith.constant 0 : index
    %c0_10 = arith.constant 0 : index
    %29 = vector.load %arg10[%c0_9, %c0_10] : memref<16x1xf32, #tpu.memory_space<vmem>>, vector<16x1xf32>
    %30 = arith.addf %28, %29 : vector<16x1xf32>
    %cst_11 = arith.constant 0.000000e+00 : f32
    %31 = vector.broadcast %cst_11 : f32 to vector<16x1xf32>
    %32 = arith.maximumf %30, %31 : vector<16x1xf32>
    %c0_12 = arith.constant 0 : index
    %c0_13 = arith.constant 0 : index
    %33 = vector.load %arg11[%c0_12, %c0_13] : memref<8x16xf32, #tpu.memory_space<vmem>>, vector<8x16xf32>
    %cst_14 = arith.constant dense<0.000000e+00> : vector<8x1xf32>
    %34 = tpu.matmul %33, %32, %cst_14 {dimension_numbers = #tpu.dot_dimension_numbers<[1], [0], [0], [1], [0, 0, 1, 1], [], []>} : vector<8x16xf32>, vector<16x1xf32>, vector<8x1xf32> -> vector<8x1xf32>
    %c0_15 = arith.constant 0 : index
    %c0_16 = arith.constant 0 : index
    %35 = vector.load %arg12[%c0_15, %c0_16] : memref<8x1xf32, #tpu.memory_space<vmem>>, vector<8x1xf32>
    %36 = arith.addf %34, %35 : vector<8x1xf32>
    %37 = math.exp %36 : vector<8x1xf32>
    %c0_17 = arith.constant 0 : index
    %c0_18 = arith.constant 0 : index
    %c0_19 = arith.constant 0 : index
    %38 = vector.load %arg13[%c0_17, %c0_18, %c0_19] : memref<1x8x4xf32, #tpu.memory_space<vmem>>, vector<1x8x1xf32>
    %39 = vector.shape_cast %38 : vector<1x8x1xf32> to vector<8x1xf32>
    %40 = arith.addf %37, %39 : vector<8x1xf32>
    %cst_20 = arith.constant 1.500000e+00 : f32
    %41 = vector.broadcast %cst_20 : f32 to vector<8x1xf32>
    %42 = arith.mulf %40, %41 : vector<8x1xf32>
    %cst_21 = arith.constant dense<0xFF800000> : vector<1xf32>
    %43 = vector.multi_reduction <maximumf>, %42, %cst_21 [0] : vector<8x1xf32> to vector<1xf32>
    %44 = vector.shape_cast %43 : vector<1xf32> to vector<1x1xf32>
    %45 = vector.broadcast %44 : vector<1x1xf32> to vector<8x1xf32>
    %46 = arith.cmpf oeq, %42, %45 : vector<8x1xf32>
    %cst_22 = arith.constant 8.000000e+00 : f32
    %47 = vector.broadcast %cst_22 : f32 to vector<8x1xf32>
    %48 = arith.select %46, %19, %47 : vector<8x1xi1>, vector<8x1xf32>
    %cst_23 = arith.constant dense<0x7F800000> : vector<1xf32>
    %49 = vector.multi_reduction <minimumf>, %48, %cst_23 [0] : vector<8x1xf32> to vector<1xf32>
    %50 = vector.shape_cast %49 : vector<1xf32> to vector<1x1xf32>
    %51 = vector.broadcast %50 : vector<1x1xf32> to vector<8x1xf32>
    %52 = arith.cmpf oeq, %19, %51 : vector<8x1xf32>
    %53 = arith.extui %52 : vector<8x1xi1> to vector<8x1xi32>
    %54 = arith.sitofp %53 : vector<8x1xi32> to vector<8x1xf32>
    %c0_i32 = arith.constant 0 : i32
    %55 = vector.broadcast %c0_i32 : i32 to vector<8x1024xi32>
    %56 = arith.cmpi eq, %9, %55 : vector<8x1024xi32>
    %57 = arith.extui %56 : vector<8x1024xi1> to vector<8x1024xi32>
    %58 = arith.sitofp %57 : vector<8x1024xi32> to vector<8x1024xf32>
    %59 = vector.broadcast %54 : vector<8x1xf32> to vector<8x1024xf32>
    %60 = arith.mulf %58, %59 : vector<8x1024xf32>
    %61 = vector.extract_strided_slice %0 {offsets = [0, 256], sizes = [8, 256], strides = [1, 1]} : vector<8x1024xf32> to vector<8x256xf32>
    %cst_24 = arith.constant dense<0.000000e+00> : vector<8xf32>
    %62 = vector.multi_reduction <add>, %61, %cst_24 [1] : vector<8x256xf32> to vector<8xf32>
    %63 = vector.shape_cast %62 : vector<8xf32> to vector<8x1xf32>
    %cst_25 = arith.constant 3.906250e-03 : f32
    %64 = vector.broadcast %cst_25 : f32 to vector<8x1xf32>
    %65 = arith.mulf %63, %64 : vector<8x1xf32>
    %c0_26 = arith.constant 0 : index
    %c0_27 = arith.constant 0 : index
    %66 = vector.load %arg8[%c0_26, %c0_27] : memref<16x8xf32, #tpu.memory_space<vmem>>, vector<16x8xf32>
    %cst_28 = arith.constant dense<0.000000e+00> : vector<16x1xf32>
    %67 = tpu.matmul %66, %65, %cst_28 {dimension_numbers = #tpu.dot_dimension_numbers<[1], [0], [0], [1], [0, 0, 1, 1], [], []>} : vector<16x8xf32>, vector<8x1xf32>, vector<16x1xf32> -> vector<16x1xf32>
    %c0_29 = arith.constant 0 : index
    %c0_30 = arith.constant 0 : index
    %68 = vector.load %arg9[%c0_29, %c0_30] : memref<16x1xf32, #tpu.memory_space<vmem>>, vector<16x1xf32>
    %69 = arith.mulf %67, %68 : vector<16x1xf32>
    %c0_31 = arith.constant 0 : index
    %c0_32 = arith.constant 0 : index
    %70 = vector.load %arg10[%c0_31, %c0_32] : memref<16x1xf32, #tpu.memory_space<vmem>>, vector<16x1xf32>
    %71 = arith.addf %69, %70 : vector<16x1xf32>
    %cst_33 = arith.constant 0.000000e+00 : f32
    %72 = vector.broadcast %cst_33 : f32 to vector<16x1xf32>
    %73 = arith.maximumf %71, %72 : vector<16x1xf32>
    %c0_34 = arith.constant 0 : index
    %c0_35 = arith.constant 0 : index
    %74 = vector.load %arg11[%c0_34, %c0_35] : memref<8x16xf32, #tpu.memory_space<vmem>>, vector<8x16xf32>
    %cst_36 = arith.constant dense<0.000000e+00> : vector<8x1xf32>
    %75 = tpu.matmul %74, %73, %cst_36 {dimension_numbers = #tpu.dot_dimension_numbers<[1], [0], [0], [1], [0, 0, 1, 1], [], []>} : vector<8x16xf32>, vector<16x1xf32>, vector<8x1xf32> -> vector<8x1xf32>
    %c0_37 = arith.constant 0 : index
    %c0_38 = arith.constant 0 : index
    %76 = vector.load %arg12[%c0_37, %c0_38] : memref<8x1xf32, #tpu.memory_space<vmem>>, vector<8x1xf32>
    %77 = arith.addf %75, %76 : vector<8x1xf32>
    %78 = math.exp %77 : vector<8x1xf32>
    %c0_39 = arith.constant 0 : index
    %c0_40 = arith.constant 0 : index
    %c1 = arith.constant 1 : index
    %79 = vector.load %arg13[%c0_39, %c0_40, %c1] : memref<1x8x4xf32, #tpu.memory_space<vmem>>, vector<1x8x1xf32>
    %80 = vector.shape_cast %79 : vector<1x8x1xf32> to vector<8x1xf32>
    %81 = arith.addf %78, %80 : vector<8x1xf32>
    %cst_41 = arith.constant 1.500000e+00 : f32
    %82 = vector.broadcast %cst_41 : f32 to vector<8x1xf32>
    %83 = arith.mulf %81, %82 : vector<8x1xf32>
    %cst_42 = arith.constant dense<0xFF800000> : vector<1xf32>
    %84 = vector.multi_reduction <maximumf>, %83, %cst_42 [0] : vector<8x1xf32> to vector<1xf32>
    %85 = vector.shape_cast %84 : vector<1xf32> to vector<1x1xf32>
    %86 = vector.broadcast %85 : vector<1x1xf32> to vector<8x1xf32>
    %87 = arith.cmpf oeq, %83, %86 : vector<8x1xf32>
    %cst_43 = arith.constant 8.000000e+00 : f32
    %88 = vector.broadcast %cst_43 : f32 to vector<8x1xf32>
    %89 = arith.select %87, %19, %88 : vector<8x1xi1>, vector<8x1xf32>
    %cst_44 = arith.constant dense<0x7F800000> : vector<1xf32>
    %90 = vector.multi_reduction <minimumf>, %89, %cst_44 [0] : vector<8x1xf32> to vector<1xf32>
    %91 = vector.shape_cast %90 : vector<1xf32> to vector<1x1xf32>
    %92 = vector.broadcast %91 : vector<1x1xf32> to vector<8x1xf32>
    %93 = arith.cmpf oeq, %19, %92 : vector<8x1xf32>
    %94 = arith.extui %93 : vector<8x1xi1> to vector<8x1xi32>
    %95 = arith.sitofp %94 : vector<8x1xi32> to vector<8x1xf32>
    %c1_i32_45 = arith.constant 1 : i32
    %96 = vector.broadcast %c1_i32_45 : i32 to vector<8x1024xi32>
    %97 = arith.cmpi eq, %9, %96 : vector<8x1024xi32>
    %98 = arith.extui %97 : vector<8x1024xi1> to vector<8x1024xi32>
    %99 = arith.sitofp %98 : vector<8x1024xi32> to vector<8x1024xf32>
    %100 = vector.broadcast %95 : vector<8x1xf32> to vector<8x1024xf32>
    %101 = arith.mulf %99, %100 : vector<8x1024xf32>
    %102 = arith.addf %60, %101 : vector<8x1024xf32>
    %103 = vector.extract_strided_slice %0 {offsets = [0, 512], sizes = [8, 256], strides = [1, 1]} : vector<8x1024xf32> to vector<8x256xf32>
    %cst_46 = arith.constant dense<0.000000e+00> : vector<8xf32>
    %104 = vector.multi_reduction <add>, %103, %cst_46 [1] : vector<8x256xf32> to vector<8xf32>
    %105 = vector.shape_cast %104 : vector<8xf32> to vector<8x1xf32>
    %cst_47 = arith.constant 3.906250e-03 : f32
    %106 = vector.broadcast %cst_47 : f32 to vector<8x1xf32>
    %107 = arith.mulf %105, %106 : vector<8x1xf32>
    %c0_48 = arith.constant 0 : index
    %c0_49 = arith.constant 0 : index
    %108 = vector.load %arg8[%c0_48, %c0_49] : memref<16x8xf32, #tpu.memory_space<vmem>>, vector<16x8xf32>
    %cst_50 = arith.constant dense<0.000000e+00> : vector<16x1xf32>
    %109 = tpu.matmul %108, %107, %cst_50 {dimension_numbers = #tpu.dot_dimension_numbers<[1], [0], [0], [1], [0, 0, 1, 1], [], []>} : vector<16x8xf32>, vector<8x1xf32>, vector<16x1xf32> -> vector<16x1xf32>
    %c0_51 = arith.constant 0 : index
    %c0_52 = arith.constant 0 : index
    %110 = vector.load %arg9[%c0_51, %c0_52] : memref<16x1xf32, #tpu.memory_space<vmem>>, vector<16x1xf32>
    %111 = arith.mulf %109, %110 : vector<16x1xf32>
    %c0_53 = arith.constant 0 : index
    %c0_54 = arith.constant 0 : index
    %112 = vector.load %arg10[%c0_53, %c0_54] : memref<16x1xf32, #tpu.memory_space<vmem>>, vector<16x1xf32>
    %113 = arith.addf %111, %112 : vector<16x1xf32>
    %cst_55 = arith.constant 0.000000e+00 : f32
    %114 = vector.broadcast %cst_55 : f32 to vector<16x1xf32>
    %115 = arith.maximumf %113, %114 : vector<16x1xf32>
    %c0_56 = arith.constant 0 : index
    %c0_57 = arith.constant 0 : index
    %116 = vector.load %arg11[%c0_56, %c0_57] : memref<8x16xf32, #tpu.memory_space<vmem>>, vector<8x16xf32>
    %cst_58 = arith.constant dense<0.000000e+00> : vector<8x1xf32>
    %117 = tpu.matmul %116, %115, %cst_58 {dimension_numbers = #tpu.dot_dimension_numbers<[1], [0], [0], [1], [0, 0, 1, 1], [], []>} : vector<8x16xf32>, vector<16x1xf32>, vector<8x1xf32> -> vector<8x1xf32>
    %c0_59 = arith.constant 0 : index
    %c0_60 = arith.constant 0 : index
    %118 = vector.load %arg12[%c0_59, %c0_60] : memref<8x1xf32, #tpu.memory_space<vmem>>, vector<8x1xf32>
    %119 = arith.addf %117, %118 : vector<8x1xf32>
    %120 = math.exp %119 : vector<8x1xf32>
    %c0_61 = arith.constant 0 : index
    %c0_62 = arith.constant 0 : index
    %c2 = arith.constant 2 : index
    %121 = vector.load %arg13[%c0_61, %c0_62, %c2] : memref<1x8x4xf32, #tpu.memory_space<vmem>>, vector<1x8x1xf32>
    %122 = vector.shape_cast %121 : vector<1x8x1xf32> to vector<8x1xf32>
    %123 = arith.addf %120, %122 : vector<8x1xf32>
    %cst_63 = arith.constant 1.500000e+00 : f32
    %124 = vector.broadcast %cst_63 : f32 to vector<8x1xf32>
    %125 = arith.mulf %123, %124 : vector<8x1xf32>
    %cst_64 = arith.constant dense<0xFF800000> : vector<1xf32>
    %126 = vector.multi_reduction <maximumf>, %125, %cst_64 [0] : vector<8x1xf32> to vector<1xf32>
    %127 = vector.shape_cast %126 : vector<1xf32> to vector<1x1xf32>
    %128 = vector.broadcast %127 : vector<1x1xf32> to vector<8x1xf32>
    %129 = arith.cmpf oeq, %125, %128 : vector<8x1xf32>
    %cst_65 = arith.constant 8.000000e+00 : f32
    %130 = vector.broadcast %cst_65 : f32 to vector<8x1xf32>
    %131 = arith.select %129, %19, %130 : vector<8x1xi1>, vector<8x1xf32>
    %cst_66 = arith.constant dense<0x7F800000> : vector<1xf32>
    %132 = vector.multi_reduction <minimumf>, %131, %cst_66 [0] : vector<8x1xf32> to vector<1xf32>
    %133 = vector.shape_cast %132 : vector<1xf32> to vector<1x1xf32>
    %134 = vector.broadcast %133 : vector<1x1xf32> to vector<8x1xf32>
    %135 = arith.cmpf oeq, %19, %134 : vector<8x1xf32>
    %136 = arith.extui %135 : vector<8x1xi1> to vector<8x1xi32>
    %137 = arith.sitofp %136 : vector<8x1xi32> to vector<8x1xf32>
    %c2_i32 = arith.constant 2 : i32
    %138 = vector.broadcast %c2_i32 : i32 to vector<8x1024xi32>
    %139 = arith.cmpi eq, %9, %138 : vector<8x1024xi32>
    %140 = arith.extui %139 : vector<8x1024xi1> to vector<8x1024xi32>
    %141 = arith.sitofp %140 : vector<8x1024xi32> to vector<8x1024xf32>
    %142 = vector.broadcast %137 : vector<8x1xf32> to vector<8x1024xf32>
    %143 = arith.mulf %141, %142 : vector<8x1024xf32>
    %144 = arith.addf %102, %143 : vector<8x1024xf32>
    %145 = vector.extract_strided_slice %0 {offsets = [0, 768], sizes = [8, 256], strides = [1, 1]} : vector<8x1024xf32> to vector<8x256xf32>
    %cst_67 = arith.constant dense<0.000000e+00> : vector<8xf32>
    %146 = vector.multi_reduction <add>, %145, %cst_67 [1] : vector<8x256xf32> to vector<8xf32>
    %147 = vector.shape_cast %146 : vector<8xf32> to vector<8x1xf32>
    %cst_68 = arith.constant 3.906250e-03 : f32
    %148 = vector.broadcast %cst_68 : f32 to vector<8x1xf32>
    %149 = arith.mulf %147, %148 : vector<8x1xf32>
    %c0_69 = arith.constant 0 : index
    %c0_70 = arith.constant 0 : index
    %150 = vector.load %arg8[%c0_69, %c0_70] : memref<16x8xf32, #tpu.memory_space<vmem>>, vector<16x8xf32>
    %cst_71 = arith.constant dense<0.000000e+00> : vector<16x1xf32>
    %151 = tpu.matmul %150, %149, %cst_71 {dimension_numbers = #tpu.dot_dimension_numbers<[1], [0], [0], [1], [0, 0, 1, 1], [], []>} : vector<16x8xf32>, vector<8x1xf32>, vector<16x1xf32> -> vector<16x1xf32>
    %c0_72 = arith.constant 0 : index
    %c0_73 = arith.constant 0 : index
    %152 = vector.load %arg9[%c0_72, %c0_73] : memref<16x1xf32, #tpu.memory_space<vmem>>, vector<16x1xf32>
    %153 = arith.mulf %151, %152 : vector<16x1xf32>
    %c0_74 = arith.constant 0 : index
    %c0_75 = arith.constant 0 : index
    %154 = vector.load %arg10[%c0_74, %c0_75] : memref<16x1xf32, #tpu.memory_space<vmem>>, vector<16x1xf32>
    %155 = arith.addf %153, %154 : vector<16x1xf32>
    %cst_76 = arith.constant 0.000000e+00 : f32
    %156 = vector.broadcast %cst_76 : f32 to vector<16x1xf32>
    %157 = arith.maximumf %155, %156 : vector<16x1xf32>
    %c0_77 = arith.constant 0 : index
    %c0_78 = arith.constant 0 : index
    %158 = vector.load %arg11[%c0_77, %c0_78] : memref<8x16xf32, #tpu.memory_space<vmem>>, vector<8x16xf32>
    %cst_79 = arith.constant dense<0.000000e+00> : vector<8x1xf32>
    %159 = tpu.matmul %158, %157, %cst_79 {dimension_numbers = #tpu.dot_dimension_numbers<[1], [0], [0], [1], [0, 0, 1, 1], [], []>} : vector<8x16xf32>, vector<16x1xf32>, vector<8x1xf32> -> vector<8x1xf32>
    %c0_80 = arith.constant 0 : index
    %c0_81 = arith.constant 0 : index
    %160 = vector.load %arg12[%c0_80, %c0_81] : memref<8x1xf32, #tpu.memory_space<vmem>>, vector<8x1xf32>
    %161 = arith.addf %159, %160 : vector<8x1xf32>
    %162 = math.exp %161 : vector<8x1xf32>
    %c0_82 = arith.constant 0 : index
    %c0_83 = arith.constant 0 : index
    %c3 = arith.constant 3 : index
    %163 = vector.load %arg13[%c0_82, %c0_83, %c3] : memref<1x8x4xf32, #tpu.memory_space<vmem>>, vector<1x8x1xf32>
    %164 = vector.shape_cast %163 : vector<1x8x1xf32> to vector<8x1xf32>
    %165 = arith.addf %162, %164 : vector<8x1xf32>
    %cst_84 = arith.constant 1.500000e+00 : f32
    %166 = vector.broadcast %cst_84 : f32 to vector<8x1xf32>
    %167 = arith.mulf %165, %166 : vector<8x1xf32>
    %cst_85 = arith.constant dense<0xFF800000> : vector<1xf32>
    %168 = vector.multi_reduction <maximumf>, %167, %cst_85 [0] : vector<8x1xf32> to vector<1xf32>
    %169 = vector.shape_cast %168 : vector<1xf32> to vector<1x1xf32>
    %170 = vector.broadcast %169 : vector<1x1xf32> to vector<8x1xf32>
    %171 = arith.cmpf oeq, %167, %170 : vector<8x1xf32>
    %cst_86 = arith.constant 8.000000e+00 : f32
    %172 = vector.broadcast %cst_86 : f32 to vector<8x1xf32>
    %173 = arith.select %171, %19, %172 : vector<8x1xi1>, vector<8x1xf32>
    %cst_87 = arith.constant dense<0x7F800000> : vector<1xf32>
    %174 = vector.multi_reduction <minimumf>, %173, %cst_87 [0] : vector<8x1xf32> to vector<1xf32>
    %175 = vector.shape_cast %174 : vector<1xf32> to vector<1x1xf32>
    %176 = vector.broadcast %175 : vector<1x1xf32> to vector<8x1xf32>
    %177 = arith.cmpf oeq, %19, %176 : vector<8x1xf32>
    %178 = arith.extui %177 : vector<8x1xi1> to vector<8x1xi32>
    %179 = arith.sitofp %178 : vector<8x1xi32> to vector<8x1xf32>
    %c3_i32 = arith.constant 3 : i32
    %180 = vector.broadcast %c3_i32 : i32 to vector<8x1024xi32>
    %181 = arith.cmpi eq, %9, %180 : vector<8x1024xi32>
    %182 = arith.extui %181 : vector<8x1024xi1> to vector<8x1024xi32>
    %183 = arith.sitofp %182 : vector<8x1024xi32> to vector<8x1024xf32>
    %184 = vector.broadcast %179 : vector<8x1xf32> to vector<8x1024xf32>
    %185 = arith.mulf %183, %184 : vector<8x1024xf32>
    %186 = arith.addf %144, %185 : vector<8x1024xf32>
    %c17_i32 = arith.constant 17 : i32
    %187 = tpu.dynamic_rotate %0 by %c17_i32 dim 1 : vector<8x1024xf32>, i32 -> vector<8x1024xf32>
    %188 = arith.andi %11, %15 : vector<8x1024xi1>
    %cst_88 = arith.constant 0.000000e+00 : f32
    %189 = vector.broadcast %cst_88 : f32 to vector<8x1024xf32>
    %190 = arith.select %188, %187, %189 : vector<8x1024xi1>, vector<8x1024xf32>
    %c0_89 = arith.constant 0 : index
    %c0_90 = arith.constant 0 : index
    %191 = vector.load %arg15[%c0_89, %c0_90] : memref<72x1024xf32, #tpu.memory_space<vmem>>, vector<8x1024xf32>
    tpu.vector_store %arg15[%c0_89, %c0_90], %190 {strides = array<i32>} : memref<72x1024xf32, #tpu.memory_space<vmem>>, vector<8x1024xf32>,
    %c16_i32 = arith.constant 16 : i32
    %192 = tpu.dynamic_rotate %0 by %c16_i32 dim 1 : vector<8x1024xf32>, i32 -> vector<8x1024xf32>
    %cst_91 = arith.constant 0.000000e+00 : f32
    %193 = vector.broadcast %cst_91 : f32 to vector<8x1024xf32>
    %194 = arith.select %11, %192, %193 : vector<8x1024xi1>, vector<8x1024xf32>
    %c8 = arith.constant 8 : index
    %c0_92 = arith.constant 0 : index
    %195 = vector.load %arg15[%c8, %c0_92] : memref<72x1024xf32, #tpu.memory_space<vmem>>, vector<8x1024xf32>
    tpu.vector_store %arg15[%c8, %c0_92], %194 {strides = array<i32>} : memref<72x1024xf32, #tpu.memory_space<vmem>>, vector<8x1024xf32>,
    %c15_i32_93 = arith.constant 15 : i32
    %196 = tpu.dynamic_rotate %0 by %c15_i32_93 dim 1 : vector<8x1024xf32>, i32 -> vector<8x1024xf32>
    %197 = arith.andi %11, %17 : vector<8x1024xi1>
    %cst_94 = arith.constant 0.000000e+00 : f32
    %198 = vector.broadcast %cst_94 : f32 to vector<8x1024xf32>
    %199 = arith.select %197, %196, %198 : vector<8x1024xi1>, vector<8x1024xf32>
    %c16 = arith.constant 16 : index
    %c0_95 = arith.constant 0 : index
    %200 = vector.load %arg15[%c16, %c0_95] : memref<72x1024xf32, #tpu.memory_space<vmem>>, vector<8x1024xf32>
    tpu.vector_store %arg15[%c16, %c0_95], %199 {strides = array<i32>} : memref<72x1024xf32, #tpu.memory_space<vmem>>, vector<8x1024xf32>,
    %c1_i32_96 = arith.constant 1 : i32
    %201 = tpu.dynamic_rotate %0 by %c1_i32_96 dim 1 : vector<8x1024xf32>, i32 -> vector<8x1024xf32>
    %cst_97 = arith.constant 0.000000e+00 : f32
    %202 = vector.broadcast %cst_97 : f32 to vector<8x1024xf32>
    %203 = arith.select %15, %201, %202 : vector<8x1024xi1>, vector<8x1024xf32>
    %c24 = arith.constant 24 : index
    %c0_98 = arith.constant 0 : index
    %204 = vector.load %arg15[%c24, %c0_98] : memref<72x1024xf32, #tpu.memory_space<vmem>>, vector<8x1024xf32>
    tpu.vector_store %arg15[%c24, %c0_98], %203 {strides = array<i32>} : memref<72x1024xf32, #tpu.memory_space<vmem>>, vector<8x1024xf32>,
    %c32 = arith.constant 32 : index
    %c0_99 = arith.constant 0 : index
    %205 = vector.load %arg15[%c32, %c0_99] : memref<72x1024xf32, #tpu.memory_space<vmem>>, vector<8x1024xf32>
    tpu.vector_store %arg15[%c32, %c0_99], %0 {strides = array<i32>} : memref<72x1024xf32, #tpu.memory_space<vmem>>, vector<8x1024xf32>,
    %c1023_i32 = arith.constant 1023 : i32
    %206 = tpu.dynamic_rotate %0 by %c1023_i32 dim 1 : vector<8x1024xf32>, i32 -> vector<8x1024xf32>
    %cst_100 = arith.constant 0.000000e+00 : f32
    %207 = vector.broadcast %cst_100 : f32 to vector<8x1024xf32>
    %208 = arith.select %17, %206, %207 : vector<8x1024xi1>, vector<8x1024xf32>
    %c40 = arith.constant 40 : index
    %c0_101 = arith.constant 0 : index
    %209 = vector.load %arg15[%c40, %c0_101] : memref<72x1024xf32, #tpu.memory_space<vmem>>, vector<8x1024xf32>
    tpu.vector_store %arg15[%c40, %c0_101], %208 {strides = array<i32>} : memref<72x1024xf32, #tpu.memory_space<vmem>>, vector<8x1024xf32>,
    %c1009_i32 = arith.constant 1009 : i32
    %210 = tpu.dynamic_rotate %0 by %c1009_i32 dim 1 : vector<8x1024xf32>, i32 -> vector<8x1024xf32>
    %211 = arith.andi %13, %15 : vector<8x1024xi1>
    %cst_102 = arith.constant 0.000000e+00 : f32
    %212 = vector.broadcast %cst_102 : f32 to vector<8x1024xf32>
    %213 = arith.select %211, %210, %212 : vector<8x1024xi1>, vector<8x1024xf32>
    %c48 = arith.constant 48 : index
    %c0_103 = arith.constant 0 : index
    %214 = vector.load %arg15[%c48, %c0_103] : memref<72x1024xf32, #tpu.memory_space<vmem>>, vector<8x1024xf32>
    tpu.vector_store %arg15[%c48, %c0_103], %213 {strides = array<i32>} : memref<72x1024xf32, #tpu.memory_space<vmem>>, vector<8x1024xf32>,
    %c1008_i32 = arith.constant 1008 : i32
    %215 = tpu.dynamic_rotate %0 by %c1008_i32 dim 1 : vector<8x1024xf32>, i32 -> vector<8x1024xf32>
    %cst_104 = arith.constant 0.000000e+00 : f32
    %216 = vector.broadcast %cst_104 : f32 to vector<8x1024xf32>
    %217 = arith.select %13, %215, %216 : vector<8x1024xi1>, vector<8x1024xf32>
    %c56 = arith.constant 56 : index
    %c0_105 = arith.constant 0 : index
    %218 = vector.load %arg15[%c56, %c0_105] : memref<72x1024xf32, #tpu.memory_space<vmem>>, vector<8x1024xf32>
    tpu.vector_store %arg15[%c56, %c0_105], %217 {strides = array<i32>} : memref<72x1024xf32, #tpu.memory_space<vmem>>, vector<8x1024xf32>,
    %c1007_i32 = arith.constant 1007 : i32
    %219 = tpu.dynamic_rotate %0 by %c1007_i32 dim 1 : vector<8x1024xf32>, i32 -> vector<8x1024xf32>
    %220 = arith.andi %13, %17 : vector<8x1024xi1>
    %cst_106 = arith.constant 0.000000e+00 : f32
    %221 = vector.broadcast %cst_106 : f32 to vector<8x1024xf32>
    %222 = arith.select %220, %219, %221 : vector<8x1024xi1>, vector<8x1024xf32>
    %c64 = arith.constant 64 : index
    %c0_107 = arith.constant 0 : index
    %223 = vector.load %arg15[%c64, %c0_107] : memref<72x1024xf32, #tpu.memory_space<vmem>>, vector<8x1024xf32>
    tpu.vector_store %arg15[%c64, %c0_107], %222 {strides = array<i32>} : memref<72x1024xf32, #tpu.memory_space<vmem>>, vector<8x1024xf32>,
    %c0_108 = arith.constant 0 : index
    %c0_109 = arith.constant 0 : index
    %224 = vector.load %arg2[%c0_108, %c0_109] : memref<8x72xf32, #tpu.memory_space<vmem>>, vector<8x72xf32>
    %c0_110 = arith.constant 0 : index
    %c0_111 = arith.constant 0 : index
    %225 = vector.load %arg15[%c0_110, %c0_111] : memref<72x1024xf32, #tpu.memory_space<vmem>>, vector<72x1024xf32>
    %cst_112 = arith.constant dense<0.000000e+00> : vector<8x1024xf32>
    %226 = tpu.matmul %224, %225, %cst_112 {dimension_numbers = #tpu.dot_dimension_numbers<[1], [0], [0], [1], [0, 0, 1, 1], [], []>} : vector<8x72xf32>, vector<72x1024xf32>, vector<8x1024xf32> -> vector<8x1024xf32>
    %c0_113 = arith.constant 0 : index
    %c0_114 = arith.constant 0 : index
    %227 = vector.load %arg3[%c0_113, %c0_114] : memref<8x1xf32, #tpu.memory_space<vmem>>, vector<8x1xf32>
    %228 = vector.broadcast %227 : vector<8x1xf32> to vector<8x1024xf32>
    %229 = arith.mulf %226, %228 : vector<8x1024xf32>
    %c0_115 = arith.constant 0 : index
    %c0_116 = arith.constant 0 : index
    %230 = vector.load %arg4[%c0_115, %c0_116] : memref<8x1xf32, #tpu.memory_space<vmem>>, vector<8x1xf32>
    %231 = vector.broadcast %230 : vector<8x1xf32> to vector<8x1024xf32>
    %232 = arith.addf %229, %231 : vector<8x1024xf32>
    %cst_117 = arith.constant 0.000000e+00 : f32
    %233 = vector.broadcast %cst_117 : f32 to vector<8x1024xf32>
    %234 = arith.maximumf %232, %233 : vector<8x1024xf32>
    %235 = arith.mulf %234, %186 : vector<8x1024xf32>
    %c17_i32_118 = arith.constant 17 : i32
    %236 = tpu.dynamic_rotate %235 by %c17_i32_118 dim 1 : vector<8x1024xf32>, i32 -> vector<8x1024xf32>
    %237 = arith.andi %11, %15 : vector<8x1024xi1>
    %cst_119 = arith.constant 0.000000e+00 : f32
    %238 = vector.broadcast %cst_119 : f32 to vector<8x1024xf32>
    %239 = arith.select %237, %236, %238 : vector<8x1024xi1>, vector<8x1024xf32>
    %c0_120 = arith.constant 0 : index
    %c0_121 = arith.constant 0 : index
    %240 = vector.load %arg15[%c0_120, %c0_121] : memref<72x1024xf32, #tpu.memory_space<vmem>>, vector<8x1024xf32>
    tpu.vector_store %arg15[%c0_120, %c0_121], %239 {strides = array<i32>} : memref<72x1024xf32, #tpu.memory_space<vmem>>, vector<8x1024xf32>,
    %c16_i32_122 = arith.constant 16 : i32
    %241 = tpu.dynamic_rotate %235 by %c16_i32_122 dim 1 : vector<8x1024xf32>, i32 -> vector<8x1024xf32>
    %cst_123 = arith.constant 0.000000e+00 : f32
    %242 = vector.broadcast %cst_123 : f32 to vector<8x1024xf32>
    %243 = arith.select %11, %241, %242 : vector<8x1024xi1>, vector<8x1024xf32>
    %c8_124 = arith.constant 8 : index
    %c0_125 = arith.constant 0 : index
    %244 = vector.load %arg15[%c8_124, %c0_125] : memref<72x1024xf32, #tpu.memory_space<vmem>>, vector<8x1024xf32>
    tpu.vector_store %arg15[%c8_124, %c0_125], %243 {strides = array<i32>} : memref<72x1024xf32, #tpu.memory_space<vmem>>, vector<8x1024xf32>,
    %c15_i32_126 = arith.constant 15 : i32
    %245 = tpu.dynamic_rotate %235 by %c15_i32_126 dim 1 : vector<8x1024xf32>, i32 -> vector<8x1024xf32>
    %246 = arith.andi %11, %17 : vector<8x1024xi1>
    %cst_127 = arith.constant 0.000000e+00 : f32
    %247 = vector.broadcast %cst_127 : f32 to vector<8x1024xf32>
    %248 = arith.select %246, %245, %247 : vector<8x1024xi1>, vector<8x1024xf32>
    %c16_128 = arith.constant 16 : index
    %c0_129 = arith.constant 0 : index
    %249 = vector.load %arg15[%c16_128, %c0_129] : memref<72x1024xf32, #tpu.memory_space<vmem>>, vector<8x1024xf32>
    tpu.vector_store %arg15[%c16_128, %c0_129], %248 {strides = array<i32>} : memref<72x1024xf32, #tpu.memory_space<vmem>>, vector<8x1024xf32>,
    %c1_i32_130 = arith.constant 1 : i32
    %250 = tpu.dynamic_rotate %235 by %c1_i32_130 dim 1 : vector<8x1024xf32>, i32 -> vector<8x1024xf32>
    %cst_131 = arith.constant 0.000000e+00 : f32
    %251 = vector.broadcast %cst_131 : f32 to vector<8x1024xf32>
    %252 = arith.select %15, %250, %251 : vector<8x1024xi1>, vector<8x1024xf32>
    %c24_132 = arith.constant 24 : index
    %c0_133 = arith.constant 0 : index
    %253 = vector.load %arg15[%c24_132, %c0_133] : memref<72x1024xf32, #tpu.memory_space<vmem>>, vector<8x1024xf32>
    tpu.vector_store %arg15[%c24_132, %c0_133], %252 {strides = array<i32>} : memref<72x1024xf32, #tpu.memory_space<vmem>>, vector<8x1024xf32>,
    %c32_134 = arith.constant 32 : index
    %c0_135 = arith.constant 0 : index
    %254 = vector.load %arg15[%c32_134, %c0_135] : memref<72x1024xf32, #tpu.memory_space<vmem>>, vector<8x1024xf32>
    tpu.vector_store %arg15[%c32_134, %c0_135], %235 {strides = array<i32>} : memref<72x1024xf32, #tpu.memory_space<vmem>>, vector<8x1024xf32>,
    %c1023_i32_136 = arith.constant 1023 : i32
    %255 = tpu.dynamic_rotate %235 by %c1023_i32_136 dim 1 : vector<8x1024xf32>, i32 -> vector<8x1024xf32>
    %cst_137 = arith.constant 0.000000e+00 : f32
    %256 = vector.broadcast %cst_137 : f32 to vector<8x1024xf32>
    %257 = arith.select %17, %255, %256 : vector<8x1024xi1>, vector<8x1024xf32>
    %c40_138 = arith.constant 40 : index
    %c0_139 = arith.constant 0 : index
    %258 = vector.load %arg15[%c40_138, %c0_139] : memref<72x1024xf32, #tpu.memory_space<vmem>>, vector<8x1024xf32>
    tpu.vector_store %arg15[%c40_138, %c0_139], %257 {strides = array<i32>} : memref<72x1024xf32, #tpu.memory_space<vmem>>, vector<8x1024xf32>,
    %c1009_i32_140 = arith.constant 1009 : i32
    %259 = tpu.dynamic_rotate %235 by %c1009_i32_140 dim 1 : vector<8x1024xf32>, i32 -> vector<8x1024xf32>
    %260 = arith.andi %13, %15 : vector<8x1024xi1>
    %cst_141 = arith.constant 0.000000e+00 : f32
    %261 = vector.broadcast %cst_141 : f32 to vector<8x1024xf32>
    %262 = arith.select %260, %259, %261 : vector<8x1024xi1>, vector<8x1024xf32>
    %c48_142 = arith.constant 48 : index
    %c0_143 = arith.constant 0 : index
    %263 = vector.load %arg15[%c48_142, %c0_143] : memref<72x1024xf32, #tpu.memory_space<vmem>>, vector<8x1024xf32>
    tpu.vector_store %arg15[%c48_142, %c0_143], %262 {strides = array<i32>} : memref<72x1024xf32, #tpu.memory_space<vmem>>, vector<8x1024xf32>,
    %c1008_i32_144 = arith.constant 1008 : i32
    %264 = tpu.dynamic_rotate %235 by %c1008_i32_144 dim 1 : vector<8x1024xf32>, i32 -> vector<8x1024xf32>
    %cst_145 = arith.constant 0.000000e+00 : f32
    %265 = vector.broadcast %cst_145 : f32 to vector<8x1024xf32>
    %266 = arith.select %13, %264, %265 : vector<8x1024xi1>, vector<8x1024xf32>
    %c56_146 = arith.constant 56 : index
    %c0_147 = arith.constant 0 : index
    %267 = vector.load %arg15[%c56_146, %c0_147] : memref<72x1024xf32, #tpu.memory_space<vmem>>, vector<8x1024xf32>
    tpu.vector_store %arg15[%c56_146, %c0_147], %266 {strides = array<i32>} : memref<72x1024xf32, #tpu.memory_space<vmem>>, vector<8x1024xf32>,
    %c1007_i32_148 = arith.constant 1007 : i32
    %268 = tpu.dynamic_rotate %235 by %c1007_i32_148 dim 1 : vector<8x1024xf32>, i32 -> vector<8x1024xf32>
    %269 = arith.andi %13, %17 : vector<8x1024xi1>
    %cst_149 = arith.constant 0.000000e+00 : f32
    %270 = vector.broadcast %cst_149 : f32 to vector<8x1024xf32>
    %271 = arith.select %269, %268, %270 : vector<8x1024xi1>, vector<8x1024xf32>
    %c64_150 = arith.constant 64 : index
    %c0_151 = arith.constant 0 : index
    %272 = vector.load %arg15[%c64_150, %c0_151] : memref<72x1024xf32, #tpu.memory_space<vmem>>, vector<8x1024xf32>
    tpu.vector_store %arg15[%c64_150, %c0_151], %271 {strides = array<i32>} : memref<72x1024xf32, #tpu.memory_space<vmem>>, vector<8x1024xf32>,
    %c0_152 = arith.constant 0 : index
    %c0_153 = arith.constant 0 : index
    %273 = vector.load %arg5[%c0_152, %c0_153] : memref<8x72xf32, #tpu.memory_space<vmem>>, vector<8x72xf32>
    %c0_154 = arith.constant 0 : index
    %c0_155 = arith.constant 0 : index
    %274 = vector.load %arg15[%c0_154, %c0_155] : memref<72x1024xf32, #tpu.memory_space<vmem>>, vector<72x1024xf32>
    %cst_156 = arith.constant dense<0.000000e+00> : vector<8x1024xf32>
    %275 = tpu.matmul %273, %274, %cst_156 {dimension_numbers = #tpu.dot_dimension_numbers<[1], [0], [0], [1], [0, 0, 1, 1], [], []>} : vector<8x72xf32>, vector<72x1024xf32>, vector<8x1024xf32> -> vector<8x1024xf32>
    %c0_157 = arith.constant 0 : index
    %c0_158 = arith.constant 0 : index
    %276 = vector.load %arg6[%c0_157, %c0_158] : memref<8x1xf32, #tpu.memory_space<vmem>>, vector<8x1xf32>
    %277 = vector.broadcast %276 : vector<8x1xf32> to vector<8x1024xf32>
    %278 = arith.mulf %275, %277 : vector<8x1024xf32>
    %c0_159 = arith.constant 0 : index
    %c0_160 = arith.constant 0 : index
    %279 = vector.load %arg7[%c0_159, %c0_160] : memref<8x1xf32, #tpu.memory_space<vmem>>, vector<8x1xf32>
    %280 = vector.broadcast %279 : vector<8x1xf32> to vector<8x1024xf32>
    %281 = arith.addf %278, %280 : vector<8x1024xf32>
    %282 = arith.addf %281, %0 : vector<8x1024xf32>
    %cst_161 = arith.constant 0.000000e+00 : f32
    %283 = vector.broadcast %cst_161 : f32 to vector<8x1024xf32>
    %284 = arith.maximumf %282, %283 : vector<8x1024xf32>
    %c0_162 = arith.constant 0 : index
    %c0_163 = arith.constant 0 : index
    %285 = vector.load %arg14[%c0_162, %c0_163] : memref<8x1024xf32, #tpu.memory_space<vmem>>, vector<8x1024xf32>
    tpu.vector_store %arg14[%c0_162, %c0_163], %284 {strides = array<i32>} : memref<8x1024xf32, #tpu.memory_space<vmem>>, vector<8x1024xf32>,
    return
  }
  func.func @transform_0(%arg0: i32) -> (i32, i32) {
    %c0_i32 = arith.constant 0 : i32
    %c0_i32_0 = arith.constant 0 : i32
    return %c0_i32, %arg0 : i32, i32
  }
  func.func @transform_1(%arg0: i32) -> (i32, i32) {
    %c0_i32 = arith.constant 0 : i32
    %c0_i32_0 = arith.constant 0 : i32
    %c0_i32_1 = arith.constant 0 : i32
    return %c0_i32, %c0_i32_0 : i32, i32
  }
  func.func @transform_2(%arg0: i32) -> (i32, i32) {
    %c0_i32 = arith.constant 0 : i32
    %c0_i32_0 = arith.constant 0 : i32
    %c0_i32_1 = arith.constant 0 : i32
    return %c0_i32, %c0_i32_0 : i32, i32
  }
  func.func @transform_3(%arg0: i32) -> (i32, i32) {
    %c0_i32 = arith.constant 0 : i32
    %c0_i32_0 = arith.constant 0 : i32
    %c0_i32_1 = arith.constant 0 : i32
    return %c0_i32, %c0_i32_0 : i32, i32
  }
  func.func @transform_4(%arg0: i32) -> (i32, i32) {
    %c0_i32 = arith.constant 0 : i32
    %c0_i32_0 = arith.constant 0 : i32
    %c0_i32_1 = arith.constant 0 : i32
    return %c0_i32, %c0_i32_0 : i32, i32
  }
  func.func @transform_5(%arg0: i32) -> (i32, i32) {
    %c0_i32 = arith.constant 0 : i32
    %c0_i32_0 = arith.constant 0 : i32
    %c0_i32_1 = arith.constant 0 : i32
    return %c0_i32, %c0_i32_0 : i32, i32
  }
  func.func @transform_6(%arg0: i32) -> (i32, i32) {
    %c0_i32 = arith.constant 0 : i32
    %c0_i32_0 = arith.constant 0 : i32
    %c0_i32_1 = arith.constant 0 : i32
    return %c0_i32, %c0_i32_0 : i32, i32
  }
  func.func @transform_7(%arg0: i32) -> (i32, i32) {
    %c0_i32 = arith.constant 0 : i32
    %c0_i32_0 = arith.constant 0 : i32
    %c0_i32_1 = arith.constant 0 : i32
    return %c0_i32, %c0_i32_0 : i32, i32
  }
  func.func @transform_8(%arg0: i32) -> (i32, i32) {
    %c0_i32 = arith.constant 0 : i32
    %c0_i32_0 = arith.constant 0 : i32
    %c0_i32_1 = arith.constant 0 : i32
    return %c0_i32, %c0_i32_0 : i32, i32
  }
  func.func @transform_9(%arg0: i32) -> (i32, i32) {
    %c0_i32 = arith.constant 0 : i32
    %c0_i32_0 = arith.constant 0 : i32
    %c0_i32_1 = arith.constant 0 : i32
    return %c0_i32, %c0_i32_0 : i32, i32
  }
  func.func @transform_10(%arg0: i32) -> (i32, i32) {
    %c0_i32 = arith.constant 0 : i32
    %c0_i32_0 = arith.constant 0 : i32
    %c0_i32_1 = arith.constant 0 : i32
    return %c0_i32, %c0_i32_0 : i32, i32
  }
  func.func @transform_11(%arg0: i32) -> (i32, i32) {
    %c0_i32 = arith.constant 0 : i32
    %c0_i32_0 = arith.constant 0 : i32
    %c0_i32_1 = arith.constant 0 : i32
    return %c0_i32, %c0_i32_0 : i32, i32
  }
  func.func @transform_12(%arg0: i32) -> (i32, i32, i32) {
    %c0_i32 = arith.constant 0 : i32
    %c0_i32_0 = arith.constant 0 : i32
    %c0_i32_1 = arith.constant 0 : i32
    return %arg0, %c0_i32, %c0_i32_0 : i32, i32, i32
  }
  func.func @transform_13(%arg0: i32) -> (i32, i32) {
    %c0_i32 = arith.constant 0 : i32
    %c0_i32_0 = arith.constant 0 : i32
    return %c0_i32, %arg0 : i32, i32
  }
}

</mosaic_0001>

<bundles_post_ra>
// kernel: basic_block_forward.1
= control target key start
LH: loop header
LB: loop body
LE: loop exit
PB: predicated region body
PF: predicated region fallthrough
CT: control target
= control target key end

     0   :  { %vm134_vm0 = vcmask 64512   ;;  %s3310_s26 = smov 16   ;;  %s3311_s27 = smov 17   ;;  %v5394_v29 = vmov 0.0|0.0   ;;  %vm5383_vm1 = vmmov 0   ;;  %v5397_v30 = vmov 0.0   ;;  %s5368_s0 = inlined_call_operand.vmem [shape: f32[8,1024], index: 0, kind: input, shape index: {}]   ;;  %s5369_s7 = inlined_call_operand.vmem [shape: f32[16,8], index: 7, kind: input, shape index: {}]   ;;  %s5370_s12 = inlined_call_operand.vmem [shape: f32[1,8,4], index: 12, kind: input, shape index: {}]   ;;  %s5371_s8 = inlined_call_operand.vmem [shape: f32[16,1], index: 8, kind: input, shape index: {}]   ;;  %s5372_s9 = inlined_call_operand.vmem [shape: f32[16,1], index: 9, kind: input, shape index: {}]   ;;  %s5373_s1 = inlined_call_operand.vmem [shape: f32[8,72], index: 1, kind: input, shape index: {}]   ;;  %s5374_s10 = inlined_call_operand.vmem [shape: f32[8,16], index: 10, kind: input, shape index: {}]   ;;  %s5375_s11 = inlined_call_operand.vmem [shape: f32[8,1], index: 11, kind: input, shape index: {}]   ;;  %s5376_s3 = inlined_call_operand.vmem [shape: f32[8,1], index: 3, kind: input, shape index: {}]   ;;  %s5377_s2 = inlined_call_operand.vmem [shape: f32[8,1], index: 2, kind: input, shape index: {}]   ;;  %s5378_s6 = inlined_call_operand.vmem [shape: f32[8,1], index: 6, kind: input, shape index: {}]   ;;  %s5379_s5 = inlined_call_operand.vmem [shape: f32[8,1], index: 5, kind: input, shape index: {}]   ;;  %s5380_s4 = inlined_call_operand.vmem [shape: f32[8,72], index: 4, kind: input, shape index: {}]   ;;  %s5381_s13 = inlined_call_operand.vmem [shape: f32[8,1024], index: 13, kind: output, shape index: {}]  }
   0x1   :  { %v3398_v0 = vld [vmem:[%s5368_s0] sm:$0xff]  ;;  %v3403_v1 = vld [vmem:[%s5368_s0 + $0x8] sm:$0xff]  ;;  %v3408_v2 = vld [vmem:[%s5368_s0 + $0x10] sm:$0xff]  ;;  %s3312_s28 = smov 15   ;;  %s3313_s29 = smov 1   ;;  %2816 = vmatprep.subr.bf16.mxu1 %v5394_v29  ;;  %2777 = vmatprep.mubr.msk.f32.mxu1 %vm5383_vm1, %v5397_v30  ;;  %v5382_v31 = vlaneseq  ;;  %v5563_v29 = vmov 0 }
   0x2   :  { %v128_v3 = vadd.f32 %v3403_v1, %v3398_v0  ;;  %v3415_v4 = vld [vmem:[%s5368_s0 + $0x18] sm:$0xff]  ;;  %v3420_v5 = vld [vmem:[%s5368_s0 + $0x20] sm:$0xff]  ;;  %v3425_v6 = vld [vmem:[%s5368_s0 + $0x28] sm:$0xff]  ;;  %v3045_v14 = vpack.i.bf16 %v3398_v0, %v3403_v1  ;;  %s3314_s30 = smov 127   ;;  %s3315_s14 = smov 113   ;;  %v3090_v17 = vpack.i.bf16 %v3403_v1, %v3408_v2 }
   0x3   :  { %v591_v7 = vadd.f32 %v3425_v6, %v3420_v5  ;;  %v3432_v8 = vld [vmem:[%s5368_s0 + $0x30] sm:$0xff]  ;;  %v3437_v9 = vld [vmem:[%s5368_s0 + $0x38] sm:$0xff]  ;;  %v364_v10 = vadd.f32 %v3415_v4, %v3408_v2  ;;  %v132_v12 = vld [vmem:[%s5369_s7] sm:$0xff]  ;;  %v3040_v13 = vpack.i.bf16 %v3415_v4, %v3408_v2  ;;  %v3075_v15 = vpack.i.bf16 %v3420_v5, %v3415_v4  ;;  %s3316_s15 = smov 112   ;;  %s3321_s20 = smov 126  }
   0x4   :  { %129 = vadd.xlane.f32.xlu0 %v128_v3  ;;  %v817_v11 = vadd.f32 %v3437_v9, %v3432_v8  ;;  %2770 = vmatprep.mubr.msk.f32.mxu0 %vm134_vm0, %v132_v12  ;;  %v3463_v16 = vpack.i.bf16 %v3432_v8, %v3437_v9  ;;  %v3125_v18 = vpack.i.bf16 %v3437_v9, %v3398_v0  ;;  %v133_v22 = vld [vmem:[%s5369_s7 + $0x8] sm:$0xff]  ;;  %s3317_s7 = smov 111   ;;  %v3530_v38 = vand.u32 127, %v5382_v31 }
   0x5   :  { %592 = vadd.xlane.f32.xlu1 %v591_v7  ;;  %v3135_v28 = vpack.i.bf16 %v3420_v5, %v3425_v6  ;;  %v5534_v7 = vmov 0 }
   0x6   :  { %vm5388_vm2 = vcmp.lt.s32.totalorder %v3530_v38, 16  ;;  %vm5385_vm3 = vcmp.lt.s32.totalorder %v3530_v38, 17  ;;  %v3568_v50 = vadd.s32 128, %v3530_v38  ;;  %vm5403_vm4 = vcmp.lt.s32.totalorder %v3530_v38, 15 }
   0x7   :  { %vm5389_vm6 = vcmp.lt.s32.totalorder %v3530_v38, 1  ;;  %vm5411_vm1 = vcmp.lt.s32.totalorder %v3530_v38, 113 }
   0x8   :  { %365 = vadd.xlane.f32.xlu0 %v364_v10  ;;  %5533 = vst [vmem:[#allocation3_spill] sm:$0xff] %v3568_v50  ;;  %v62_v56 = vand.u32 15, %v3568_v50  ;;  %v70_v57 = vand.u32 255, %v3568_v50 }
   0x9   :  { %818 = vadd.xlane.f32.xlu1 %v817_v11 }
   0xa   :  { %v3599_v3 = vshra.s32 %v70_v57, 4  ;;  %vm3601_vm5 = vcmp.ge.s32.totalorder %v62_v56, 1  ;;  %vm3660_vm11 = vcmp.le.s32.totalorder %v62_v56, 14 }
   0xb   :  { %v5535_v7 = vsel %vm3601_vm5, 4294967295, %v5534_v7 }
   0xc   :  { %5536 = vst [vmem:[#allocation4_spill] sm:$0xff] %v5535_v7  ;;  %vm94_vm7 = vcmp.ge.s32.totalorder %v3599_v3, 1  ;;  %v4001_v7 = vadd.s32 256, %v3530_v38 }
   0xd   :  { %vm1069_vm8 = vmand %vm94_vm7, %vm3601_vm5 }
   0xe   :  { %vm3644_vm9 = vmpackc.low %vm94_vm7, %vm1069_vm8  ;;  %vm5408_vm8 = vcmp.lt.s32.totalorder %v3530_v38, 127  ;;  %5613 = vst [vmem:[#allocation32_spill] sm:$0xff] %v4001_v7 }
   0xf   :  { %vm3695_vm13 = vmand %vm94_vm7, %vm3660_vm11 }
  0x1a   :  { %3041 = vrot.lane.b32.xlu1 %v3040_v13, %s3310_s26 }
  0x1e   :  { %3036 = vrot.lane.b32.xlu0 %v3040_v13, %s3311_s27  ;;  %3046 = vrot.lane.b32.xlu1 %v3045_v14, %s3311_s27 }
  0x22   :  { %3056 = vrot.lane.b32.xlu0 %v3040_v13, %s3312_s28  ;;  %3051 = vrot.lane.b32.xlu1 %v3045_v14, %s3310_s26 }
  0x26   :  { %3066 = vrot.lane.b32.xlu0 %v3045_v14, %s3312_s28  ;;  %3061 = vrot.lane.b32.xlu1 %v3040_v13, %s3313_s29 }
  0x2a   :  { %3076 = vrot.lane.b32.xlu0 %v3075_v15, %s3314_s30  ;;  %3071 = vrot.lane.b32.xlu1 %v3045_v14, %s3313_s29  ;;  %v61_v14 = vand.u32 15, %v3530_v38 }
  0x2c   :  { %vm3656_vm10 = vcmp.ge.s32.totalorder %v61_v14, 1  ;;  %vm3733_vm7 = vcmp.le.s32.totalorder %v61_v14, 14 }
  0x2e   :  { %3086 = vrot.lane.b32.xlu0 %v3463_v16, %s3310_s26  ;;  %3081 = vrot.lane.b32.xlu1 %v3463_v16, %s3311_s27 }
  0x32   :  { %3096 = vrot.lane.b32.xlu0 %v3075_v15, %s3315_s14  ;;  %3091 = vrot.lane.b32.xlu1 %v3090_v17, %s3314_s30 }
  0x36   :  { %3106 = vrot.lane.b32.xlu0 %v3463_v16, %s3312_s28  ;;  %3101 = vrot.lane.b32.xlu1 %v3075_v15, %s3316_s15  ;;  %v69_v15 = vand.u32 255, %v3530_v38 }
  0x3a   :  { %3116 = vrot.lane.b32.xlu0 %v3090_v17, %s3315_s14  ;;  %3111 = vrot.lane.b32.xlu1 %v3463_v16, %s3313_s29 }
  0x3e   :  { %3126 = vrot.lane.b32.xlu0 %v3125_v18, %s3314_s30  ;;  %3121 = vrot.lane.b32.xlu1 %v3090_v17, %s3316_s15 }
  0x42   :  { %1370 = vrot.lane.b32.xlu0 %v3420_v5, %s3317_s7  ;;  %1368 = vrot.lane.b32.xlu1 %v3415_v4, %s3317_s7 }
  0x46   :  { %3136 = vrot.lane.b32.xlu0 %v3135_v28, %s3310_s26  ;;  %3131 = vrot.lane.b32.xlu1 %v3135_v28, %s3311_s27 }
  0x4a   :  { %3141 = vrot.lane.b32.xlu0 %v3125_v18, %s3315_s14  ;;  %1366 = vrot.lane.b32.xlu1 %v3408_v2, %s3317_s7  ;;  %v5557_v18 = vmov 0 }
  0x4e   :  { %3146 = vrot.lane.b32.xlu0 %v3135_v28, %s3312_s28  ;;  %1321 = vrot.lane.b32.xlu1 %v3398_v0, %s3316_s15 }
  0x52   :  { %1364 = vrot.lane.b32.xlu0 %v3403_v1, %s3317_s7  ;;  %3151 = vrot.lane.b32.xlu1 %v3135_v28, %s3313_s29 }
  0x56   :  { %1362 = vrot.lane.b32.xlu0 %v3398_v0, %s3317_s7  ;;  %1243 = vrot.lane.b32.xlu1 %v3432_v8, %s3314_s30 }
  0x5a   :  { %1284 = vrot.lane.b32.xlu0 %v3432_v8, %s3315_s14  ;;  %3156 = vrot.lane.b32.xlu1 %v3463_v16, %s3316_s15 }
  0x5e   :  { %1376 = vrot.lane.b32.xlu0 %v3437_v9, %s3317_s7  ;;  %1241 = vrot.lane.b32.xlu1 %v3425_v6, %s3314_s30  ;;  %v3608_v9 = vld [vmem:[%s5370_s12] sm:$0xff]  ;;  %s3322_s12 = smov 125  }
  0x5f   :  { %5537 = vst [vmem:[#allocation5_spill] sm:$0xff] %v3608_v9 }
  0x62   :  { %1282 = vrot.lane.b32.xlu0 %v3425_v6, %s3315_s14  ;;  %1374 = vrot.lane.b32.xlu1 %v3432_v8, %s3317_s7 }
  0x66   :  { %1372 = vrot.lane.b32.xlu0 %v3425_v6, %s3317_s7  ;;  %1331 = vrot.lane.b32.xlu1 %v3425_v6, %s3316_s15 }
  0x6a   :  { %748 = vrot.lane.b32.xlu0 %v3608_v9, %s3321_s20  ;;  %522 = vrot.lane.b32.xlu1 %v3608_v9, %s3314_s30 }
  0x6e   :  { %974 = vrot.lane.b32.xlu1 %v3608_v9, %s3322_s12 }
  0x91   :  { %v130_v19 = vpop.xlane.xlu0 %129 }
  0x92   :  { %v131_v20 = vmul.f32 0.00390625, %v130_v19  ;;  %v593_v21 = vpop.xlane.xlu1 %592 }
  0x93   :  { %v594_v25 = vmul.f32 0.00390625, %v593_v21  ;;  %v5538_v21 = vmov 0 }
  0x94   :  { %2768 = vmatprep.subr.mxu0 %v131_v20  ;;  %v5539_v21 = vsel %vm3644_vm9, 4294967295, %v5538_v21 }
  0x95   :  { %2769 = vmatpush3.msra.mxu0 %v131_v20  ;;  %v366_v23 = vpop.xlane.xlu0 %365  ;;  %5540 = vst [vmem:[#allocation6_spill] sm:$0xff] %v5539_v21 }
  0x96   :  { %v367_v24 = vmul.f32 0.00390625, %v366_v23  ;;  %2771 = vmatmul.mubr.msk.f32.vlgmr.msra.gmra.mrb[0].mxu0 %vm134_vm0, %v133_v22  ;;  %v819_v26 = vpop.xlane.xlu1 %818 }
  0x97   :  { %2782 = vmatprep.mubr.msk.f32.mxu0 %vm134_vm0, %v132_v12  ;;  %v820_v27 = vmul.f32 0.00390625, %v819_v26  ;;  %v5541_v26 = vmov 0 }
  0x98   :  { %2780 = vmatprep.subr.mxu0 %v367_v24  ;;  %v5542_v26 = vsel %vm3656_vm10, 4294967295, %v5541_v26 }
  0x99   :  { %2781 = vmatpush3.msra.mxu0 %v367_v24  ;;  %v3521_v33 = vpop.permute.xlu0 %3036  ;;  %5543 = vst [vmem:[#allocation7_spill] sm:$0xff] %v5542_v26 }
  0x9a   :  { %2783 = vmatmul.mubr.msk.f32.vlgmr.msra.gmra.mrb[2].mxu0 %vm134_vm0, %v133_v22  ;;  %2792 = vmatprep.subr.mxu0 %v594_v25  ;;  %v3519_v32 = vpop.permute.xlu1 %3041  ;;  %v5401_v36 = vunpack.i.h.bf16 %v3521_v33  ;;  %v3038_v37 = vunpack.i.l.bf16 %v3521_v33 }
  0x9b   :  { %2793 = vmatpush3.msra.mxu0 %v594_v25  ;;  %2794 = vmatprep.mubr.msk.f32.mxu0 %vm134_vm0, %v132_v12  ;;  %v5404_v34 = vunpack.i.h.bf16 %v3519_v32  ;;  %v3043_v35 = vunpack.i.l.bf16 %v3519_v32  ;;  %v3654_v25 = vshra.s32 %v69_v15, 4  ;;  %v5551_v15 = vmov 0 }
  0x9c   :  { %2804 = vmatprep.subr.mxu0 %v820_v27  ;;  %v3552_v42 = vsel %vm5385_vm3, %v3038_v37, %v5401_v36  ;;  %v5567_v36 = vmov 0 }
  0x9d   :  { %v3538_v40 = vpop.permute.xlu0 %3056  ;;  %v3546_v41 = vsel %vm5388_vm2, %v3043_v35, %v5404_v34  ;;  %vm93_vm12 = vcmp.ge.s32.totalorder %v3654_v25, 1 }
  0x9e   :  { %2795 = vmatmul.mubr.msk.f32.vlgmr.msra.gmra.mrb[4].mxu0 %vm134_vm0, %v133_v22  ;;  %v3536_v39 = vpop.permute.xlu1 %3046  ;;  %v3058_v47 = vunpack.i.l.bf16 %v3538_v40  ;;  %v5392_v51 = vunpack.i.h.bf16 %v3538_v40  ;;  %vm1068_vm14 = vmand %vm93_vm12, %vm3656_vm10 }
  0x9f   :  { %2805 = vmatpush3.msra.mxu0 %v820_v27  ;;  %2806 = vmatprep.mubr.msk.f32.mxu0 %vm134_vm0, %v132_v12  ;;  %v3048_v43 = vunpack.i.l.bf16 %v3536_v39  ;;  %v3049_v45 = vunpack.i.h.bf16 %v3536_v39  ;;  %vm3720_vm15 = vmpackc.low %vm93_vm12, %vm1068_vm14  ;;  %vm101_vm14 = vcmp.le.s32.totalorder %v3654_v25, 14 }
  0xa0   :  { %v3614_v10 = vsel %vm5403_vm4, %v3058_v47, %v5392_v51  ;;  %v5552_v15 = vsel %vm3720_vm15, 4294967295, %v5551_v15 }
  0xa1   :  { %v3560_v46 = vsel %vm5385_vm3, %v3048_v43, %v3038_v37  ;;  %v3565_v49 = vpop.permute.xlu0 %3066  ;;  %v1066_v55 = vsel %vm5385_vm3, %v3049_v45, %v3048_v43  ;;  %5553 = vst [vmem:[#allocation11_spill] sm:$0xff] %v5552_v15 }
  0xa2   :  { %2807 = vmatmul.mubr.msk.f32.vlgmr.msra.gmra.mrb[6].mxu0 %vm134_vm0, %v133_v22  ;;  %v3052_v48 = vpop.permute.xlu1 %3051  ;;  %v3068_v54 = vunpack.i.l.bf16 %v3565_v49  ;;  %v3069_v17 = vunpack.i.h.bf16 %v3565_v49  ;;  %vm5387_vm0 = vmpackc.low %vm3601_vm5, %vm3695_vm13 }
  0xa3   :  { %1552 = vmatprep.mubr.f32.mxu0 %v5397_v30  ;;  %v3054_v52 = vunpack.i.h.bf16 %v3052_v48  ;;  %v3053_v53 = vunpack.i.l.bf16 %v3052_v48 }
  0xa4   :  { %v3589_v60 = vsel %vm5403_vm4, %v3068_v54, %v3058_v47  ;;  %v1156_v37 = vsel %vm5403_vm4, %v3069_v17, %v3068_v54  ;;  %v5547_v54 = vmov 0 }
  0xa5   :  { %v3583_v58 = vsel %vm5388_vm2, %v3053_v53, %v3043_v35  ;;  %v1115_v59 = vsel %vm5388_vm2, %v3054_v52, %v3053_v53  ;;  %v3597_v63 = vpop.permute.xlu0 %3076  ;;  %v5548_v54 = vsel %vm3695_vm13, 4294967295, %v5547_v54  ;;  %vm5582_vm13 = vmmov 1  }
  0xa6   :  { %v3595_v62 = vpop.permute.xlu1 %3061  ;;  %v2828_v11 = vpack.c.bf16 %v1115_v59, %v1066_v55  ;;  %5549 = vst [vmem:[#allocation9_spill] sm:$0xff] %v5548_v54  ;;  %v5386_v59 = vunpack.i.l.bf16 %v3597_v63 }
  0xa7   :  { %v5391_v12 = vunpack.i.h.bf16 %v3595_v62  ;;  %v3063_v13 = vunpack.i.l.bf16 %v3595_v62 }
  0xa8   :  { %2830 = vmatprep.subr.msk.bf16.mxu0 %vm3644_vm9, %v2828_v11 }
  0xa9   :  { %v3627_v16 = vsel %vm5389_vm6, %v3063_v13, %v5391_v12  ;;  %v3640_v20 = vpop.permute.xlu0 %3086 }
  0xaa   :  { %v3638_v19 = vpop.permute.xlu1 %3071  ;;  %v5402_v8 = vunpack.i.h.bf16 %v3640_v20  ;;  %v3088_v24 = vunpack.i.l.bf16 %v3640_v20 }
  0xab   :  { %v3074_v22 = vunpack.i.h.bf16 %v3638_v19  ;;  %v3073_v23 = vunpack.i.l.bf16 %v3638_v19 }
  0xac   :  { %v3672_v35 = vsel %vm5388_vm2, %v5402_v8, %v3088_v24  ;;  %v1116_v55 = vsel %vm5388_vm2, %v3088_v24, %v3054_v52  ;;  %vm5406_vm2 = vcmp.le.s32.totalorder %v3599_v3, 14 }
  0xad   :  { %v3666_v28 = vsel %vm5389_vm6, %v3073_v23, %v3063_v13  ;;  %5546 = vst [vmem:[#allocation8_spill] sm:$0xff] %v3672_v35  ;;  %v1205_v43 = vsel %vm5389_vm6, %v3074_v22, %v3073_v23  ;;  %v3688_v53 = vpop.permute.xlu0 %3096 }
  0xae   :  { %v3686_v48 = vpop.permute.xlu1 %3081  ;;  %v2834_v11 = vpack.c.bf16 %v1205_v43, %v1156_v37  ;;  %v5390_v37 = vunpack.i.h.bf16 %v3688_v53 }
  0xaf   :  { %v5399_v56 = vunpack.i.h.bf16 %v3686_v48  ;;  %v3083_v57 = vunpack.i.l.bf16 %v3686_v48 }
  0xb1   :  { %v3712_v13 = vsel %vm5385_vm3, %v5399_v56, %v3083_v57  ;;  %v1067_v52 = vsel %vm5385_vm3, %v3083_v57, %v3049_v45  ;;  %v3727_v31 = vpop.permute.xlu0 %3106  ;;  %v3098_v45 = vunpack.i.l.bf16 %v3688_v53  ;;  %vm3772_vm3 = vmand %vm93_vm12, %vm3733_vm7 }
  0xb2   :  { %5550 = vst [vmem:[#allocation10_spill] sm:$0xff] %v3712_v13  ;;  %v2831_v23 = vpack.c.bf16 %v1116_v55, %v1067_v52  ;;  %v3092_v43 = vpop.permute.xlu1 %3091  ;;  %v5393_v57 = vunpack.i.h.bf16 %v3727_v31  ;;  %v3108_v52 = vunpack.i.l.bf16 %v3727_v31  ;;  %v5558_v18 = vsel %vm3772_vm3, 4294967295, %v5557_v18  ;;  %vm1297_vm12 = vmand %vm101_vm14, %vm3656_vm10 }
  0xb3   :  { %v3093_v55 = vunpack.i.l.bf16 %v3092_v43  ;;  %v3094_v14 = vunpack.i.h.bf16 %v3092_v43  ;;  %5559 = vst [vmem:[#allocation13_spill] sm:$0xff] %v5558_v18  ;;  %vm3794_vm6 = vmpackc.low %vm101_vm14, %vm1297_vm12  ;;  %v3948_v18 = vadd.s32 384, %v3530_v38 }
  0xb4   :  { %2833 = vmatpush1.bf16.msk.msra.mxu0 %vm3720_vm15, %v2831_v23  ;;  %v3756_v47 = vsel %vm5403_vm4, %v5393_v57, %v3108_v52  ;;  %vm3814_vm12 = vmand %vm5406_vm2, %vm3660_vm11  ;;  %vm5666_vm15 = vcmask 130048  }
  0xb5   :  { %v3750_v24 = vsel %vm5408_vm8, %v3093_v55, %v5386_v59  ;;  %5556 = vst [vmem:[#allocation12_spill] sm:$0xff] %v3756_v47  ;;  %2836 = vmatprep.subr.msk.bf16.mxu0 %vm5387_vm0, %v2834_v11  ;;  %v3766_v43 = vpop.permute.xlu0 %3116  ;;  %v3781_v11 = vsel %vm5411_vm1, %v3098_v45, %v5390_v37  ;;  %vm5400_vm0 = vcmp.lt.s32.totalorder %v3530_v38, 112  ;;  %v5560_v37 = vmov 0  ;;  %5600 = vst [vmem:[#allocation27_spill] sm:$0xff] %v3948_v18  ;;  %v4013_v47 = vld [vmem:[%s5372_s9 + $0x8] sm:$0xff] }
  0xb6   :  { %v3764_v23 = vpop.permute.xlu1 %3101  ;;  %v3118_v44 = vunpack.i.l.bf16 %v3766_v43  ;;  %v5561_v37 = vsel %vm3794_vm6, 4294967295, %v5560_v37  ;;  %v1253_v12 = vsel %vm5408_vm8, %v3094_v14, %v3093_v55  ;;  %v5564_v29 = vsel %vm3814_vm12, 4294967295, %v5563_v29 }
  0xb7   :  { %v5396_v61 = vunpack.i.h.bf16 %v3764_v23  ;;  %v3103_v59 = vunpack.i.l.bf16 %v3764_v23  ;;  %5562 = vst [vmem:[#allocation14_spill] sm:$0xff] %v5561_v37  ;;  %5565 = vst [vmem:[#allocation15_spill] sm:$0xff] %v5564_v29  ;;  %v1157_v55 = vsel %vm5403_vm4, %v3108_v52, %v3069_v17  ;;  %v2840_v8 = vpack.c.bf16 %v1253_v12, %v3403_v1 }
  0xb8   :  { %v3808_v57 = vsel %vm5411_vm1, %v3118_v44, %v3098_v45  ;;  %vm5570_vm4 = vcmp.lt.s32.totalorder %v3530_v38, 1  ;;  %v64_v13 = vand.u32 15, %v3948_v18  ;;  %v5632_v29 = vmov 0 }
  0xb9   :  { %v3804_v51 = vsel %vm5400_vm0, %v3103_v59, %v5396_v61  ;;  %v3827_v56 = vpop.permute.xlu0 %3126  ;;  %vm3833_vm0 = vmand %vm101_vm14, %vm3733_vm7  ;;  %v5635_v37 = vmov 0 }
  0xba   :  { %v3825_v45 = vpop.permute.xlu1 %3111  ;;  %5566 = vst [vmem:[#allocation16_spill] sm:$0xff] %v3827_v56  ;;  %v5568_v36 = vsel %vm3833_vm0, 4294967295, %v5567_v36  ;;  %v5407_v52 = vunpack.i.h.bf16 %v3827_v56  ;;  %v3128_v61 = vunpack.i.l.bf16 %v3827_v56  ;;  %vm5572_vm14 = vmmov %vm5570_vm4 }
  0xbb   :  { %5569 = vst [vmem:[#allocation17_spill] sm:$0xff] %v5568_v36  ;;  %v5413_v49 = vunpack.i.h.bf16 %v3825_v45  ;;  %v3113_v17 = vunpack.i.l.bf16 %v3825_v45 }
  0xbc   :  { %v1254_v30 = vsel %vm5408_vm8, %v3128_v61, %v3094_v14  ;;  %v3858_v54 = vsel %vm5408_vm8, %v5407_v52, %v3128_v61  ;;  %v5577_v61 = vunpack.i.h.bf16 %v3766_v43  ;;  %vm5578_vm8 = vcmp.le.s32.totalorder %v3599_v3, 14 }
  0xbd   :  { %v3846_v34 = vsel %vm5570_vm4, %v5413_v49, %v3113_v17  ;;  %v1206_v25 = vsel %vm5572_vm14, %v3113_v17, %v3074_v22  ;;  %5573 = vst [vmem:[#allocation19_spill] sm:$0xff] %v3858_v54  ;;  %vm5409_vm14 = vmmov 1   ;;  %v5574_v22 = vmov 0  ;;  %vm1298_vm4 = vmand %vm5578_vm8, %vm3601_vm5 }
  0xbe   :  { %5571 = vst [vmem:[#allocation18_spill] sm:$0xff] %v3846_v34  ;;  %v2837_v1 = vpack.c.bf16 %v1206_v25, %v1157_v55  ;;  %v3122_v19 = vpop.permute.xlu1 %3121  ;;  %vm3869_vm2 = vmpackc.low %vm3660_vm11, %vm5409_vm14  ;;  %v1294_v14 = vsel %vm5411_vm1, %v5577_v61, %v3118_v44  ;;  %v2843_v55 = vpack.c.bf16 %v1254_v30, %v3398_v0  ;;  %vm5580_vm14 = vcmp.lt.s32.totalorder %v3530_v38, 112 }
  0xbf   :  { %v5575_v22 = vsel %vm3869_vm2, 4294967295, %v5574_v22  ;;  %v3124_v17 = vunpack.i.h.bf16 %v3122_v19  ;;  %v3123_v52 = vunpack.i.l.bf16 %v3122_v19  ;;  %vm5579_vm11 = vmpackc.low %vm3656_vm10, %vm3772_vm3  ;;  %v5583_v0 = vmov 0 }
  0xc0   :  { %5576 = vst [vmem:[#allocation20_spill] sm:$0xff] %v5575_v22  ;;  %2839 = vmatpush1.bf16.msk.msra.mxu0 %vm5579_vm11, %v2837_v1  ;;  %vm5581_vm1 = vmmov %vm5580_vm14  ;;  %v3922_v1 = vadd.s32 512, %v3530_v38  ;;  %v5594_v49 = vunpack.i.h.bf16 %v3640_v20  ;;  %v5598_v22 = vunpack.i.h.bf16 %v3521_v33  ;;  %v5601_v20 = vunpack.i.h.bf16 %v3686_v48 }
  0xc1   :  { %v3889_v27 = vsel %vm5580_vm14, %v3123_v52, %v3103_v59  ;;  %v1343_v44 = vsel %vm5581_vm1, %v3124_v17, %v3123_v52  ;;  %2842 = vmatprep.subr.msk.bf16.mxu0 %vm3869_vm2, %v2840_v8  ;;  %vm3898_vm8 = vmpackc.low %vm3733_vm7, %vm5582_vm13  ;;  %vm5586_vm14 = vcmp.le.s32.totalorder %v3599_v3, 14  ;;  %v5587_v59 = vmov 0  ;;  %v3914_v8 = vpop.permute.xlu0 %1370 }
  0xc2   :  { %v5584_v0 = vsel %vm3898_vm8, 4294967295, %v5583_v0  ;;  %v2846_v30 = vpack.c.bf16 %v1343_v44, %v1294_v14  ;;  %vm3906_vm11 = vmpackc.low %vm5586_vm14, %vm1298_vm4  ;;  %v3916_v39 = vpop.permute.xlu1 %1368  ;;  %v3919_v52 = vadd.s32 640, %v3530_v38  ;;  %5591 = vst [vmem:[#allocation24_spill] sm:$0xff] %v3922_v1  ;;  %vm5593_vm1 = vcmp.lt.s32.totalorder %v3530_v38, 16 }
  0xc3   :  { %5585 = vst [vmem:[#allocation21_spill] sm:$0xff] %v5584_v0  ;;  %v5588_v59 = vsel %vm3906_vm11, 4294967295, %v5587_v59  ;;  %v73_v25 = vand.u32 255, %v3922_v1  ;;  %vm5595_vm7 = vmmov %vm5593_vm1  ;;  %vm5599_vm4 = vcmp.lt.s32.totalorder %v3530_v38, 17  ;;  %v5614_v50 = vand.u32 15, %v3922_v1 }
  0xc4   :  { %5589 = vst [vmem:[#allocation22_spill] sm:$0xff] %v5588_v59  ;;  %2845 = vmatpush1.bf16.msk.msra.mxu0 %vm3898_vm8, %v2843_v55  ;;  %5590 = vst [vmem:[#allocation23_spill] sm:$0xff] %v3919_v52  ;;  %v74_v44 = vand.u32 255, %v3919_v52  ;;  %v5592_v55 = vunpack.i.h.bf16 %v3519_v32  ;;  %v5423_v33 = vand.u32 15, %v3919_v52 }
  0xc5   :  { %2848 = vmatprep.subr.msk.bf16.mxu0 %vm3906_vm11, %v2846_v30  ;;  %v3137_v3 = vpop.permute.xlu0 %3136  ;;  %vm5602_vm14 = vmmov %vm5599_vm4  ;;  %v3966_v15 = vshra.s32 %v73_v25, 4  ;;  %v72_v25 = vand.u32 255, %v3948_v18  ;;  %vm5618_vm11 = vcmp.lt.s32.totalorder %v3530_v38, 16 }
  0xc6   :  { %v3139_v19 = vunpack.i.h.bf16 %v3137_v3  ;;  %v3138_v61 = vunpack.i.l.bf16 %v3137_v3  ;;  %v3132_v14 = vpop.permute.xlu1 %3131 }
  0xc7   :  { %v3134_v12 = vunpack.i.h.bf16 %v3132_v14  ;;  %v3133_v0 = vunpack.i.l.bf16 %v3132_v14  ;;  %vm5622_vm8 = vcmp.ge.s32.totalorder %v3966_v15, 1 }
  0xc8   :  { %v3929_v30 = vsel %vm5593_vm1, %v5592_v55, %v3139_v19  ;;  %v3936_v59 = vsel %vm5595_vm7, %v3138_v61, %v5594_v49  ;;  %vm5607_vm1 = vcmp.lt.s32.totalorder %v3530_v38, 113  ;;  %vm4006_vm7 = vcmp.ge.s32.totalorder %v5614_v50, 1 }
  0xc9   :  { %5596 = vst [vmem:[#allocation25_spill] sm:$0xff] %v3936_v59  ;;  %v3938_v3 = vpop.permute.xlu0 %3141  ;;  %v3944_v32 = vsel %vm5599_vm4, %v5598_v22, %v3134_v12  ;;  %v3954_v49 = vsel %vm5602_vm14, %v3133_v0, %v5601_v20  ;;  %v3961_v22 = vshra.s32 %v74_v44, 4  ;;  %v5605_v20 = vunpack.i.h.bf16 %v3766_v43  ;;  %v3979_v44 = vld [vmem:[%s5371_s8 + $0x8] sm:$0xff]  ;;  %vm4042_vm2 = vmand %vm5622_vm8, %vm4006_vm7 }
  0xca   :  { %5597 = vst [vmem:[#allocation26_spill] sm:$0xff] %v3938_v3  ;;  %5603 = vst [vmem:[#allocation28_spill] sm:$0xff] %v3954_v49  ;;  %v3958_v26 = vpop.permute.xlu1 %1366  ;;  %v5606_v21 = vunpack.i.l.bf16 %v3938_v3  ;;  %vm3988_vm14 = vcmp.ge.s32.totalorder %v5423_v33, 1  ;;  %v5609_v43 = vmov 0  ;;  %v5615_v33 = vmov 0  ;;  %v4023_v49 = vld [vmem:[%s5372_s9] sm:$0xff] }
  0xcb   :  { %5604 = vst [vmem:[#allocation29_spill] sm:$0xff] %v3958_v26  ;;  %v5610_v43 = vsel %vm3988_vm14, 4294967295, %v5609_v43  ;;  %v5616_v33 = vsel %vm4006_vm7, 4294967295, %v5615_v33  ;;  %vm5444_vm8 = vcmask 588800   ;;  %vm5656_vm10 = vcmp.ge.s32.totalorder %v3961_v22, 1 }
  0xcc   :  { %v1295_v14 = vsel %vm5607_vm1, %v5606_v21, %v5605_v20  ;;  %5611 = vst [vmem:[#allocation31_spill] sm:$0xff] %v5610_v43  ;;  %v3995_v21 = vld [vmem:[%s5371_s8] sm:$0xff]  ;;  %vm5612_vm1 = vcmp.lt.s32.totalorder %v3530_v38, 112  ;;  %5617 = vst [vmem:[#allocation33_spill] sm:$0xff] %v5616_v33  ;;  %v5664_v3 = vmov 0 }
  0xcd   :  { %v3968_v48 = vpop.permute.xlu0 %3146 }
  0xce   :  { %v3982_v55 = vpop.permute.xlu1 %1321 }
  0xcf   :  { %5608 = vst [vmem:[#allocation30_spill] sm:$0xff] %v3982_v55  ;;  %v1344_v20 = vsel %vm5612_vm1, %v3982_v55, %v3124_v17  ;;  %v1111_v17 = vsel %vm5618_vm11, %v3139_v19, %v3138_v61  ;;  %vm5619_vm1 = vmmov %vm5599_vm4  ;;  %vm5620_vm4 = vcmp.lt.s32.totalorder %v3530_v38, 111  ;;  %vm5621_vm11 = vcmp.ge.s32.totalorder %v3961_v22, 1 }
  0xd0   :  { %v1062_v55 = vsel %vm5619_vm1, %v3134_v12, %v3133_v0  ;;  %v2849_v34 = vpack.c.bf16 %v1344_v20, %v1295_v14  ;;  %vm1073_vm1 = vmand %vm5621_vm11, %vm3988_vm14  ;;  %v71_v14 = vand.u32 255, %v4001_v7  ;;  %v3149_v0 = vunpack.i.h.bf16 %v3968_v48 }
  0xd1   :  { %v1365_v56 = vpop.permute.xlu0 %1364  ;;  %v2876_v61 = vpack.c.bf16 %v1111_v17, %v1062_v55 }
  0xd2   :  { %v1384_v59 = vsel %vm5620_vm4, %v1365_v56, %v3958_v26  ;;  %2851 = vmatpush1.bf16.msk.msra.mxu0 %vm3794_vm6, %v2849_v34  ;;  %vm5626_vm4 = vmmov %vm5621_vm11  ;;  %vm4068_vm6 = vcmp.ge.s32.totalorder %v64_v13, 1 }
  0xd3   :  { %2630 = vmatprep.subr.msk.mxu0 %vm3814_vm12, %v1384_v59  ;;  %vm4055_vm11 = vmpackc.low %vm5626_vm4, %vm1073_vm1  ;;  %vm5631_vm12 = vcmp.lt.s32.totalorder %v3530_v38, 111  ;;  %v5633_v29 = vsel %vm4068_vm6, 4294967295, %v5632_v29  ;;  %vm5634_vm1 = vcmp.ge.s32.totalorder %v3966_v15, 1 }
  0xd4   :  { %vm4076_vm4 = vmpackc.low %vm5634_vm1, %vm4042_vm2 }
  0xd5   :  { %v4051_v20 = vpop.permute.xlu0 %1362  ;;  %v5636_v37 = vsel %vm4076_vm4, 4294967295, %v5635_v37 }
  0xd6   :  { %5625 = vst [vmem:[#allocation34_spill] sm:$0xff] %v4051_v20  ;;  %5637 = vst [vmem:[#allocation37_spill] sm:$0xff] %v5636_v37 }
 0x169   :  { %v2772_v9 = vpop.f32.mrb[0].mxu0 }
 0x16a   :  { %v219_v54 = vmul.f32 %v2772_v9, %v3979_v44  ;;  %v207_v50 = vpop.f32.mrb[1].mxu0  ;;  %v4036_v9 = vshra.s32 %v72_v25, 4 }
 0x16b   :  { %v218_v12 = vmul.f32 %v3995_v21, %v207_v50  ;;  %v5627_v50 = vmov 0 }
 0x16c   :  { %v223_v19 = vadd.f32 %v4013_v47, %v219_v54  ;;  %v5628_v50 = vsel %vm4055_vm11, 4294967295, %v5627_v50  ;;  %v4062_v54 = vld [vmem:[%s5373_s1] sm:$0xff] }
 0x16d   :  { %v222_v34 = vadd.f32 %v4023_v49, %v218_v12  ;;  %v2784_v25 = vpop.f32.mrb[2].mxu0  ;;  %5629 = vst [vmem:[#allocation35_spill] sm:$0xff] %v5628_v50  ;;  %5630 = vst [vmem:[#allocation36_spill] sm:$0xff] %v4062_v54  ;;  %v1385_v12 = vsel %vm5631_vm12, %v4051_v20, %v1365_v56  ;;  %vm5446_vm12 = vcmp.ge.s32.totalorder %v4036_v9, 1  ;;  %v63_v56 = vand.u32 15, %v4001_v7 }
 0x16e   :  { %v225_v59 = vmax.f32 %v223_v19, 0.0  ;;  %v444_v55 = vmul.f32 %v2784_v25, %v3979_v44  ;;  %v434_v17 = vpop.f32.mrb[3].mxu0  ;;  %2631 = vmatpush1.msk.msra.mxu0 %vm3833_vm0, %v1385_v12  ;;  %v3148_v20 = vunpack.i.l.bf16 %v3968_v48  ;;  %v5638_v7 = vpack.c.bf16 %v3929_v30, %v3944_v32 }
 0x16f   :  { %v224_v19 = vmax.f32 %v222_v34, 0.0  ;;  %v443_v25 = vmul.f32 %v434_v17, %v3995_v21  ;;  %2878 = vmatprep.subr.msk.bf16.mxu0 %vm4055_vm11, %v2876_v61  ;;  %2608 = vmatmul.mubr.msk.f32.vlgmr.msra.gmra.mrb[8].mxu0 %vm5444_vm8, %v4062_v54  ;;  %v4092_v34 = vshra.s32 %v71_v14, 4  ;;  %v5639_v48 = vand.u32 15, %v3919_v52  ;;  %vm4112_vm8 = vmand %vm5446_vm12, %vm4068_vm6  ;;  %v3152_v52 = vpop.permute.xlu1 %3151 }
 0x170   :  { %v446_v18 = vadd.f32 %v444_v55, %v4013_v47  ;;  %2881 = vmatpush1.bf16.msk.msra.mxu0 %vm4076_vm4, %v5638_v7  ;;  %v5640_v55 = vmov 0  ;;  %v5642_v61 = vmov 0.0   ;;  %vm4116_vm4 = vcmp.le.s32.totalorder %v64_v13, 14 }
 0x171   :  { %v445_v17 = vadd.f32 %v443_v25, %v4023_v49  ;;  %v2796_v12 = vpop.f32.mrb[4].mxu0  ;;  %v2817_v36 = vpack.c.bf16 %v225_v59, %v224_v19  ;;  %vm4102_vm2 = vcmp.le.s32.totalorder %v5639_v48, 14  ;;  %1694 = vmatprep.mubr.f32.mxu0 %v5642_v61  ;;  %v5645_v7 = vmov 0 }
 0x172   :  { %v5641_v55 = vsel %vm4102_vm2, 4294967295, %v5640_v55  ;;  %v448_v14 = vmax.f32 %v446_v18, 0.0  ;;  %v671_v50 = vmul.f32 %v2796_v12, %v3979_v44  ;;  %v661_v25 = vpop.f32.mrb[5].mxu0  ;;  %v5646_v7 = vsel %vm4116_vm4, 4294967295, %v5645_v7  ;;  %v4124_v18 = vld [vmem:[%s5374_s10] sm:$0xff]  ;;  %vm4151_vm5 = vmand %vm5656_vm10, %vm4102_vm2 }
 0x173   :  { %v447_v32 = vmax.f32 %v445_v17, 0.0  ;;  %v670_v59 = vmul.f32 %v661_v25, %v3995_v21  ;;  %2818 = vmatpush3.bf16.msra.mxu1 %v2817_v36  ;;  %vm4126_vm1 = vcmp.ge.s32.totalorder %v63_v56, 1  ;;  %v5647_v19 = vmov 0 }
 0x174   :  { %v5648_v19 = vsel %vm4126_vm1, 4294967295, %v5647_v19  ;;  %v5649_v12 = vand.u32 15, %v3922_v1  ;;  %v5650_v13 = vmov 0  ;;  %v673_v17 = vadd.f32 %v671_v50, %v4013_v47 }
 0x175   :  { %v5652_v48 = vmov 0.0|0.0   ;;  %v5653_v36 = vunpack.i.h.bf16 %v3727_v31  ;;  %vm5654_vm11 = vcmp.lt.s32.totalorder %v3530_v38, 15  ;;  %v5657_v50 = vmov 0  ;;  %v2808_v1 = vpop.f32.mrb[6].mxu0 }
 0x176   :  { %vm4132_vm12 = vcmp.le.s32.totalorder %v5649_v12, 14  ;;  %2819 = vmatprep.subr.bf16.mxu1 %v5652_v48  ;;  %vm5655_vm0 = vmmov %vm5654_vm11  ;;  %v5658_v50 = vsel %vm4151_vm5, 4294967295, %v5657_v50  ;;  %v2820_v12 = vpack.c.bf16 %v448_v14, %v447_v32  ;;  %v672_v31 = vadd.f32 %v670_v59, %v4023_v49  ;;  %2778 = vmatmul.mubr.msk.f32.vlgmr.msra.gmra.mrb[0].mxu1 %vm5666_vm15, %v4124_v18  ;;  %v887_v30 = vpop.f32.mrb[7].mxu0 }
 0x177   :  { %v5651_v13 = vsel %vm4132_vm12, 4294967295, %v5650_v13  ;;  %v4142_v25 = vsel %vm5654_vm11, %v3148_v20, %v5653_v36  ;;  %v1152_v37 = vsel %vm5655_vm0, %v3149_v0, %v3148_v20  ;;  %5659 = vst [vmem:[#allocation38_spill] sm:$0xff] %v5658_v50  ;;  %vm5660_vm11 = vcmp.ge.s32.totalorder %v4036_v9, 1 }
 0x178   :  { %vm4160_vm0 = vmpackc.low %vm5660_vm11, %vm4112_vm8  ;;  %v5661_v20 = vmov 0  ;;  %v3154_v36 = vunpack.i.h.bf16 %v3152_v52  ;;  %v3153_v35 = vunpack.i.l.bf16 %v3152_v52  ;;  %v675_v14 = vmax.f32 %v673_v17, 0.0  ;;  %2821 = vmatpush3.bf16.msra.mxu1 %v2820_v12 }
 0x179   :  { %v5662_v20 = vsel %vm4160_vm0, 4294967295, %v5661_v20  ;;  %vm5663_vm10 = vmmov %vm5660_vm11  ;;  %v897_v32 = vmul.f32 %v2808_v1, %v3979_v44  ;;  %v5667_v59 = vunpack.i.h.bf16 %v3538_v40  ;;  %vm5668_vm8 = vcmp.lt.s32.totalorder %v3530_v38, 15  ;;  %2822 = vmatprep.subr.bf16.mxu1 %v5652_v48 }
 0x17a   :  { %vm4168_vm3 = vmand %vm5663_vm10, %vm4116_vm4  ;;  %vm4179_vm11 = vcmp.le.s32.totalorder %v63_v56, 14  ;;  %v5669_v54 = vmov 0  ;;  %vm5671_vm10 = vcmp.ge.s32.totalorder %v3966_v15, 1  ;;  %v5672_v17 = vmov 0 }
 0x17b   :  { %v5665_v3 = vsel %vm4168_vm3, 4294967295, %v5664_v3  ;;  %v1153_v52 = vsel %vm5668_vm8, %v5667_v59, %v3149_v0  ;;  %v5670_v54 = vsel %vm4179_vm11, 4294967295, %v5669_v54  ;;  %vm4187_vm9 = vmand %vm5671_vm10, %vm4132_vm12  ;;  %v674_v1 = vmax.f32 %v672_v31, 0.0 }
 0x17c   :  { %v5673_v17 = vsel %vm4187_vm9, 4294967295, %v5672_v17  ;;  %v896_v44 = vmul.f32 %v887_v30, %v3995_v21  ;;  %vm5675_vm15 = vmmov 0   ;;  %v5676_v40 = vunpack.i.h.bf16 %v3825_v45  ;;  %vm5687_vm4 = vmpackc.low %vm3988_vm14, %vm4151_vm5 }
 0x17d   :  { %5674 = vst [vmem:[#allocation39_spill] sm:$0xff] %v5673_v17  ;;  %2789 = vmatprep.mubr.msk.f32.mxu1 %vm5675_vm15, %v5642_v61  ;;  %vm5677_vm8 = vcmp.lt.s32.totalorder %v3530_v38, 1  ;;  %v899_v21 = vadd.f32 %v897_v32, %v4013_v47  ;;  %vm5679_vm12 = vcmp.ge.s32.totalorder %v4092_v34, 1  ;;  %v5682_v12 = vunpack.i.h.bf16 %v3595_v62  ;;  %v4222_v47 = vpop.permute.xlu1 %1243  ;;  %v4224_v32 = vpop.permute.xlu0 %1284 }
 0x17e   :  { %v4198_v56 = vsel %vm5677_vm8, %v3153_v35, %v5676_v40  ;;  %vm5678_vm2 = vmmov %vm5677_vm8  ;;  %v2823_v59 = vpack.c.bf16 %v675_v14, %v674_v1  ;;  %v898_v40 = vadd.f32 %v896_v44, %v4023_v49  ;;  %vm5683_vm8 = vcmask 130048  }
 0x17f   :  { %v1201_v0 = vsel %vm5678_vm2, %v3154_v36, %v3153_v35  ;;  %vm4212_vm0 = vmand %vm5679_vm12, %vm4126_vm1  ;;  %v1202_v35 = vsel %vm5678_vm2, %v5682_v12, %v3154_v36  ;;  %v2909_v30 = vpack.c.bf16 %v4198_v56, %v4142_v25  ;;  %v901_v62 = vmax.f32 %v899_v21, 0.0  ;;  %2790 = vmatmul.mubr.msk.f32.vlgmr.msra.gmra.mrb[2].mxu1 %vm5683_vm8, %v4124_v18 }
 0x180   :  { %v2882_v31 = vpack.c.bf16 %v1201_v0, %v1152_v37  ;;  %v2885_v26 = vpack.c.bf16 %v1202_v35, %v1153_v52  ;;  %vm5684_vm2 = vmmov %vm5679_vm12  ;;  %v5685_v37 = vmov 0  ;;  %v900_v49 = vmax.f32 %v898_v40, 0.0  ;;  %2824 = vmatpush3.bf16.msra.mxu1 %v2823_v59  ;;  %2801 = vmatprep.mubr.msk.f32.mxu1 %vm5675_vm15, %v5642_v61 }
 0x181   :  { %vm4237_vm10 = vmand %vm5684_vm2, %vm4179_vm11  ;;  %2825 = vmatprep.subr.bf16.mxu1 %v5652_v48  ;;  %v5688_v36 = vmov 0  ;;  %v4261_v14 = vpop.permute.xlu1 %3156  ;;  %v3079_v48 = vunpack.i.h.bf16 %v3597_v63  ;;  %v4276_v1 = vadd.s32 896, %v3530_v38  ;;  %v4287_v44 = vpop.permute.xlu0 %1376  ;;  %v4290_v0 = vadd.s32 768, %v3530_v38 }
 0x182   :  { %v5686_v37 = vsel %vm4237_vm10, 4294967295, %v5685_v37  ;;  %2884 = vmatprep.subr.msk.bf16.mxu0 %vm5687_vm4, %v2882_v31  ;;  %vm4257_vm12 = vmpackc.low %vm5684_vm2, %vm4212_vm0  ;;  %v2826_v52 = vpack.c.bf16 %v901_v62, %v900_v49  ;;  %v5699_v45 = vpack.c.bf16 %v3546_v41, %v3552_v42  ;;  %vm5700_vm2 = vnez %v5662_v20 }
 0x183   :  { %v5689_v36 = vsel %vm4257_vm12, 4294967295, %v5688_v36  ;;  %vm5690_vm4 = vmpackc.low %vm4006_vm7, %vm4187_vm9  ;;  %v5701_v12 = vmov 0  ;;  %v5707_v41 = vunpack.i.l.bf16 %v3597_v63  ;;  %v5712_v62 = vmov 0 }
 0x184   :  { %2887 = vmatpush1.bf16.msk.msra.mxu0 %vm5690_vm4, %v2885_v26  ;;  %vm5691_vm5 = vmmov %vm5683_vm8  ;;  %vm5692_vm4 = vnez %v5646_v7  ;;  %v5693_v26 = vmov 0  ;;  %v76_v49 = vand.u32 255, %v4276_v1  ;;  %vm5715_vm7 = vcmask 130048  }
 0x185   :  { %2802 = vmatmul.mubr.msk.f32.vlgmr.msra.gmra.mrb[4].mxu1 %vm5691_vm5, %v4124_v18  ;;  %vm4283_vm8 = vmpackc.low %vm5692_vm4, %vm5582_vm13  ;;  %vm5696_vm5 = vcmp.le.s32.totalorder %v4036_v9, 14  ;;  %v1242_v31 = vpop.permute.xlu1 %1241  ;;  %v68_v21 = vand.u32 15, %v4276_v1  ;;  %v5736_v7 = vpack.c.bf16 %v3666_v28, %v3589_v60  ;;  %v5836_v56 = vmov 0 }
 0x186   :  { %v5694_v26 = vsel %vm4283_vm8, 4294967295, %v5693_v26  ;;  %2827 = vmatpush3.bf16.msra.mxu1 %v2826_v52  ;;  %2813 = vmatprep.mubr.msk.f32.mxu1 %vm5675_vm15, %v5642_v61  ;;  %vm4298_vm0 = vmand %vm5696_vm5, %vm4068_vm6  ;;  %vm5704_vm15 = vcmp.le.s32.totalorder %v4092_v34, 14  ;;  %vm5711_vm8 = vnez %v5641_v55  ;;  %v4398_v35 = vshra.s32 %v76_v49, 4 }
 0x187   :  { %5695 = vst [vmem:[#allocation40_spill] sm:$0xff] %v5694_v26  ;;  %2854 = vmatprep.subr.msk.bf16.mxu1 %vm5700_vm2, %v5699_v45  ;;  %vm4310_vm9 = vmpackc.low %vm4179_vm11, %vm5582_vm13  ;;  %vm5708_vm2 = vcmp.lt.s32.totalorder %v3530_v38, 127  ;;  %v75_v45 = vand.u32 255, %v4290_v0  ;;  %v5779_v55 = vmov 0 }
 0x188   :  { %v5702_v12 = vsel %vm4310_vm9, 4294967295, %v5701_v12  ;;  %vm4318_vm5 = vmand %vm5704_vm15, %vm4126_vm1  ;;  %v1251_v42 = vsel %vm5708_vm2, %v5707_v41, %v3079_v48  ;;  %v67_v41 = vand.u32 15, %v4290_v0 }
 0x189   :  { %5703 = vst [vmem:[#allocation41_spill] sm:$0xff] %v5702_v12  ;;  %vm5709_vm11 = vmmov %vm5708_vm2  ;;  %2814 = vmatmul.mubr.msk.f32.vlgmr.msra.gmra.mrb[6].mxu1 %vm5715_vm7, %v4124_v18  ;;  %vm5721_vm7 = vcmp.le.s32.totalorder %v4036_v9, 14  ;;  %v4383_v18 = vpop.permute.xlu1 %1374 }
 0x18a   :  { %v1249_v59 = vsel %vm5709_vm11, %v1242_v31, %v4222_v47  ;;  %vm5710_vm9 = vmmov %vm5708_vm2  ;;  %vm5716_vm11 = vnez %v5651_v13  ;;  %1623 = vmatprep.mubr.f32.mxu1 %v5642_v61 }
 0x18b   :  { %v1250_v40 = vsel %vm5710_vm9, %v3079_v48, %v1242_v31  ;;  %vm4334_vm15 = vmpackc.low %vm5711_vm8, %vm5582_vm13  ;;  %v2888_v63 = vpack.c.bf16 %v1249_v59, %v3425_v6  ;;  %v5717_v48 = vmov 0  ;;  %v5720_v31 = vpack.c.bf16 %v3583_v58, %v3560_v46 }
 0x18c   :  { %v5713_v62 = vsel %vm4334_vm15, 4294967295, %v5712_v62  ;;  %v2891_v52 = vpack.c.bf16 %v1250_v40, %v3420_v5  ;;  %vm4346_vm9 = vmpackc.low %vm5716_vm11, %vm5582_vm13  ;;  %v5722_v5 = vmov 0  ;;  %v2864_v6 = vpack.c.bf16 %v1251_v42, %v3415_v4  ;;  %v1283_v4 = vpop.permute.xlu0 %1282 }
 0x18d   :  { %5714 = vst [vmem:[#allocation42_spill] sm:$0xff] %v5713_v62  ;;  %v5718_v48 = vsel %vm4346_vm9, 4294967295, %v5717_v48  ;;  %2857 = vmatpush1.bf16.msk.msra.mxu1 %vm4257_vm12, %v5720_v31  ;;  %vm4360_vm2 = vmpackc.low %vm5721_vm7, %vm4298_vm0  ;;  %v5725_v46 = vpack.c.bf16 %v3627_v16, %v3614_v10  ;;  %vm5727_vm0 = vcmp.le.s32.totalorder %v4092_v34, 14  ;;  %v5728_v58 = vmov 0  ;;  %2890 = vmatprep.subr.msk.bf16.mxu0 %vm4334_vm15, %v2888_v63  ;;  %v1332_v60 = vpop.permute.xlu1 %1331 }
 0x18e   :  { %5719 = vst [vmem:[#allocation43_spill] sm:$0xff] %v5718_v48  ;;  %v5723_v5 = vsel %vm4360_vm2, 4294967295, %v5722_v5  ;;  %vm5726_vm12 = vmpackc.low %vm4068_vm6, %vm4168_vm3  ;;  %v3159_v10 = vunpack.i.h.bf16 %v4261_v14  ;;  %v5732_v16 = vmov 0  ;;  %2893 = vmatpush1.bf16.msk.msra.mxu0 %vm4346_vm9, %v2891_v52  ;;  %v4403_v42 = vshra.s32 %v75_v45, 4 }
 0x18f   :  { %5724 = vst [vmem:[#allocation44_spill] sm:$0xff] %v5723_v5  ;;  %2860 = vmatprep.subr.msk.bf16.mxu1 %vm5726_vm12, %v5725_v46  ;;  %vm4379_vm7 = vmpackc.low %vm5727_vm0, %vm4318_vm5  ;;  %vm5731_vm12 = vcmp.le.s32.totalorder %v4036_v9, 14  ;;  %vm5735_vm5 = vcmp.le.s32.totalorder %v3961_v22, 14  ;;  %v2867_v9 = vpack.c.bf16 %v3750_v24, %v3408_v2  ;;  %v5739_v40 = vunpack.i.h.bf16 %v3688_v53 }
 0x190   :  { %v5729_v58 = vsel %vm4379_vm7, 4294967295, %v5728_v58  ;;  %vm4393_vm3 = vmand %vm5731_vm12, %vm5692_vm4  ;;  %vm5738_vm12 = vcmp.lt.s32.totalorder %v3530_v38, 113  ;;  %vm5741_vm13 = vnez %v5616_v33  ;;  %vm5742_vm9 = vcmp.le.s32.totalorder %v3966_v15, 14  ;;  %v1373_v28 = vpop.permute.xlu0 %1372 }
 0x191   :  { %5730 = vst [vmem:[#allocation45_spill] sm:$0xff] %v5729_v58  ;;  %v5733_v16 = vsel %vm4393_vm3, 4294967295, %v5732_v16  ;;  %vm1302_vm0 = vmand %vm5735_vm5, %vm3988_vm14  ;;  %v1290_v59 = vsel %vm5738_vm12, %v1283_v4, %v4224_v32  ;;  %vm5743_vm14 = vnez %v5694_v26  ;;  %v5746_v2 = vmov 0 }
 0x192   :  { %5734 = vst [vmem:[#allocation46_spill] sm:$0xff] %v5733_v16  ;;  %vm5737_vm4 = vmpackc.low %vm4126_vm1, %vm4237_vm10  ;;  %vm5744_vm10 = vnez %v5670_v54  ;;  %v5749_v53 = vmov 0  ;;  %v5753_v54 = vunpack.i.h.bf16 %v3764_v23  ;;  %v5756_v63 = vmov 0 }
 0x193   :  { %2863 = vmatpush1.bf16.msk.msra.mxu1 %vm5737_vm4, %v5736_v7  ;;  %vm5740_vm5 = vmmov %vm5738_vm12  ;;  %vm5745_vm4 = vcmp.le.s32.totalorder %v4092_v34, 14  ;;  %v5759_v52 = vmov 0  ;;  %v5763_v23 = vmov 0  ;;  %v5768_v46 = vmov 0  ;;  %v5805_v7 = vld [vmem:[#allocation26_spill] sm:$0xff] }
 0x194   :  { %v1291_v49 = vsel %vm5740_vm5, %v5739_v40, %v1283_v4  ;;  %vm1301_vm15 = vmand %vm5742_vm9, %vm5741_vm13  ;;  %2866 = vmatprep.subr.msk.bf16.mxu1 %vm5743_vm14, %v2864_v6  ;;  %vm4441_vm5 = vcmp.ge.s32.totalorder %v68_v21, 1  ;;  %vm5752_vm9 = vcmp.lt.s32.totalorder %v3530_v38, 112  ;;  %vm4460_vm14 = vcmp.ge.s32.totalorder %v67_v41, 1 }
 0x195   :  { %vm4436_vm1 = vmand %vm5745_vm4, %vm5744_vm10  ;;  %v5750_v53 = vsel %vm4441_vm5, 4294967295, %v5749_v53  ;;  %v1339_v24 = vsel %vm5752_vm9, %v1332_v60, %v3159_v10  ;;  %vm5755_vm4 = vcmp.le.s32.totalorder %v3961_v22, 14  ;;  %v5760_v52 = vsel %vm4460_vm14, 4294967295, %v5759_v52 }
 0x196   :  { %v5747_v2 = vsel %vm4436_vm1, 4294967295, %v5746_v2  ;;  %5751 = vst [vmem:[#allocation48_spill] sm:$0xff] %v5750_v53  ;;  %vm5754_vm10 = vmmov %vm5752_vm9  ;;  %v2894_v45 = vpack.c.bf16 %v1339_v24, %v1290_v59  ;;  %vm5762_vm9 = vcmp.le.s32.totalorder %v3966_v15, 14  ;;  %v5771_v4 = vpack.c.bf16 %v3804_v51, %v3781_v11  ;;  %v5810_v24 = vld [vmem:[#allocation25_spill] sm:$0xff] }
 0x197   :  { %5748 = vst [vmem:[#allocation47_spill] sm:$0xff] %v5747_v2  ;;  %v1340_v34 = vsel %vm5754_vm10, %v5753_v54, %v1332_v60  ;;  %vm4455_vm13 = vmpackc.low %vm5755_vm4, %vm1302_vm0  ;;  %vm5766_vm10 = vnez %v5702_v12  ;;  %vm5767_vm0 = vcmp.lt.s32.totalorder %v3530_v38, 111  ;;  %v3144_v59 = vunpack.i.h.bf16 %v5805_v7  ;;  %v5807_v60 = vld [vmem:[#allocation10_spill] sm:$0xff]  ;;  %v5811_v54 = vld [vmem:[#allocation28_spill] sm:$0xff] }
 0x198   :  { %v5757_v63 = vsel %vm4455_vm13, 4294967295, %v5756_v63  ;;  %5761 = vst [vmem:[#allocation50_spill] sm:$0xff] %v5760_v52  ;;  %v2897_v31 = vpack.c.bf16 %v1340_v34, %v1291_v49  ;;  %vm4466_vm6 = vmpackc.low %vm5762_vm9, %vm1301_vm15  ;;  %2869 = vmatpush1.bf16.msk.msra.mxu1 %vm5766_vm10, %v2867_v9  ;;  %v1380_v6 = vsel %vm5767_vm0, %v1373_v28, %v4383_v18  ;;  %vm5772_vm15 = vcmp.ge.s32.totalorder %v4398_v35, 1  ;;  %2896 = vmatprep.subr.msk.bf16.mxu0 %vm4455_vm13, %v2894_v45  ;;  %v5806_v49 = vld [vmem:[#allocation8_spill] sm:$0xff]  ;;  %v3300_v45 = vld [vmem:[%s5368_s0 + $0x38] sm:$0xff] }
 0x199   :  { %5758 = vst [vmem:[#allocation49_spill] sm:$0xff] %v5757_v63  ;;  %v5764_v23 = vsel %vm4466_vm6, 4294967295, %v5763_v23  ;;  %vm4479_vm12 = vmand %vm5755_vm4, %vm5711_vm8  ;;  %2872 = vmatprep.subr.msk.bf16.mxu1 %vm4360_vm2, %v5771_v4  ;;  %vm4504_vm2 = vcmp.le.s32.totalorder %v68_v21, 14  ;;  %v5782_v21 = vpack.c.bf16 %v3889_v27, %v3808_v57  ;;  %v5792_v57 = vmov 0  ;;  %v5814_v4 = vld [vmem:[#allocation16_spill] sm:$0xff] }
 0x19a   :  { %5765 = vst [vmem:[#allocation51_spill] sm:$0xff] %v5764_v23  ;;  %v5769_v46 = vsel %vm4479_vm12, 4294967295, %v5768_v46  ;;  %vm1075_vm9 = vmand %vm5772_vm15, %vm4441_vm5  ;;  %2899 = vmatpush1.bf16.msk.msra.mxu0 %vm4466_vm6, %v2897_v31  ;;  %v5796_v27 = vmov 0  ;;  %v3158_v40 = vunpack.i.l.bf16 %v4261_v14  ;;  %v5812_v34 = vpack.c.bf16 %v5810_v24, %v5811_v54  ;;  %v5813_v31 = vld [vmem:[#allocation19_spill] sm:$0xff]  ;;  %v3301_v54 = vld [vmem:[%s5368_s0 + $0x30] sm:$0xff] }
 0x19b   :  { %5770 = vst [vmem:[#allocation52_spill] sm:$0xff] %v5769_v46  ;;  %vm5773_vm8 = vmmov %vm5767_vm0  ;;  %vm5774_vm0 = vcmp.ge.s32.totalorder %v4403_v42, 1  ;;  %2662 = vmatprep.subr.msk.mxu0 %vm4479_vm12, %v1380_v6  ;;  %vm4532_vm12 = vcmp.le.s32.totalorder %v67_v41, 14  ;;  %v5803_v41 = vld [vmem:[#allocation36_spill] sm:$0xff]  ;;  %v2912_v6 = vpack.c.bf16 %v5813_v31, %v3300_v45  ;;  %v5844_v14 = vld [vmem:[#allocation34_spill] sm:$0xff] }
 0x19c   :  { %v1382_v22 = vsel %vm5773_vm8, %v3916_v39, %v3914_v8  ;;  %vm1074_vm4 = vmand %vm5774_vm0, %vm4460_vm14  ;;  %2875 = vmatpush1.bf16.msk.msra.mxu1 %vm4379_vm7, %v5782_v21  ;;  %vm5783_vm0 = vcmp.ge.s32.totalorder %v4398_v35, 1  ;;  %v5817_v21 = vld [vmem:[#allocation18_spill] sm:$0xff] }
 0x19d   :  { %vm5777_vm15 = vmmov %vm5773_vm8  ;;  %vm5778_vm8 = vcmp.le.s32.totalorder %v3966_v15, 14  ;;  %v5789_v15 = vld [vmem:[#allocation29_spill] sm:$0xff]  ;;  %2646 = vmatprep.subr.msk.mxu1 %vm4393_vm3, %v1382_v22  ;;  %v5815_v22 = vunpack.i.h.bf16 %v5814_v4 }
 0x19e   :  { %v1381_v11 = vsel %vm5777_vm15, %v3914_v8, %v1373_v28  ;;  %vm4517_vm13 = vmand %vm5778_vm8, %vm5716_vm11  ;;  %v5784_v8 = vmov 0  ;;  %vm5790_vm11 = vcmp.lt.s32.totalorder %v3530_v38, 111  ;;  %v5808_v28 = vpack.c.bf16 %v5806_v49, %v5807_v60 }
 0x19f   :  { %v5780_v55 = vsel %vm4517_vm13, 4294967295, %v5779_v55  ;;  %vm4528_vm15 = vmpackc.low %vm5783_vm0, %vm1075_vm9  ;;  %v1383_v9 = vsel %vm5790_vm11, %v5789_v15, %v3916_v39  ;;  %2663 = vmatpush1.msk.msra.mxu0 %vm4517_vm13, %v1381_v11  ;;  %v5800_v39 = vmov 0  ;;  %v5818_v15 = vld [vmem:[#allocation12_spill] sm:$0xff]  ;;  %v5821_v49 = vmov 0 }
 0x1a0   :  { %5781 = vst [vmem:[#allocation53_spill] sm:$0xff] %v5780_v55  ;;  %v5785_v8 = vsel %vm4528_vm15, 4294967295, %v5784_v8  ;;  %vm5791_vm8 = vmmov %vm5783_vm0  ;;  %vm5795_vm0 = vcmp.ge.s32.totalorder %v4403_v42, 1  ;;  %2647 = vmatpush1.msk.msra.mxu1 %vm4436_vm1, %v1383_v9  ;;  %v5819_v9 = vpack.c.bf16 %v5817_v21, %v5818_v15  ;;  %v5824_v60 = vunpack.i.l.bf16 %v5805_v7 }
 0x1a1   :  { %5786 = vst [vmem:[#allocation54_spill] sm:$0xff] %v5785_v8  ;;  %vm4546_vm9 = vmand %vm5791_vm8, %vm4504_vm2  ;;  %vm5804_vm8 = vcmask 588800   ;;  %2902 = vmatprep.subr.msk.bf16.mxu1 %vm4528_vm15, %v5808_v28  ;;  %v5826_v28 = vld [vmem:[#allocation30_spill] sm:$0xff]  ;;  %vm5827_vm13 = vcmp.lt.s32.totalorder %v3530_v38, 112  ;;  %v5830_v7 = vmov 0 }
 0x1a2   :  { %v5793_v57 = vsel %vm4546_vm9, 4294967295, %v5792_v57  ;;  %vm4552_vm6 = vmpackc.low %vm5795_vm0, %vm1074_vm4  ;;  %2610 = vmatmul.mubr.msk.f32.vlgmr.msra.gmra.mrb[10].mxu0 %vm5804_vm8, %v5803_v41  ;;  %v1345_v24 = vsel %vm5827_vm13, %v3158_v40, %v5826_v28 }
 0x1a3   :  { %5794 = vst [vmem:[#allocation29_spill] sm:$0xff] %v5793_v57  ;;  %v5797_v27 = vsel %vm4552_vm6, 4294967295, %v5796_v27  ;;  %vm5799_vm11 = vmmov %vm5795_vm0  ;;  %2284 = vmatprep.mubr.f32.mxu0 %v5642_v61 }
 0x1a4   :  { %5798 = vst [vmem:[#allocation55_spill] sm:$0xff] %v5797_v27  ;;  %vm4562_vm3 = vmand %vm5799_vm11, %vm4532_vm12 }
 0x1a5   :  { %v5801_v39 = vsel %vm4562_vm3, 4294967295, %v5800_v39  ;;  %vm5492_vm4 = vmpackc.low %vm4441_vm5, %vm4546_vm9 }
 0x1a6   :  { %5802 = vst [vmem:[#allocation56_spill] sm:$0xff] %v5801_v39  ;;  %vm5809_vm0 = vmmov %vm5804_vm8  ;;  %vm5820_vm8 = vmmov 1  }
 0x1a7   :  { %2609 = vmatmul.mubr.msk.f32.vlgmr.msra.gmra.mrb[8].mxu1 %vm5809_vm0, %v5803_v41  ;;  %vm5816_vm0 = vcmp.lt.s32.totalorder %v3530_v38, 127  ;;  %vm4615_vm11 = vmpackc.low %vm4504_vm2, %vm5820_vm8 }
 0x1a8   :  { %2905 = vmatpush1.bf16.msk.msra.mxu1 %vm4552_vm6, %v5812_v34  ;;  %1765 = vmatprep.mubr.f32.mxu1 %v5642_v61  ;;  %v1248_v11 = vsel %vm5816_vm0, %v4222_v47, %v5815_v22  ;;  %v5822_v49 = vsel %vm4615_vm11, 4294967295, %v5821_v49  ;;  %vm5825_vm0 = vcmp.lt.s32.totalorder %v3530_v38, 113  ;;  %vm5829_vm13 = vmpackc.low %vm4460_vm14, %vm4562_vm3  ;;  %vm5834_vm6 = vcmp.lt.s32.totalorder %v3530_v38, 113 }
 0x1a9   :  { %2908 = vmatprep.subr.msk.bf16.mxu1 %vm5492_vm4, %v5819_v9  ;;  %5823 = vst [vmem:[#allocation36_spill] sm:$0xff] %v5822_v49  ;;  %v1296_v47 = vsel %vm5825_vm0, %v3144_v59, %v5824_v60  ;;  %vm5828_vm4 = vcmp.le.s32.totalorder %v4398_v35, 14  ;;  %v2915_v34 = vpack.c.bf16 %v1248_v11, %v3301_v54  ;;  %vm5833_vm0 = vcmp.lt.s32.totalorder %v3530_v38, 112 }
 0x1aa   :  { %vm1304_vm9 = vmand %vm5828_vm4, %vm4441_vm5  ;;  %v2918_v45 = vpack.c.bf16 %v1345_v24, %v1296_v47  ;;  %v1338_v31 = vsel %vm5833_vm0, %v3159_v10, %v3158_v40  ;;  %v1289_v25 = vsel %vm5834_vm6, %v4224_v32, %v3144_v59  ;;  %v5841_v32 = vmov 0 }
 0x1ab   :  { %vm4645_vm4 = vmpackc.low %vm4532_vm12, %vm5820_vm8  ;;  %vm5839_vm8 = vcmp.le.s32.totalorder %v4403_v42, 14  ;;  %v5846_v59 = vmov 0 }
 0x1ac   :  { %2911 = vmatpush1.bf16.msk.msra.mxu1 %vm5829_vm13, %v2909_v30  ;;  %v5831_v7 = vsel %vm4645_vm4, 4294967295, %v5830_v7  ;;  %vm5835_vm13 = vcmp.le.s32.totalorder %v4398_v35, 14  ;;  %vm1303_vm5 = vmand %vm5839_vm8, %vm4460_vm14  ;;  %v2921_v30 = vpack.c.bf16 %v1338_v31, %v1289_v25  ;;  %v5850_v35 = vmov 0  ;;  %v523_v25 = vpop.permute.xlu1 %522 }
 0x1ad   :  { %5832 = vst [vmem:[#allocation26_spill] sm:$0xff] %v5831_v7  ;;  %2914 = vmatprep.subr.msk.bf16.mxu1 %vm4615_vm11, %v2912_v6  ;;  %vm4660_vm3 = vmpackc.low %vm5835_vm13, %vm1304_vm9  ;;  %vm5845_vm9 = vcmp.lt.s32.totalorder %v3530_v38, 111 }
 0x1ae   :  { %v5837_v56 = vsel %vm4660_vm3, 4294967295, %v5836_v56  ;;  %vm5840_vm6 = vmmov %vm5839_vm8  ;;  %v1386_v10 = vsel %vm5845_vm9, %v4287_v44, %v5844_v14 }
 0x1af   :  { %5838 = vst [vmem:[#allocation8_spill] sm:$0xff] %v5837_v56  ;;  %vm4674_vm0 = vmpackc.low %vm5840_vm6, %vm1303_vm5 }
 0x1b0   :  { %2917 = vmatpush1.bf16.msk.msra.mxu1 %vm4645_vm4, %v2915_v34  ;;  %v5842_v32 = vsel %vm4674_vm0, 4294967295, %v5841_v32  ;;  %vm4686_vm8 = vmand %vm5835_vm13, %vm4504_vm2  ;;  %vm5853_vm2 = vcmask 588800  }
 0x1b1   :  { %2920 = vmatprep.subr.msk.bf16.mxu1 %vm4660_vm3, %v2918_v45  ;;  %5843 = vst [vmem:[#allocation10_spill] sm:$0xff] %v5842_v32  ;;  %v5847_v59 = vsel %vm4686_vm8, 4294967295, %v5846_v59  ;;  %vm5849_vm5 = vmmov %vm5845_vm9  ;;  %v5854_v45 = vld [vmem:[#allocation5_spill] sm:$0xff] }
 0x1b2   :  { %5848 = vst [vmem:[#allocation25_spill] sm:$0xff] %v5847_v59  ;;  %v1379_v40 = vsel %vm5849_vm5, %v4383_v18, %v4287_v44  ;;  %vm4702_vm9 = vmand %vm5840_vm6, %vm4532_vm12  ;;  %v3324_v44 = vmov 0   ;;  %v227_v18 = vld [vmem:[%s5375_s11] sm:$0xff]  ;;  %vm307_vm12 = vcmask 7168  }
 0x1b3   :  { %v5851_v35 = vsel %vm4702_vm9, 4294967295, %v5850_v35  ;;  %3160 = vset.pattern.permute.xlu0 %v3324_v44  ;;  %3166 = vset.pattern.permute.xlu1 %v3324_v44 }
 0x1b4   :  { %2923 = vmatpush1.bf16.msk.msra.mxu1 %vm4674_vm0, %v2921_v30  ;;  %5852 = vst [vmem:[#allocation28_spill] sm:$0xff] %v5851_v35 }
 0x1b5   :  { %2678 = vmatprep.subr.msk.mxu1 %vm4686_vm8, %v1386_v10 }
 0x1b8   :  { %2679 = vmatpush1.msk.msra.mxu1 %vm4702_vm9, %v1379_v40 }
 0x1b9   :  { %2611 = vmatmul.mubr.msk.f32.vlgmr.msra.gmra.mrb[10].mxu1 %vm5853_vm2, %v5803_v41 }
 0x1ba   :  { %2355 = vmatprep.mubr.f32.mxu1 %v5642_v61 }
 0x249   :  { %v298_v42 = vpop.f32.mrb[0].mxu1 }
 0x24a   :  { %v299_v51 = vadd.f32 %v298_v42, %v227_v18  ;;  %v2779_v13 = vpop.f32.mrb[1].mxu1  ;;  %v749_v42 = vpop.permute.xlu0 %748 }
 0x24c   :  { %v302_v6 = vmul.f32 1.442695, %v299_v51 }
 0x24e   :  { %3292 = vpow2.f32 %v302_v6 }
 0x252   :  { %v515_v4 = vpop.f32.mrb[2].mxu1 }
 0x253   :  { %v516_v22 = vadd.f32 %v515_v4, %v227_v18  ;;  %v2791_v11 = vpop.f32.mrb[3].mxu1 }
 0x255   :  { %v519_v21 = vmul.f32 1.442695, %v516_v22 }
 0x257   :  { %3294 = vpow2.f32 %v519_v21  ;;  %v975_v21 = vpop.permute.xlu1 %974 }
 0x258   :  { %v742_v15 = vpop.f32.mrb[4].mxu1  ;;  %v3293_v54 = vpop.eup %3292 }
 0x259   :  { %v743_v41 = vadd.f32 %v742_v15, %v227_v18  ;;  %v2803_v9 = vpop.f32.mrb[5].mxu1  ;;  %v305_v31 = vadd.f32 %v3293_v54, %v5854_v45  ;;  %v5855_v15 = vlaneseq }
 0x25b   :  { %v746_v60 = vmul.f32 1.442695, %v743_v41  ;;  %v306_v30 = vmul.f32 1.5, %v305_v31  ;;  %v126_v41 = vshrl.u32 %v5855_v15, 7 }
 0x25c   :  { %v968_v47 = vpop.f32.mrb[6].mxu1 }
 0x25d   :  { %3296 = vpow2.f32 %v746_v60  ;;  %v969_v28 = vadd.f32 %v968_v47, %v227_v18  ;;  %v2815_v24 = vpop.f32.mrb[7].mxu1  ;;  %v308_v10 = vsel %vm307_vm12, %v306_v30, -inf }
 0x25e   :  { %v309_v44 = vrot.slane %v308_v10, 4 }
 0x25f   :  { %v972_v34 = vmul.f32 1.442695, %v969_v28 }
 0x260   :  { %v310_v6 = vmax.f32 %v308_v10, %v309_v44 }
 0x261   :  { %3298 = vpow2.f32 %v972_v34  ;;  %v3295_v14 = vpop.eup %3294 }
 0x262   :  { %v525_v40 = vadd.f32 %v3295_v14, %v523_v25  ;;  %v311_v22 = vrot.slane %v310_v6, 2  ;;  %v4719_v25 = vcvt.s32.f32 %v126_v41 }
 0x264   :  { %v526_v51 = vmul.f32 1.5, %v525_v40  ;;  %v312_v47 = vmax.f32 %v310_v6, %v311_v22 }
 0x266   :  { %v527_v18 = vsel %vm307_vm12, %v526_v51, -inf  ;;  %v313_v31 = vrot.slane %v312_v47, 1 }
 0x267   :  { %v3297_v13 = vpop.eup %3296  ;;  %v528_v11 = vrot.slane %v527_v18, 4 }
 0x268   :  { %v751_v4 = vadd.f32 %v3297_v13, %v749_v42  ;;  %v314_v44 = vmax.f32 %v312_v47, %v313_v31 }
 0x269   :  { %v529_v28 = vmax.f32 %v527_v18, %v528_v11 }
 0x26a   :  { %v752_v9 = vmul.f32 1.5, %v751_v4  ;;  %vm315_vm13 = vcmp.eq.f32.partialorder %v306_v30, %v314_v44 }
 0x26b   :  { %v3299_v60 = vpop.eup %3298  ;;  %v530_v34 = vrot.slane %v529_v28, 2  ;;  %v316_v6 = vsel %vm315_vm13, %v4719_v25, 8.0 }
 0x26c   :  { %v753_v24 = vsel %vm307_vm12, %v752_v9, -inf  ;;  %v977_v54 = vadd.f32 %v3299_v60, %v975_v21  ;;  %v317_v21 = vsel %vm307_vm12, %v316_v6, inf }
 0x26d   :  { %v754_v45 = vrot.slane %v753_v24, 4  ;;  %v531_v10 = vmax.f32 %v529_v28, %v530_v34  ;;  %v318_v60 = vrot.slane %v317_v21, 4 }
 0x26e   :  { %v978_v14 = vmul.f32 1.5, %v977_v54 }
 0x26f   :  { %v755_v40 = vmax.f32 %v753_v24, %v754_v45  ;;  %v532_v13 = vrot.slane %v531_v10, 1  ;;  %v319_v47 = vmin.f32 %v317_v21, %v318_v60 }
 0x270   :  { %v979_v42 = vsel %vm307_vm12, %v978_v14, -inf }
 0x271   :  { %v756_v15 = vrot.slane %v755_v40, 2  ;;  %v980_v4 = vrot.slane %v979_v42, 4  ;;  %v533_v18 = vmax.f32 %v531_v10, %v532_v13  ;;  %v320_v30 = vrot.slane %v319_v47, 2 }
 0x273   :  { %v757_v22 = vmax.f32 %v755_v40, %v756_v15  ;;  %v981_v11 = vmax.f32 %v979_v42, %v980_v4  ;;  %vm534_vm5 = vcmp.eq.f32.partialorder %v526_v51, %v533_v18  ;;  %v321_v42 = vmin.f32 %v319_v47, %v320_v30 }
 0x274   :  { %v535_v28 = vsel %vm534_vm5, %v4719_v25, 8.0 }
 0x275   :  { %v758_v41 = vrot.slane %v757_v22, 1  ;;  %v982_v54 = vrot.slane %v981_v11, 2  ;;  %v536_v24 = vsel %vm307_vm12, %v535_v28, inf  ;;  %v322_v6 = vrot.slane %v321_v42, 1 }
 0x276   :  { %v537_v31 = vrot.slane %v536_v24, 4 }
 0x277   :  { %v759_v34 = vmax.f32 %v757_v22, %v758_v41  ;;  %v983_v45 = vmax.f32 %v981_v11, %v982_v54  ;;  %v323_v11 = vmin.f32 %v321_v42, %v322_v6 }
 0x278   :  { %v538_v10 = vmin.f32 %v536_v24, %v537_v31 }
 0x279   :  { %vm760_vm6 = vcmp.eq.f32.partialorder %v752_v9, %v759_v34  ;;  %v984_v44 = vrot.slane %v983_v45, 1  ;;  %vm324_vm13 = vcmp.eq.f32.partialorder %v4719_v25, %v323_v11 }
 0x27a   :  { %v761_v40 = vsel %vm760_vm6, %v4719_v25, 8.0  ;;  %v539_v15 = vrot.slane %v538_v10, 2  ;;  %v4734_v42 = vpop.f32.mrb[8].mxu1 }
 0x27b   :  { %v762_v13 = vsel %vm307_vm12, %v761_v40, inf  ;;  %v985_v51 = vmax.f32 %v983_v45, %v984_v44 }
 0x27c   :  { %v763_v4 = vrot.slane %v762_v13, 4  ;;  %v540_v18 = vmin.f32 %v538_v10, %v539_v15  ;;  %v4741_v15 = vpop.f32.mrb[9].mxu1 }
 0x27d   :  { %vm986_vm2 = vcmp.eq.f32.partialorder %v978_v14, %v985_v51  ;;  %v2563_v14 = vsel %vm324_vm13, 1.0, %v5642_v61  ;;  %v1786_v51 = vld [vmem:[%s5376_s3] sm:$0xff] }
 0x27e   :  { %v764_v21 = vmin.f32 %v762_v13, %v763_v4  ;;  %v987_v22 = vsel %vm986_vm2, %v4719_v25, 8.0  ;;  %v541_v54 = vrot.slane %v540_v18, 1  ;;  %v4736_v13 = vpop.f32.mrb[8].mxu0 }
 0x27f   :  { %v988_v60 = vsel %vm307_vm12, %v987_v22, inf  ;;  %v4743_v4 = vpop.f32.mrb[9].mxu0 }
 0x280   :  { %v765_v9 = vrot.slane %v764_v21, 2  ;;  %v989_v41 = vrot.slane %v988_v60, 4  ;;  %v542_v47 = vmin.f32 %v540_v18, %v541_v54  ;;  %v4749_v11 = vpop.f32.mrb[10].mxu0 }
 0x282   :  { %v766_v28 = vmin.f32 %v764_v21, %v765_v9  ;;  %v990_v24 = vmin.f32 %v988_v60, %v989_v41  ;;  %vm543_vm5 = vcmp.eq.f32.partialorder %v4719_v25, %v542_v47  ;;  %v1772_v9 = vld [vmem:[%s5377_s2] sm:$0xff]  ;;  %v4756_v41 = vpop.f32.mrb[11].mxu0 }
 0x283   :  { %v2575_v31 = vsel %vm543_vm5, 1.0, %v5642_v61 }
 0x284   :  { %v991_v34 = vrot.slane %v990_v24, 2  ;;  %v767_v45 = vrot.slane %v766_v28, 1  ;;  %v3161_v44 = vpack.i.bf16 %v2575_v31, %v2563_v14  ;;  %v5859_v31 = vld [vmem:[#allocation24_spill] sm:$0xff] }
 0x286   :  { %v992_v30 = vmin.f32 %v990_v24, %v991_v34  ;;  %v768_v10 = vmin.f32 %v766_v28, %v767_v45  ;;  %3162 = vperm.xlu0 %3160, %v3161_v44   ;;  %v5857_v24 = vld [vmem:[#allocation27_spill] sm:$0xff]  ;;  %v5858_v34 = vld [vmem:[#allocation32_spill] sm:$0xff] }
 0x287   :  { %v88_v47 = vshra.s32 %v5857_v24, 8  ;;  %v87_v45 = vshra.s32 %v5858_v34, 8  ;;  %v85_v24 = vshra.s32 %v3530_v38, 8 }
 0x288   :  { %v993_v40 = vrot.slane %v992_v30, 1  ;;  %vm769_vm12 = vcmp.eq.f32.partialorder %v4719_v25, %v768_v10 }
 0x289   :  { %v2587_v18 = vsel %vm769_vm12, 1.0, %v5642_v61  ;;  %vm549_vm9 = vcmp.eq.s32.totalorder %v88_v47, 1  ;;  %vm775_vm8 = vcmp.eq.s32.totalorder %v88_v47, 2  ;;  %vm1001_vm0 = vcmp.eq.s32.totalorder %v88_v47, 3 }
 0x28a   :  { %v994_v6 = vmin.f32 %v992_v30, %v993_v40  ;;  %1789 = vperm.xlu0 %3160, %v1786_v51   ;;  %v89_v30 = vshra.s32 %v5859_v31, 8  ;;  %vm329_vm3 = vcmp.eq.s32.totalorder %v87_v45, 0  ;;  %vm548_vm4 = vcmp.eq.s32.totalorder %v87_v45, 1 }
 0x28b   :  { %vm1000_vm11 = vcmp.eq.s32.totalorder %v87_v45, 3  ;;  %v92_v31 = vshra.s32 %v4276_v1, 8 }
 0x28c   :  { %vm995_vm6 = vcmp.eq.f32.partialorder %v4719_v25, %v994_v6  ;;  %v4751_v60 = vpop.f32.mrb[10].mxu1  ;;  %v5856_v25 = vld [vmem:[#allocation3_spill] sm:$0xff]  ;;  %v2579_v6 = vsel %vm549_vm9, 1.0, %v5642_v61 }
 0x28d   :  { %v2599_v21 = vsel %vm995_vm6, 1.0, %v5642_v61  ;;  %v4758_v54 = vpop.f32.mrb[11].mxu1  ;;  %v86_v28 = vshra.s32 %v5856_v25, 8  ;;  %vm330_vm6 = vcmp.eq.s32.totalorder %v88_v47, 0  ;;  %v2578_v47 = vsel %vm548_vm4, 1.0, %v5642_v61 }
 0x28e   :  { %v3167_v22 = vpack.i.bf16 %v2599_v21, %v2587_v18  ;;  %v2567_v51 = vsel %vm330_vm6, 1.0, %v5642_v61  ;;  %v91_v18 = vshra.s32 %v4290_v0, 8  ;;  %v4778_v21 = vsel %vm775_vm8, 1.0, %v5642_v61 }
 0x28f   :  { %vm328_vm2 = vcmp.eq.s32.totalorder %v86_v28, 0  ;;  %vm547_vm13 = vcmp.eq.s32.totalorder %v86_v28, 1  ;;  %vm773_vm5 = vcmp.eq.s32.totalorder %v86_v28, 2  ;;  %vm999_vm12 = vcmp.eq.s32.totalorder %v86_v28, 3 }
 0x290   :  { %3168 = vperm.xlu1 %3166, %v3167_v22   ;;  %v2565_v14 = vsel %vm328_vm2, 1.0, %v5642_v61  ;;  %v4766_v44 = vsel %vm547_vm13, 1.0, %v5642_v61  ;;  %v4769_v10 = vsel %vm773_vm5, 1.0, %v5642_v61  ;;  %v4772_v40 = vsel %vm999_vm12, 1.0, %v5642_v61 }
 0x291   :  { %vm774_vm2 = vcmp.eq.s32.totalorder %v87_v45, 2  ;;  %v4781_v22 = vsel %vm1001_vm0, 1.0, %v5642_v61  ;;  %vm331_vm13 = vcmp.eq.s32.totalorder %v89_v30, 0  ;;  %v2566_v28 = vsel %vm329_vm3, 1.0, %v5642_v61 }
 0x292   :  { %vm550_vm5 = vcmp.eq.s32.totalorder %v89_v30, 1  ;;  %vm776_vm12 = vcmp.eq.s32.totalorder %v89_v30, 2  ;;  %v4788_v34 = vsel %vm774_vm2, 1.0, %v5642_v61  ;;  %v4791_v0 = vsel %vm1000_vm11, 1.0, %v5642_v61 }
 0x293   :  { %vm1002_vm8 = vcmp.eq.s32.totalorder %v89_v30, 3  ;;  %v2568_v45 = vsel %vm331_vm13, 1.0, %v5642_v61  ;;  %vm333_vm0 = vcmp.eq.s32.totalorder %v91_v18, 0  ;;  %vm552_vm9 = vcmp.eq.s32.totalorder %v91_v18, 1 }
 0x294   :  { %1775 = vperm.xlu1 %3166, %v1772_v9   ;;  %v5860_v9 = vld [vmem:[#allocation23_spill] sm:$0xff]  ;;  %v4797_v35 = vsel %vm776_vm12, 1.0, %v5642_v61  ;;  %vm778_vm3 = vcmp.eq.s32.totalorder %v91_v18, 2  ;;  %vm1004_vm4 = vcmp.eq.s32.totalorder %v91_v18, 3  ;;  %vm327_vm6 = vcmp.eq.s32.totalorder %v85_v24, 0 }
 0x295   :  { %v90_v25 = vshra.s32 %v5860_v9, 8  ;;  %v2580_v9 = vsel %vm550_vm5, 1.0, %v5642_v61  ;;  %vm546_vm2 = vcmp.eq.s32.totalorder %v85_v24, 1  ;;  %v4800_v55 = vsel %vm1002_vm8, 1.0, %v5642_v61 }
 0x296   :  { %v2570_v30 = vsel %vm333_vm0, 1.0, %v5642_v61  ;;  %v2582_v1 = vsel %vm552_vm9, 1.0, %v5642_v61  ;;  %vm772_vm11 = vcmp.eq.s32.totalorder %v85_v24, 2  ;;  %v2594_v59 = vsel %vm778_vm3, 1.0, %v5642_v61 }
 0x297   :  { %vm332_vm14 = vcmp.eq.s32.totalorder %v90_v25, 0  ;;  %vm551_vm15 = vcmp.eq.s32.totalorder %v90_v25, 1  ;;  %v4806_v46 = vsel %vm1004_vm4, 1.0, %v5642_v61  ;;  %vm998_vm13 = vcmp.eq.s32.totalorder %v85_v24, 3 }
 0x298   :  { %vm334_vm5 = vcmp.eq.s32.totalorder %v92_v31, 0  ;;  %v2564_v32 = vsel %vm327_vm6, 1.0, %v5642_v61  ;;  %v2576_v56 = vsel %vm546_vm2, 1.0, %v5642_v61  ;;  %v2569_v23 = vsel %vm332_vm14, 1.0, %v5642_v61 }
 0x299   :  { %v2581_v63 = vsel %vm551_vm15, 1.0, %v5642_v61  ;;  %v2588_v48 = vsel %vm772_vm11, 1.0, %v5642_v61  ;;  %vm553_vm12 = vcmp.eq.s32.totalorder %v92_v31, 1  ;;  %v2600_v62 = vsel %vm998_vm13, 1.0, %v5642_v61 }
 0x29a   :  { %vm777_vm8 = vcmp.eq.s32.totalorder %v90_v25, 2  ;;  %vm1003_vm0 = vcmp.eq.s32.totalorder %v90_v25, 3  ;;  %v2571_v24 = vsel %vm334_vm5, 1.0, %v5642_v61  ;;  %vm779_vm9 = vcmp.eq.s32.totalorder %v92_v31, 2 }
 0x29b   :  { %vm1005_vm3 = vcmp.eq.s32.totalorder %v92_v31, 3  ;;  %v2593_v5 = vsel %vm777_vm8, 1.0, %v5642_v61  ;;  %vm5861_vm14 = vcmp.lt.s32.totalorder %v3530_v38, 17  ;;  %vm5864_vm6 = vcmp.lt.s32.totalorder %v3530_v38, 16 }
 0x29c   :  { %vm5862_vm15 = vmmov %vm5861_vm14  ;;  %vm5869_vm5 = vnez %v5662_v20 }
 0x29d   :  { %vm5863_vm4 = vmmov %vm5861_vm14 }
 0x29e   :  { %vm5865_vm2 = vmmov %vm5864_vm6 }
 0x29f   :  { %vm5866_vm11 = vmmov %vm5865_vm2 }
 0x2a0   :  { %vm5871_vm8 = vmmov %vm5863_vm4 }
 0x305   :  { %v3163_v18 = vpop.permute.xlu0 %3162 }
 0x306   :  { %v3165_v7 = vunpack.i.h.bf16 %v3163_v18  ;;  %v3164_v49 = vunpack.i.l.bf16 %v3163_v18 }
 0x308   :  { %v356_v39 = vmul.f32 %v3164_v49, %v2564_v32  ;;  %v357_v52 = vmul.f32 %v3164_v49, %v2565_v14  ;;  %v358_v57 = vmul.f32 %v3164_v49, %v2566_v28  ;;  %v359_v53 = vmul.f32 %v3164_v49, %v2567_v51 }
 0x309   :  { %v575_v17 = vmul.f32 %v3165_v7, %v2576_v56  ;;  %v576_v33 = vmul.f32 %v3165_v7, %v4766_v44  ;;  %v360_v50 = vmul.f32 %v3164_v49, %v2568_v45  ;;  %v577_v18 = vmul.f32 %v3165_v7, %v2578_v47  ;;  %v1790_v31 = vpop.permute.xlu0 %1789 }
 0x30a   :  { %v578_v43 = vmul.f32 %v3165_v7, %v2579_v6  ;;  %v579_v27 = vmul.f32 %v3165_v7, %v2580_v9  ;;  %v362_v8 = vmul.f32 %v3164_v49, %v2570_v30  ;;  %v581_v2 = vmul.f32 %v3165_v7, %v2582_v1 }
 0x30b   :  { %v361_v16 = vmul.f32 %v3164_v49, %v2569_v23  ;;  %v580_v58 = vmul.f32 %v3165_v7, %v2581_v63  ;;  %v2605_v32 = vsel %vm1003_vm0, 1.0, %v5642_v61  ;;  %v2583_v14 = vsel %vm553_vm12, 1.0, %v5642_v61  ;;  %vm5870_vm12 = vmmov %vm5865_vm2 }
 0x30c   :  { %v4824_v56 = vsel %vm779_vm9, 1.0, %v5642_v61  ;;  %v583_v51 = vadd.f32 %v575_v17, %v356_v39  ;;  %v584_v6 = vadd.f32 %v576_v33, %v357_v52  ;;  %v585_v28 = vadd.f32 %v577_v18, %v358_v57 }
 0x30d   :  { %v4828_v63 = vsel %vm1005_vm3, 1.0, %v5642_v61  ;;  %v586_v25 = vadd.f32 %v578_v43, %v359_v53  ;;  %v587_v45 = vadd.f32 %v579_v27, %v360_v50  ;;  %v589_v9 = vadd.f32 %v581_v2, %v362_v8 }
 0x30e   :  { %v588_v30 = vadd.f32 %v580_v58, %v361_v16  ;;  %v363_v1 = vmul.f32 %v3164_v49, %v2571_v24  ;;  %v582_v12 = vmul.f32 %v3165_v7, %v2583_v14  ;;  %vm5872_vm0 = vnez %v5689_v36 }
 0x30f   :  { %v3169_v44 = vpop.permute.xlu1 %3168  ;;  %vm5875_vm3 = vcmp.lt.s32.totalorder %v3530_v38, 15 }
 0x310   :  { %v4830_v23 = vunpack.i.h.bf16 %v3169_v44  ;;  %v4832_v47 = vunpack.i.l.bf16 %v3169_v44 }
 0x312   :  { %v801_v26 = vmul.f32 %v4832_v47, %v2588_v48  ;;  %v802_v33 = vmul.f32 %v4832_v47, %v4769_v10  ;;  %v803_v17 = vmul.f32 %v4832_v47, %v4788_v34  ;;  %v804_v52 = vmul.f32 %v4832_v47, %v4778_v21 }
 0x313   :  { %v805_v57 = vmul.f32 %v4832_v47, %v4797_v35  ;;  %v807_v43 = vmul.f32 %v4832_v47, %v2594_v59  ;;  %v1027_v50 = vmul.f32 %v4830_v23, %v2600_v62  ;;  %v1028_v58 = vmul.f32 %v4830_v23, %v4772_v40  ;;  %v1776_v48 = vpop.permute.xlu1 %1775 }
 0x314   :  { %v809_v16 = vadd.f32 %v801_v26, %v583_v51  ;;  %v810_v2 = vadd.f32 %v802_v33, %v584_v6  ;;  %v811_v53 = vadd.f32 %v803_v17, %v585_v28  ;;  %v812_v8 = vadd.f32 %v804_v52, %v586_v25 }
 0x315   :  { %v813_v27 = vadd.f32 %v805_v57, %v587_v45  ;;  %v815_v39 = vadd.f32 %v807_v43, %v589_v9  ;;  %v1029_v49 = vmul.f32 %v4830_v23, %v4791_v0  ;;  %v1030_v7 = vmul.f32 %v4830_v23, %v4781_v22 }
 0x316   :  { %v1031_v59 = vmul.f32 %v4830_v23, %v4800_v55  ;;  %v1033_v62 = vmul.f32 %v4830_v23, %v4806_v46  ;;  %v1035_v35 = vadd.f32 %v1027_v50, %v809_v16  ;;  %v1036_v10 = vadd.f32 %v1028_v58, %v810_v2 }
 0x317   :  { %v1037_v26 = vadd.f32 %v1029_v49, %v811_v53  ;;  %v1038_v40 = vadd.f32 %v1030_v7, %v812_v8  ;;  %v1778_v21 = vmul.f32 %v1776_v48, %v4736_v13  ;;  %v1779_v34 = vmul.f32 %v1776_v48, %v4743_v4 }
 0x318   :  { %v1039_v24 = vadd.f32 %v1031_v59, %v813_v27  ;;  %v1041_v0 = vadd.f32 %v1033_v62, %v815_v39  ;;  %v1780_v18 = vmul.f32 %v1776_v48, %v4734_v42  ;;  %v1781_v22 = vmul.f32 %v1776_v48, %v4741_v15  ;;  %v2518_v62 = vld [vmem:[%s5378_s6] sm:$0xff] }
 0x319   :  { %v1782_v55 = vmul.f32 %v1776_v48, %v4749_v11  ;;  %v1784_v14 = vmul.f32 %v1776_v48, %v4751_v60  ;;  %v1792_v46 = vadd.f32 %v1790_v31, %v1778_v21  ;;  %v1793_v44 = vadd.f32 %v1790_v31, %v1779_v34 }
 0x31a   :  { %v1794_v51 = vadd.f32 %v1790_v31, %v1780_v18  ;;  %v1795_v6 = vadd.f32 %v1790_v31, %v1781_v22  ;;  %v806_v28 = vmul.f32 %v4832_v47, %v2593_v5  ;;  %v1032_v13 = vmul.f32 %v4830_v23, %v2605_v32 }
 0x31b   :  { %v1796_v4 = vadd.f32 %v1790_v31, %v1782_v55  ;;  %v1798_v25 = vadd.f32 %v1790_v31, %v1784_v14  ;;  %v1800_v45 = vmax.f32 %v1792_v46, 0.0  ;;  %v1801_v9 = vmax.f32 %v1793_v44, 0.0 }
 0x31c   :  { %v1802_v33 = vmax.f32 %v1794_v51, 0.0  ;;  %v1803_v42 = vmax.f32 %v1795_v6, 0.0  ;;  %v814_v17 = vadd.f32 %v806_v28, %v588_v30  ;;  %v1783_v15 = vmul.f32 %v1776_v48, %v4756_v41 }
 0x31d   :  { %v1804_v11 = vmax.f32 %v1796_v4, 0.0  ;;  %v1806_v52 = vmax.f32 %v1798_v25, 0.0  ;;  %v4864_v60 = vmul.f32 %v1800_v45, %v1035_v35  ;;  %v4866_v57 = vmul.f32 %v1801_v9, %v1036_v10  ;;  %v2504_v35 = vld [vmem:[%s5379_s5] sm:$0xff] }
 0x31e   :  { %v4868_v43 = vmul.f32 %v1802_v33, %v1037_v26  ;;  %v4870_v5 = vmul.f32 %v1803_v42, %v1038_v40  ;;  %v1797_v32 = vadd.f32 %v1790_v31, %v1783_v15  ;;  %v590_v50 = vadd.f32 %v582_v12, %v363_v1  ;;  %v5867_v15 = vld [vmem:[#allocation6_spill] sm:$0xff] }
 0x31f   :  { %v4872_v58 = vmul.f32 %v1804_v11, %v1039_v24  ;;  %v4874_v16 = vmul.f32 %v1806_v52, %v1041_v0  ;;  %v1040_v2 = vadd.f32 %v1032_v13, %v814_v17  ;;  %v808_v41 = vmul.f32 %v4832_v47, %v4824_v56 }
 0x320   :  { %v1805_v30 = vmax.f32 %v1797_v32, 0.0  ;;  %v1785_v53 = vmul.f32 %v1776_v48, %v4758_v54  ;;  %v3172_v8 = vpack.i.bf16 %v4866_v57, %v4864_v60  ;;  %v3177_v27 = vpack.i.bf16 %v4870_v5, %v4868_v43 }
 0x321   :  { %v816_v39 = vadd.f32 %v808_v41, %v590_v50  ;;  %v1034_v12 = vmul.f32 %v4830_v23, %v4828_v63  ;;  %v3232_v63 = vpack.i.bf16 %v4872_v58, %v4870_v5  ;;  %v3227_v23 = vpack.i.bf16 %v4868_v43, %v4866_v57 }
 0x322   :  { %v4883_v49 = vmul.f32 %v1805_v30, %v1040_v2  ;;  %v1799_v1 = vadd.f32 %v1790_v31, %v1785_v53  ;;  %3173 = vrot.lane.b32.xlu1 %v3172_v8, %s3311_s27  ;;  %3178 = vrot.lane.b32.xlu0 %v3177_v27, %s3311_s27  ;;  %vm5868_vm13 = vnez %v5867_v15  ;;  %v5873_v53 = vld [vmem:[#allocation11_spill] sm:$0xff] }
 0x323   :  { %v1042_v56 = vadd.f32 %v1034_v12, %v816_v39  ;;  %vm5874_vm9 = vnez %v5873_v53  ;;  %v5904_v53 = vld [vmem:[#allocation40_spill] sm:$0xff] }
 0x324   :  { %v1807_v47 = vmax.f32 %v1799_v1, 0.0  ;;  %v3257_v7 = vpack.i.bf16 %v4874_v16, %v4883_v49  ;;  %v3272_v59 = vpack.i.bf16 %v4883_v49, %v4872_v58 }
 0x326   :  { %v4889_v54 = vmul.f32 %v1807_v47, %v1042_v56  ;;  %3183 = vrot.lane.b32.xlu1 %v3172_v8, %s3310_s26  ;;  %3188 = vrot.lane.b32.xlu0 %v3177_v27, %s3310_s26 }
 0x328   :  { %v3197_v48 = vpack.i.bf16 %v4872_v58, %v4889_v54 }
 0x32a   :  { %3198 = vrot.lane.b32.xlu0 %v3197_v48, %s3310_s26  ;;  %3193 = vrot.lane.b32.xlu1 %v3197_v48, %s3311_s27 }
 0x32e   :  { %3208 = vrot.lane.b32.xlu0 %v3177_v27, %s3312_s28  ;;  %3203 = vrot.lane.b32.xlu1 %v3172_v8, %s3312_s28 }
 0x332   :  { %3218 = vrot.lane.b32.xlu0 %v3177_v27, %s3313_s29  ;;  %3213 = vrot.lane.b32.xlu1 %v3172_v8, %s3313_s29 }
 0x336   :  { %1950 = vrot.lane.b32.xlu0 %v4889_v54, %s3313_s29  ;;  %3223 = vrot.lane.b32.xlu1 %v3197_v48, %s3312_s28 }
 0x33a   :  { %3233 = vrot.lane.b32.xlu0 %v3232_v63, %s3314_s30  ;;  %3228 = vrot.lane.b32.xlu1 %v3227_v23, %s3314_s30 }
 0x33e   :  { %3238 = vrot.lane.b32.xlu0 %v3227_v23, %s3315_s14  ;;  %1984 = vrot.lane.b32.xlu1 %v4864_v60, %s3314_s30 }
 0x342   :  { %3248 = vrot.lane.b32.xlu0 %v3227_v23, %s3316_s15  ;;  %3243 = vrot.lane.b32.xlu1 %v3232_v63, %s3315_s14 }
 0x346   :  { %2024 = vrot.lane.b32.xlu0 %v4864_v60, %s3315_s14  ;;  %3253 = vrot.lane.b32.xlu1 %v3232_v63, %s3316_s15 }
 0x34a   :  { %3258 = vrot.lane.b32.xlu0 %v3257_v7, %s3311_s27  ;;  %2064 = vrot.lane.b32.xlu1 %v4864_v60, %s3316_s15 }
 0x34e   :  { %2106 = vrot.lane.b32.xlu0 %v4866_v57, %s3317_s7  ;;  %3263 = vrot.lane.b32.xlu1 %v3257_v7, %s3310_s26 }
 0x352   :  { %2110 = vrot.lane.b32.xlu0 %v4870_v5, %s3317_s7  ;;  %2108 = vrot.lane.b32.xlu1 %v4868_v43, %s3317_s7 }
 0x356   :  { %2104 = vrot.lane.b32.xlu0 %v4864_v60, %s3317_s7  ;;  %2112 = vrot.lane.b32.xlu1 %v4872_v58, %s3317_s7 }
 0x35a   :  { %3273 = vrot.lane.b32.xlu0 %v3272_v59, %s3313_s29  ;;  %3268 = vrot.lane.b32.xlu1 %v3257_v7, %s3312_s28 }
 0x35e   :  { %3278 = vrot.lane.b32.xlu0 %v3257_v7, %s3314_s30  ;;  %1948 = vrot.lane.b32.xlu1 %v4874_v16, %s3313_s29 }
 0x362   :  { %3283 = vrot.lane.b32.xlu0 %v3257_v7, %s3315_s14  ;;  %1998 = vrot.lane.b32.xlu1 %v4889_v54, %s3314_s30 }
 0x366   :  { %3288 = vrot.lane.b32.xlu0 %v3257_v7, %s3316_s15  ;;  %2038 = vrot.lane.b32.xlu1 %v4889_v54, %s3315_s14 }
 0x36a   :  { %2114 = vrot.lane.b32.xlu0 %v4883_v49, %s3317_s7  ;;  %2078 = vrot.lane.b32.xlu1 %v4889_v54, %s3316_s15 }
 0x36e   :  { %2118 = vrot.lane.b32.xlu0 %v4889_v54, %s3317_s7  ;;  %2116 = vrot.lane.b32.xlu1 %v4874_v16, %s3317_s7 }
 0x372   :  { %2521 = vperm.xlu0 %3160, %v2518_v62   ;;  %2507 = vperm.xlu1 %3166, %v2504_v35  }
 0x394   :  { %v3174_v10 = vpop.permute.xlu1 %3173  ;;  %v4961_v26 = vpop.permute.xlu0 %3178 }
 0x395   :  { %v3176_v40 = vunpack.i.h.bf16 %v3174_v10  ;;  %v3175_v21 = vunpack.i.l.bf16 %v3174_v10  ;;  %v3181_v34 = vunpack.i.h.bf16 %v4961_v26  ;;  %v3180_v31 = vunpack.i.l.bf16 %v4961_v26 }
 0x397   :  { %v1838_v46 = vsel %vm5861_vm14, %v3175_v21, %v3176_v40  ;;  %v1836_v44 = vsel %vm5862_vm15, %v3180_v31, %v3181_v34  ;;  %v1837_v51 = vsel %vm5863_vm4, %v3176_v40, %v3180_v31  ;;  %vm5876_vm14 = vmmov %vm5875_vm3  ;;  %vm5878_vm4 = vcmp.lt.s32.totalorder %v3530_v38, 1 }
 0x398   :  { %v3184_v24 = vpop.permute.xlu1 %3183  ;;  %v4965_v0 = vpop.permute.xlu0 %3188  ;;  %vm5877_vm15 = vmmov %vm5875_vm3 }
 0x399   :  { %v3186_v18 = vunpack.i.h.bf16 %v3184_v24  ;;  %v3185_v22 = vunpack.i.l.bf16 %v3184_v24  ;;  %v3191_v55 = vunpack.i.h.bf16 %v4965_v0  ;;  %v3190_v14 = vunpack.i.l.bf16 %v4965_v0  ;;  %v5881_v24 = vld [vmem:[#allocation4_spill] sm:$0xff]  ;;  %v5161_v0 = vld [vmem:[%s5380_s4] sm:$0xff] }
 0x39b   :  { %v1878_v6 = vsel %vm5864_vm6, %v3185_v22, %v3186_v18  ;;  %v1876_v28 = vsel %vm5865_vm2, %v3190_v14, %v3191_v55  ;;  %v1877_v13 = vsel %vm5866_vm11, %v3186_v18, %v3190_v14  ;;  %vm5879_vm6 = vmmov %vm5878_vm4  ;;  %vm5882_vm11 = vnez %v5881_v24  ;;  %v5883_v18 = vld [vmem:[#allocation9_spill] sm:$0xff] }
 0x39c   :  { %v2924_v4 = vpack.c.bf16 %v1878_v6, %v1838_v46  ;;  %v2948_v25 = vpack.c.bf16 %v1876_v28, %v1836_v44  ;;  %v2951_v45 = vpack.c.bf16 %v1877_v13, %v1837_v51  ;;  %v4985_v9 = vpop.permute.xlu0 %3198  ;;  %v4987_v33 = vpop.permute.xlu1 %3193  ;;  %vm5880_vm2 = vmmov %vm5878_vm4  ;;  %v5893_v13 = vld [vmem:[#allocation7_spill] sm:$0xff] }
 0x39d   :  { %v3200_v42 = vunpack.i.l.bf16 %v4985_v9  ;;  %v3195_v17 = vunpack.i.l.bf16 %v4987_v33 }
 0x39e   :  { %2926 = vmatprep.subr.msk.bf16.mxu0 %vm5868_vm13, %v2924_v4  ;;  %2950 = vmatprep.subr.msk.bf16.mxu1 %vm5869_vm5, %v2948_v25  ;;  %vm5884_vm13 = vnez %v5883_v18  ;;  %v5895_v4 = vld [vmem:[#allocation13_spill] sm:$0xff] }
 0x39f   :  { %v1879_v11 = vsel %vm5870_vm12, %v3200_v42, %v3185_v22  ;;  %v1839_v52 = vsel %vm5871_vm8, %v3195_v17, %v3175_v21  ;;  %2953 = vmatpush1.bf16.msk.msra.mxu1 %vm5872_vm0, %v2951_v45  ;;  %vm5885_vm5 = vmpackc.low %vm5882_vm11, %vm5884_vm13  ;;  %vm5886_vm12 = vnez %v5633_v29  ;;  %vm5887_vm8 = vnez %v5665_v3 }
 0x3a0   :  { %v2927_v32 = vpack.c.bf16 %v1879_v11, %v1839_v52  ;;  %v5005_v50 = vpop.permute.xlu0 %3208  ;;  %v3204_v2 = vpop.permute.xlu1 %3203  ;;  %vm5888_vm0 = vmpackc.low %vm5886_vm12, %vm5887_vm8  ;;  %vm5898_vm13 = vcmp.lt.s32.totalorder %v3530_v38, 127 }
 0x3a1   :  { %v3211_v20 = vunpack.i.h.bf16 %v5005_v50  ;;  %v3210_v41 = vunpack.i.l.bf16 %v5005_v50  ;;  %v3206_v30 = vunpack.i.h.bf16 %v3204_v2  ;;  %v3205_v8 = vunpack.i.l.bf16 %v3204_v2 }
 0x3a2   :  { %2929 = vmatpush1.bf16.msk.msra.mxu0 %vm5874_vm9, %v2927_v32  ;;  %vm5889_vm9 = vmmov %vm5880_vm2 }
 0x3a3   :  { %v1916_v47 = vsel %vm5875_vm3, %v3210_v41, %v3211_v20  ;;  %v1917_v48 = vsel %vm5876_vm14, %v3206_v30, %v3210_v41  ;;  %v1918_v63 = vsel %vm5877_vm15, %v3205_v8, %v3206_v30  ;;  %vm5890_vm14 = vnez %v5648_v19  ;;  %v5902_v30 = vld [vmem:[#allocation20_spill] sm:$0xff] }
 0x3a4   :  { %v5011_v27 = vpop.permute.xlu0 %3218  ;;  %v3214_v39 = vpop.permute.xlu1 %3213  ;;  %vm5891_vm15 = vnez %v5686_v37 }
 0x3a5   :  { %v3221_v12 = vunpack.i.h.bf16 %v5011_v27  ;;  %v3220_v36 = vunpack.i.l.bf16 %v5011_v27  ;;  %v3216_v1 = vunpack.i.h.bf16 %v3214_v39  ;;  %v3215_v56 = vunpack.i.l.bf16 %v3214_v39 }
 0x3a7   :  { %v1956_v23 = vsel %vm5878_vm4, %v3220_v36, %v3221_v12  ;;  %v1957_v7 = vsel %vm5879_vm6, %v3216_v1, %v3220_v36  ;;  %v1958_v59 = vsel %vm5880_vm2, %v3215_v56, %v3216_v1  ;;  %vm5892_vm4 = vmpackc.low %vm5890_vm14, %vm5891_vm15  ;;  %vm5894_vm6 = vnez %v5893_v13  ;;  %v5907_v36 = vld [vmem:[#allocation21_spill] sm:$0xff] }
 0x3a8   :  { %v2954_v62 = vpack.c.bf16 %v1956_v23, %v1916_v47  ;;  %v2930_v35 = vpack.c.bf16 %v1958_v59, %v1918_v63  ;;  %v2957_v10 = vpack.c.bf16 %v1957_v7, %v1917_v48  ;;  %v5031_v40 = vpop.permute.xlu0 %1950  ;;  %v5033_v21 = vpop.permute.xlu1 %3223  ;;  %vm5896_vm2 = vnez %v5895_v4 }
 0x3a9   :  { %v3225_v31 = vunpack.i.l.bf16 %v5033_v21  ;;  %v1959_v22 = vsel %vm5889_vm9, %v5031_v40, %v3215_v56  ;;  %vm5897_vm11 = vmpackc.low %vm5894_vm6, %vm5896_vm2  ;;  %vm5905_vm9 = vnez %v5904_v53  ;;  %vm5909_vm14 = vcmp.lt.s32.totalorder %v3530_v38, 113 }
 0x3aa   :  { %2932 = vmatprep.subr.msk.bf16.mxu0 %vm5885_vm5, %v2930_v35  ;;  %2956 = vmatprep.subr.msk.bf16.mxu1 %vm5888_vm0, %v2954_v62  ;;  %vm5899_vm5 = vmmov %vm5898_vm13  ;;  %vm5903_vm0 = vnez %v5902_v30  ;;  %vm5910_vm15 = vcmp.lt.s32.totalorder %v3530_v38, 112 }
 0x3ab   :  { %v1919_v14 = vsel %vm5875_vm3, %v3225_v31, %v3205_v8  ;;  %2959 = vmatpush1.bf16.msk.msra.mxu1 %vm5892_vm4, %v2957_v10  ;;  %vm5900_vm12 = vmmov %vm5899_vm5  ;;  %vm5908_vm3 = vnez %v5907_v36  ;;  %v5911_v10 = vld [vmem:[#allocation22_spill] sm:$0xff] }
 0x3ac   :  { %v2933_v29 = vpack.c.bf16 %v1959_v22, %v1919_v14  ;;  %v5058_v46 = vpop.permute.xlu0 %3233  ;;  %v3229_v3 = vpop.permute.xlu1 %3228  ;;  %vm5901_vm8 = vmmov %vm5899_vm5 }
 0x3ad   :  { %v3236_v44 = vunpack.i.h.bf16 %v5058_v46  ;;  %v3235_v51 = vunpack.i.l.bf16 %v5058_v46  ;;  %v3231_v6 = vunpack.i.h.bf16 %v3229_v3  ;;  %v3230_v28 = vunpack.i.l.bf16 %v3229_v3  ;;  %vm5913_vm4 = vmmov %vm5909_vm14 }
 0x3ae   :  { %2935 = vmatpush1.bf16.msk.msra.mxu0 %vm5897_vm11, %v2933_v29  ;;  %vm5914_vm6 = vmmov %vm5913_vm4 }
 0x3af   :  { %v2003_v19 = vsel %vm5898_vm13, %v3235_v51, %v3236_v44  ;;  %v2004_v37 = vsel %vm5899_vm5, %v3231_v6, %v3235_v51  ;;  %v2005_v25 = vsel %vm5900_vm12, %v3230_v28, %v3231_v6  ;;  %vm5915_vm2 = vmmov %vm5910_vm15 }
 0x3b0   :  { %v2960_v45 = vpack.c.bf16 %v2003_v19, %v4870_v5  ;;  %v2963_v15 = vpack.c.bf16 %v2004_v37, %v4868_v43  ;;  %v2936_v11 = vpack.c.bf16 %v2005_v25, %v4866_v57  ;;  %v3239_v52 = vpop.permute.xlu0 %3238  ;;  %v5078_v32 = vpop.permute.xlu1 %1984  ;;  %vm5916_vm11 = vmmov %vm5915_vm2  ;;  %v5919_v19 = vld [vmem:[#allocation44_spill] sm:$0xff] }
 0x3b1   :  { %v2006_v2 = vsel %vm5901_vm8, %v5078_v32, %v3230_v28  ;;  %v3241_v5 = vunpack.i.h.bf16 %v3239_v52  ;;  %v3240_v8 = vunpack.i.l.bf16 %v3239_v52  ;;  %vm5917_vm13 = vmmov %vm5913_vm4  ;;  %vm5920_vm12 = vnez %v5919_v19 }
 0x3b2   :  { %v2939_v41 = vpack.c.bf16 %v2006_v2, %v4864_v60  ;;  %2938 = vmatprep.subr.msk.bf16.mxu0 %vm5903_vm0, %v2936_v11  ;;  %2962 = vmatprep.subr.msk.bf16.mxu1 %vm5905_vm9, %v2960_v45  ;;  %vm5918_vm5 = vmmov %vm5915_vm2  ;;  %v3201_v52 = vunpack.i.h.bf16 %v4985_v9  ;;  %v3196_v2 = vunpack.i.h.bf16 %v4987_v33  ;;  %vm5924_vm0 = vcmp.lt.s32.totalorder %v3530_v38, 111 }
 0x3b3   :  { %2965 = vmatpush1.bf16.msk.msra.mxu1 %vm5766_vm10, %v2963_v15  ;;  %v2045_v60 = vsel %vm5909_vm14, %v3240_v8, %v3241_v5  ;;  %vm5912_vm10 = vnez %v5911_v10  ;;  %v5922_v15 = vld [vmem:[#allocation14_spill] sm:$0xff]  ;;  %vm5927_vm9 = vcmp.lt.s32.totalorder %v3530_v38, 16  ;;  %vm5929_vm14 = vcmp.lt.s32.totalorder %v3530_v38, 17  ;;  %v5937_v10 = vld [vmem:[#allocation17_spill] sm:$0xff] }
 0x3b4   :  { %v3249_v57 = vpop.permute.xlu0 %3248  ;;  %v5090_v39 = vpop.permute.xlu1 %3243  ;;  %2941 = vmatpush1.bf16.msk.msra.mxu0 %vm5908_vm3, %v2939_v41  ;;  %vm5923_vm8 = vnez %v5922_v15  ;;  %vm5928_vm3 = vmmov %vm5927_vm9  ;;  %v5951_v15 = vld [vmem:[#allocation55_spill] sm:$0xff] }
 0x3b5   :  { %v3251_v1 = vunpack.i.h.bf16 %v3249_v57  ;;  %v3250_v56 = vunpack.i.l.bf16 %v3249_v57  ;;  %v3246_v48 = vunpack.i.h.bf16 %v5090_v39  ;;  %v3245_v63 = vunpack.i.l.bf16 %v5090_v39  ;;  %v5925_v57 = vld [vmem:[#allocation15_spill] sm:$0xff] }
 0x3b7   :  { %v2085_v47 = vsel %vm5910_vm15, %v3250_v56, %v3251_v1  ;;  %v2043_v24 = vsel %vm5913_vm4, %v3245_v63, %v3246_v48  ;;  %v2044_v18 = vsel %vm5914_vm6, %v3241_v5, %v3245_v63  ;;  %vm5930_vm15 = vmmov %vm5928_vm3 }
 0x3b8   :  { %v2942_v23 = vpack.c.bf16 %v2085_v47, %v2045_v60  ;;  %v5100_v7 = vpop.permute.xlu0 %2024  ;;  %v5102_v59 = vpop.permute.xlu1 %3253  ;;  %vm5932_vm4 = vmmov %vm5928_vm3 }
 0x3b9   :  { %v3256_v62 = vunpack.i.h.bf16 %v5102_v59  ;;  %v3255_v35 = vunpack.i.l.bf16 %v5102_v59  ;;  %v2046_v28 = vsel %vm5917_vm13, %v5100_v7, %v3240_v8  ;;  %vm5933_vm6 = vmmov %vm5924_vm0 }
 0x3ba   :  { %2944 = vmatprep.subr.msk.bf16.mxu0 %vm5912_vm10, %v2942_v23  ;;  %vm5931_vm10 = vmmov %vm5929_vm14 }
 0x3bb   :  { %v2083_v22 = vsel %vm5915_vm2, %v3255_v35, %v3256_v62  ;;  %v2084_v14 = vsel %vm5916_vm11, %v3251_v1, %v3255_v35  ;;  %v1875_v1 = vsel %vm5928_vm3, %v3191_v55, %v3201_v52  ;;  %vm5934_vm2 = vmmov %vm5924_vm0 }
 0x3bc   :  { %v2966_v29 = vpack.c.bf16 %v2083_v22, %v2043_v24  ;;  %v2969_v3 = vpack.c.bf16 %v2084_v14, %v2044_v18  ;;  %v3259_v51 = vpop.permute.xlu0 %3258  ;;  %v5120_v6 = vpop.permute.xlu1 %2064  ;;  %vm5935_vm11 = vmmov %vm5931_vm10  ;;  %v5939_v24 = vld [vmem:[#allocation46_spill] sm:$0xff]  ;;  %v3226_v22 = vunpack.i.h.bf16 %v5033_v21 }
 0x3bd   :  { %v2086_v13 = vsel %vm5918_vm5, %v5120_v6, %v3250_v56  ;;  %v3260_v5 = vunpack.i.l.bf16 %v3259_v51  ;;  %v3261_v43 = vunpack.i.h.bf16 %v3259_v51  ;;  %v1835_v56 = vsel %vm5929_vm14, %v3181_v34, %v3196_v2  ;;  %vm5936_vm13 = vmmov %vm5924_vm0  ;;  %v5963_v21 = vld [vmem:[#allocation38_spill] sm:$0xff] }
 0x3be   :  { %v2945_v4 = vpack.c.bf16 %v2086_v13, %v2046_v28  ;;  %2968 = vmatprep.subr.msk.bf16.mxu1 %vm5920_vm12, %v2966_v29  ;;  %vm5938_vm5 = vnez %v5937_v10  ;;  %vm5940_vm12 = vnez %v5939_v24  ;;  %v2975_v18 = vpack.c.bf16 %v1875_v1, %v1835_v56  ;;  %v5961_v1 = vld [vmem:[#allocation31_spill] sm:$0xff]  ;;  %v5985_v24 = vld [vmem:[#allocation42_spill] sm:$0xff] }
 0x3bf   :  { %2971 = vmatpush1.bf16.msk.msra.mxu1 %vm4379_vm7, %v2969_v3  ;;  %vm5926_vm7 = vnez %v5925_v57  ;;  %v1834_v26 = vsel %vm5931_vm10, %v3196_v2, %v3260_v5  ;;  %v5944_v3 = vld [vmem:[#allocation35_spill] sm:$0xff] }
 0x3c0   :  { %v2107_v25 = vpop.permute.xlu0 %2106  ;;  %v3264_v45 = vpop.permute.xlu1 %3263  ;;  %2947 = vmatpush1.bf16.msk.msra.mxu0 %vm5923_vm8, %v2945_v4  ;;  %vm5941_vm8 = vmmov %vm5931_vm10  ;;  %vm5954_vm10 = vcmp.lt.s32.totalorder %v3530_v38, 1 }
 0x3c1   :  { %v3265_v11 = vunpack.i.l.bf16 %v3264_v45  ;;  %v3266_v41 = vunpack.i.h.bf16 %v3264_v45  ;;  %v1833_v14 = vsel %vm5941_vm8, %v3260_v5, %v3261_v43  ;;  %v5949_v45 = vld [vmem:[#allocation54_spill] sm:$0xff]  ;;  %vm5964_vm8 = vnez %v5963_v21 }
 0x3c2   :  { %vm5950_vm14 = vnez %v5949_v45 }
 0x3c3   :  { %v1874_v36 = vsel %vm5927_vm9, %v3201_v52, %v3265_v11  ;;  %v1872_v60 = vsel %vm5930_vm15, %v3266_v41, %v3200_v42  ;;  %v1873_v34 = vsel %vm5932_vm4, %v3265_v11, %v3266_v41  ;;  %v1832_v42 = vsel %vm5935_vm11, %v3261_v43, %v3195_v17  ;;  %vm5955_vm4 = vmmov %vm5954_vm10  ;;  %v5989_v17 = vld [vmem:[#allocation36_spill] sm:$0xff] }
 0x3c4   :  { %v2111_v30 = vpop.permute.xlu0 %2110  ;;  %v2109_v53 = vpop.permute.xlu1 %2108  ;;  %v2972_v23 = vpack.c.bf16 %v1874_v36, %v1834_v26  ;;  %v2996_v33 = vpack.c.bf16 %v1872_v60, %v1832_v42  ;;  %v2999_v29 = vpack.c.bf16 %v1873_v34, %v1833_v14  ;;  %vm5953_vm15 = vcmp.lt.s32.totalorder %v3530_v38, 15  ;;  %v5970_v60 = vld [vmem:[#allocation39_spill] sm:$0xff]  ;;  %v5973_v42 = vld [vmem:[#allocation48_spill] sm:$0xff] }
 0x3c5   :  { %v2125_v8 = vsel %vm5924_vm0, %v2107_v25, %v2109_v53  ;;  %v2124_v35 = vsel %vm5936_vm13, %v2109_v53, %v2111_v30  ;;  %vm5942_vm0 = vcmask 588800   ;;  %v1915_v11 = vsel %vm5953_vm15, %v3211_v20, %v3226_v22  ;;  %vm5959_vm13 = vmmov %vm5955_vm4  ;;  %v5987_v14 = vld [vmem:[#allocation43_spill] sm:$0xff] }
 0x3c6   :  { %2694 = vmatprep.subr.msk.mxu0 %vm5926_vm7, %v2125_v8  ;;  %vm5945_vm7 = vnez %v5944_v3  ;;  %vm5946_vm9 = vmmov %vm5942_vm0 }
 0x3c8   :  { %v5154_v47 = vpop.permute.xlu0 %2104  ;;  %v5156_v63 = vpop.permute.xlu1 %2112 }
 0x3c9   :  { %v2126_v55 = vsel %vm5933_vm6, %v5154_v47, %v2107_v25  ;;  %v2123_v9 = vsel %vm5934_vm2, %v2111_v30, %v5156_v63  ;;  %v5947_v25 = vld [vmem:[#allocation37_spill] sm:$0xff]  ;;  %vm5956_vm6 = vmmov %vm5953_vm15  ;;  %vm5974_vm15 = vnez %v5973_v42 }
 0x3ca   :  { %2695 = vmatpush1.msk.msra.mxu0 %vm5938_vm5, %v2126_v55  ;;  %2710 = vmatprep.subr.msk.mxu1 %vm5940_vm12, %v2123_v9  ;;  %vm5948_vm3 = vnez %v5947_v25  ;;  %vm5957_vm2 = vmmov %vm5956_vm6  ;;  %vm5962_vm12 = vnez %v5961_v1  ;;  %v3304_v42 = vld [vmem:[%s5368_s0 + $0x10] sm:$0xff] }
 0x3cb   :  { %2612 = vmatmul.mubr.msk.f32.vlgmr.msra.gmra.mrb[12].mxu0 %vm5942_vm0, %v5161_v0  ;;  %2711 = vmatpush1.msk.msra.mxu1 %vm4436_vm1, %v2124_v35  ;;  %vm5952_vm1 = vnez %v5951_v15  ;;  %vm5958_vm11 = vmmov %vm5957_vm2  ;;  %v5980_v35 = vld [vmem:[#allocation50_spill] sm:$0xff] }
 0x3cc   :  { %2974 = vmatprep.subr.msk.bf16.mxu0 %vm5945_vm7, %v2972_v23  ;;  %v3274_v51 = vpop.permute.xlu0 %3273  ;;  %v3269_v28 = vpop.permute.xlu1 %3268  ;;  %2613 = vmatmul.mubr.msk.f32.vlgmr.msra.gmra.mrb[12].mxu1 %vm5946_vm9, %v5161_v0  ;;  %vm5960_vm5 = vmmov %vm5955_vm4  ;;  %vm5966_vm7 = vcmp.lt.s32.totalorder %v3530_v38, 127  ;;  %v5975_v23 = vld [vmem:[#allocation29_spill] sm:$0xff] }
 0x3cd   :  { %v3276_v13 = vunpack.i.h.bf16 %v3274_v51  ;;  %v3275_v4 = vunpack.i.l.bf16 %v3274_v51  ;;  %v3271_v19 = vunpack.i.h.bf16 %v3269_v28  ;;  %v3270_v37 = vunpack.i.l.bf16 %v3269_v28  ;;  %2977 = vmatpush1.bf16.msk.msra.mxu0 %vm5948_vm3, %v2975_v18  ;;  %2998 = vmatprep.subr.msk.bf16.mxu1 %vm5950_vm14, %v2996_v33  ;;  %vm5965_vm0 = vmpackc.low %vm5962_vm12, %vm5964_vm8  ;;  %v5991_v51 = vld [vmem:[#allocation26_spill] sm:$0xff] }
 0x3ce   :  { %3001 = vmatpush1.bf16.msk.msra.mxu1 %vm5952_vm1, %v2999_v29  ;;  %2426 = vmatprep.mubr.f32.mxu0 %v5642_v61  ;;  %vm5967_vm9 = vmmov %vm5966_vm7  ;;  %vm5971_vm14 = vnez %v5970_v60  ;;  %vm5986_vm12 = vnez %v5985_v24  ;;  %vm5988_vm8 = vnez %v5987_v14 }
 0x3cf   :  { %v1954_v52 = vsel %vm5954_vm10, %v3275_v4, %v3276_v13  ;;  %v1955_v2 = vsel %vm5955_vm4, %v3221_v12, %v3275_v4  ;;  %v1914_v41 = vsel %vm5956_vm6, %v3226_v22, %v3270_v37  ;;  %2497 = vmatprep.mubr.f32.mxu1 %v5642_v61  ;;  %v1912_v20 = vsel %vm5957_vm2, %v3271_v19, %v3225_v31  ;;  %vm5978_vm6 = vmmov %vm5966_vm7 }
 0x3d0   :  { %v2981_v30 = vpack.c.bf16 %v1955_v2, %v1915_v11  ;;  %v2978_v53 = vpack.c.bf16 %v1954_v52, %v1914_v41  ;;  %v3279_v5 = vpop.permute.xlu0 %3278  ;;  %v1949_v50 = vpop.permute.xlu1 %1948  ;;  %v1913_v27 = vsel %vm5958_vm11, %v3270_v37, %v3271_v19  ;;  %vm5976_vm10 = vnez %v5975_v23  ;;  %vm5979_vm2 = vmmov %vm5978_vm6  ;;  %v6001_v11 = vld [vmem:[#allocation49_spill] sm:$0xff]  ;;  %v6003_v52 = vld [vmem:[#allocation51_spill] sm:$0xff] }
 0x3d1   :  { %v3281_v8 = vunpack.i.h.bf16 %v3279_v5  ;;  %v3280_v43 = vunpack.i.l.bf16 %v3279_v5  ;;  %v1952_v12 = vsel %vm5959_vm13, %v1949_v50, %v5031_v40  ;;  %v1953_v61 = vsel %vm5960_vm5, %v3276_v13, %v1949_v50  ;;  %v5968_v40 = vld [vmem:[#allocation33_spill] sm:$0xff]  ;;  %vm5977_vm4 = vmpackc.low %vm5974_vm15, %vm5976_vm10  ;;  %v6012_v50 = vld [vmem:[#allocation52_spill] sm:$0xff] }
 0x3d2   :  { %v3002_v57 = vpack.c.bf16 %v1952_v12, %v1912_v20  ;;  %v3005_v36 = vpack.c.bf16 %v1953_v61, %v1913_v27  ;;  %2980 = vmatprep.subr.msk.bf16.mxu0 %vm5965_vm0, %v2978_v53  ;;  %vm5969_vm3 = vnez %v5968_v40  ;;  %vm5981_vm11 = vnez %v5980_v35  ;;  %v6009_v53 = vld [vmem:[#allocation10_spill] sm:$0xff]  ;;  %v6014_v20 = vld [vmem:[#allocation25_spill] sm:$0xff] }
 0x3d3   :  { %v2001_v31 = vsel %vm5966_vm7, %v3280_v43, %v3281_v8  ;;  %v2002_v56 = vsel %vm5967_vm9, %v3236_v44, %v3280_v43  ;;  %vm5972_vm1 = vmpackc.low %vm5969_vm3, %vm5971_vm14  ;;  %vm5990_vm0 = vnez %v5989_v17  ;;  %vm5992_vm7 = vnez %v5991_v51  ;;  %v6016_v27 = vld [vmem:[#allocation53_spill] sm:$0xff] }
 0x3d4   :  { %2983 = vmatpush1.bf16.msk.msra.mxu0 %vm5972_vm1, %v2981_v30  ;;  %v2984_v26 = vpack.c.bf16 %v2001_v31, %v4883_v49  ;;  %v2987_v34 = vpack.c.bf16 %v2002_v56, %v4872_v58  ;;  %v3284_v55 = vpop.permute.xlu0 %3283  ;;  %v1999_v9 = vpop.permute.xlu1 %1998  ;;  %3004 = vmatprep.subr.msk.bf16.mxu1 %vm5977_vm4, %v3002_v57  ;;  %v5982_v49 = vld [vmem:[#allocation56_spill] sm:$0xff]  ;;  %vm5993_vm9 = vcmp.lt.s32.totalorder %v3530_v38, 113  ;;  %vm5995_vm14 = vcmp.lt.s32.totalorder %v3530_v38, 112 }
 0x3d5   :  { %v2000_v46 = vsel %vm5978_vm6, %v3281_v8, %v1999_v9  ;;  %v2007_v44 = vsel %vm5979_vm2, %v1999_v9, %v5078_v32  ;;  %vm5983_vm13 = vnez %v5982_v49  ;;  %v3286_v18 = vunpack.i.h.bf16 %v3284_v55  ;;  %vm5994_vm3 = vmmov %vm5993_vm9  ;;  %v6005_v30 = vld [vmem:[#allocation8_spill] sm:$0xff] }
 0x3d6   :  { %vm5984_vm5 = vmpackc.low %vm5981_vm11, %vm5983_vm13  ;;  %v3008_v58 = vpack.c.bf16 %v2007_v44, %v4889_v54  ;;  %v3011_v10 = vpack.c.bf16 %v2000_v46, %v4874_v16  ;;  %2986 = vmatprep.subr.msk.bf16.mxu0 %vm5986_vm12, %v2984_v26  ;;  %v3285_v22 = vunpack.i.l.bf16 %v3284_v55  ;;  %vm6002_vm2 = vnez %v6001_v11  ;;  %v6020_v8 = vld [vmem:[#allocation28_spill] sm:$0xff]  ;;  %v3302_v26 = vld [vmem:[%s5368_s0] sm:$0xff] }
 0x3d7   :  { %3007 = vmatpush1.bf16.msk.msra.mxu1 %vm5984_vm5, %v3005_v36  ;;  %vm5996_vm1 = vmmov %vm5995_vm14  ;;  %vm6004_vm11 = vnez %v6003_v52  ;;  %vm6006_vm13 = vnez %v6005_v30  ;;  %vm6007_vm5 = vcmp.lt.s32.totalorder %v3530_v38, 111  ;;  %v3305_v44 = vld [vmem:[%s5368_s0 + $0x18] sm:$0xff] }
 0x3d8   :  { %2989 = vmatpush1.bf16.msk.msra.mxu0 %vm5988_vm8, %v2987_v34  ;;  %v3289_v33 = vpop.permute.xlu0 %3288  ;;  %v2039_v32 = vpop.permute.xlu1 %2038  ;;  %3010 = vmatprep.subr.msk.bf16.mxu1 %vm5990_vm0, %v3008_v58  ;;  %v2041_v16 = vsel %vm5993_vm9, %v3285_v22, %v3286_v18  ;;  %v2042_v54 = vsel %vm5994_vm3, %v3246_v48, %v3285_v22  ;;  %vm5997_vm15 = vmmov %vm5994_vm3  ;;  %vm6010_vm8 = vnez %v6009_v53  ;;  %vm6015_vm9 = vnez %v6014_v20 }
 0x3d9   :  { %v3291_v29 = vunpack.i.h.bf16 %v3289_v33  ;;  %v3290_v3 = vunpack.i.l.bf16 %v3289_v33  ;;  %v2040_v45 = vsel %vm5997_vm15, %v3286_v18, %v2039_v32  ;;  %vm5998_vm10 = vmmov %vm5994_vm3  ;;  %vm6017_vm3 = vnez %v6016_v27 }
 0x3da   :  { %v2047_v39 = vsel %vm5998_vm10, %v2039_v32, %v5100_v7  ;;  %vm5999_vm4 = vmmov %vm5996_vm1  ;;  %vm6021_vm15 = vnez %v6020_v8 }
 0x3db   :  { %3013 = vmatpush1.bf16.msk.msra.mxu1 %vm5992_vm7, %v3011_v10  ;;  %v2081_v28 = vsel %vm5995_vm14, %v3290_v3, %v3291_v29  ;;  %v2082_v13 = vsel %vm5996_vm1, %v3256_v62, %v3290_v3  ;;  %vm6000_vm6 = vmmov %vm5996_vm1  ;;  %vm6013_vm7 = vnez %v6012_v50  ;;  %vm6019_vm1 = vcmask 588800  }
 0x3dc   :  { %v2990_v4 = vpack.c.bf16 %v2081_v28, %v2041_v16  ;;  %v2993_v19 = vpack.c.bf16 %v2082_v13, %v2042_v54  ;;  %v2115_v37 = vpop.permute.xlu0 %2114  ;;  %v2079_v25 = vpop.permute.xlu1 %2078  ;;  %vm6008_vm12 = vmmov %vm6007_vm5  ;;  %v3306_v16 = vld [vmem:[%s5368_s0 + $0x20] sm:$0xff]  ;;  %v3307_v13 = vld [vmem:[%s5368_s0 + $0x28] sm:$0xff] }
 0x3dd   :  { %v2080_v48 = vsel %vm5999_vm4, %v3291_v29, %v2079_v25  ;;  %v2087_v59 = vsel %vm6000_vm6, %v2079_v25, %v5120_v6  ;;  %vm6011_vm0 = vmmov %vm6007_vm5  ;;  %v3308_v25 = vld [vmem:[%s5368_s0 + $0x30] sm:$0xff] }
 0x3de   :  { %v3014_v15 = vpack.c.bf16 %v2087_v59, %v2047_v39  ;;  %v3017_v62 = vpack.c.bf16 %v2080_v48, %v2040_v45  ;;  %2992 = vmatprep.subr.msk.bf16.mxu0 %vm6002_vm2, %v2990_v4  ;;  %v2122_v5 = vsel %vm6011_vm0, %v5156_v63, %v2115_v37  ;;  %vm6018_vm14 = vmmov %vm6011_vm0  ;;  %v3309_v48 = vld [vmem:[%s5368_s0 + $0x38] sm:$0xff] }
 0x3df   :  { %2995 = vmatpush1.bf16.msk.msra.mxu0 %vm6004_vm11, %v2993_v19  ;;  %vm6022_vm10 = vmmov %vm6019_vm1 }
 0x3e0   :  { %v2119_v2 = vpop.permute.xlu0 %2118  ;;  %v2117_v41 = vpop.permute.xlu1 %2116  ;;  %3016 = vmatprep.subr.msk.bf16.mxu1 %vm6006_vm13, %v3014_v15 }
 0x3e1   :  { %v2127_v7 = vsel %vm6007_vm5, %v2119_v2, %v5154_v47  ;;  %v2121_v6 = vsel %vm6008_vm12, %v2115_v37, %v2117_v41  ;;  %3019 = vmatpush1.bf16.msk.msra.mxu1 %vm6010_vm8, %v3017_v62  ;;  %v2120_v47 = vsel %vm6018_vm14, %v2117_v41, %v2119_v2 }
 0x3e2   :  { %2726 = vmatprep.subr.msk.mxu0 %vm6013_vm7, %v2121_v6  ;;  %2742 = vmatprep.subr.msk.mxu1 %vm6015_vm9, %v2127_v7 }
 0x3e3   :  { %2727 = vmatpush1.msk.msra.mxu0 %vm6017_vm3, %v2122_v5 }
 0x3e4   :  { %2614 = vmatmul.mubr.msk.f32.vlgmr.msra.gmra.mrb[14].mxu0 %vm6019_vm1, %v5161_v0 }
 0x3e5   :  { %2743 = vmatpush1.msk.msra.mxu1 %vm6021_vm15, %v2120_v47 }
 0x3e6   :  { %2615 = vmatmul.mubr.msk.f32.vlgmr.msra.gmra.mrb[14].mxu1 %vm6022_vm10, %v5161_v0  ;;  %v3303_v0 = vld [vmem:[%s5368_s0 + $0x8] sm:$0xff] }
 0x3f1   :  { %v2508_v63 = vpop.permute.xlu1 %2507  ;;  %v2522_v36 = vpop.permute.xlu0 %2521 }
 0x49e   :  { %v2286_v43 = vpop.f32.mrb[12].mxu0 }
 0x49f   :  { %v2510_v12 = vmul.f32 %v2508_v63, %v2286_v43  ;;  %v2288_v61 = vpop.f32.mrb[13].mxu0  ;;  %v2357_v57 = vpop.f32.mrb[12].mxu1 }
 0x4a0   :  { %v2511_v1 = vmul.f32 %v2508_v63, %v2288_v61  ;;  %v2512_v21 = vmul.f32 %v2508_v63, %v2357_v57  ;;  %v2359_v31 = vpop.f32.mrb[13].mxu1 }
 0x4a1   :  { %v2524_v38 = vadd.f32 %v2522_v36, %v2510_v12  ;;  %v2513_v56 = vmul.f32 %v2508_v63, %v2359_v31 }
 0x4a2   :  { %v2525_v40 = vadd.f32 %v2522_v36, %v2511_v1  ;;  %v2526_v60 = vadd.f32 %v2522_v36, %v2512_v21 }
 0x4a3   :  { %v2532_v34 = vadd.f32 %v3302_v26, %v2524_v38  ;;  %v2527_v55 = vadd.f32 %v2522_v36, %v2513_v56 }
 0x4a4   :  { %v2533_v9 = vadd.f32 %v3303_v0, %v2525_v40  ;;  %v2534_v23 = vadd.f32 %v3304_v42, %v2526_v60 }
 0x4a5   :  { %v2540_v46 = vmax.f32 %v2532_v34, 0.0  ;;  %v2535_v35 = vadd.f32 %v3305_v44, %v2527_v55 }
 0x4a6   :  { %v2541_v49 = vmax.f32 %v2533_v9, 0.0  ;;  %v2542_v58 = vmax.f32 %v2534_v23, 0.0 }
 0x4a7   :  { %2548 = vst [vmem:[%s5381_s13] sm:$0xff] %v2540_v46  ;;  %v2543_v10 = vmax.f32 %v2535_v35, 0.0 }
 0x4a8   :  { %2549 = vst [vmem:[%s5381_s13 + $0x8] sm:$0xff] %v2541_v49  ;;  %2550 = vst [vmem:[%s5381_s13 + $0x10] sm:$0xff] %v2542_v58 }
 0x4a9   :  { %2551 = vst [vmem:[%s5381_s13 + $0x18] sm:$0xff] %v2543_v10 }
 0x4b7   :  { %v2428_v24 = vpop.f32.mrb[14].mxu0 }
 0x4b8   :  { %v2514_v18 = vmul.f32 %v2508_v63, %v2428_v24  ;;  %v2430_v22 = vpop.f32.mrb[15].mxu0 }
 0x4b9   :  { %v2515_v14 = vmul.f32 %v2508_v63, %v2430_v22  ;;  %v2499_v33 = vpop.f32.mrb[14].mxu1 }
 0x4ba   :  { %v2528_v32 = vadd.f32 %v2522_v36, %v2514_v18  ;;  %v2516_v17 = vmul.f32 %v2508_v63, %v2499_v33  ;;  %v2501_v29 = vpop.f32.mrb[15].mxu1 }
 0x4bb   :  { %v2529_v3 = vadd.f32 %v2522_v36, %v2515_v14  ;;  %v2517_v51 = vmul.f32 %v2508_v63, %v2501_v29 }
 0x4bc   :  { %v2536_v54 = vadd.f32 %v3306_v16, %v2528_v32  ;;  %v2530_v28 = vadd.f32 %v2522_v36, %v2516_v17 }
 0x4bd   :  { %v2537_v4 = vadd.f32 %v3307_v13, %v2529_v3  ;;  %v2531_v19 = vadd.f32 %v2522_v36, %v2517_v51 }
 0x4be   :  { %v2544_v37 = vmax.f32 %v2536_v54, 0.0  ;;  %v2538_v45 = vadd.f32 %v3308_v25, %v2530_v28 }
 0x4bf   :  { %v2545_v39 = vmax.f32 %v2537_v4, 0.0  ;;  %v2539_v59 = vadd.f32 %v3309_v48, %v2531_v19 }
 0x4c0   :  { %2552 = vst [vmem:[%s5381_s13 + $0x20] sm:$0xff] %v2544_v37  ;;  %v2546_v15 = vmax.f32 %v2538_v45, 0.0 }
 0x4c1   :  { %2553 = vst [vmem:[%s5381_s13 + $0x28] sm:$0xff] %v2545_v39  ;;  %v2547_v62 = vmax.f32 %v2539_v59, 0.0 }
 0x4c2   :  { %2554 = vst [vmem:[%s5381_s13 + $0x30] sm:$0xff] %v2546_v15 }
 0x4c3   :  { %2555 = vst [vmem:[%s5381_s13 + $0x38] sm:$0xff] %v2547_v62 }

</bundles_post_ra>
